<compile_context>
chip_gen: v5e
topology: v5e:2x2
jax: 0.10.0
libtpu: 0.0.40
codegen_flags: <defaults>
</compile_context>

<pallas_src>
import numpy as np
import jax
import jax.numpy as jnp
from jax.experimental import pallas as pl
from jax.experimental.pallas import tpu as pltpu

# ---------------- configuration (small, forward-consistent shapes) -----------
IMG_SIZE = 64            # model input resolution (real SAM2 uses 1024)
PATCH = 4                # patch-embed stride
C_IN = 3

G0, D0, H0 = IMG_SIZE // PATCH, 32, 1        # stage 1: stride 4
G1, D1, H1 = G0 // 2, 64, 2                  # stage 2: stride 8
G2, D2, H2 = G1 // 2, 128, 4                 # stage 3: stride 16
NP0, NP1, NP2 = G0 * G0, G1 * G1, G2 * G2    # 256 / 64 / 16 tokens (8-aligned)
OUT32, OUT64, OUT256 = 32, 64, 256           # neck output channels
LANE = 128                                   # lane-dense padding for 32/64 outs
Q_TILE = 64                                  # stage-1 query-row tile

VMEM_SPEC = pl.BlockSpec(memory_space=pltpu.MemorySpace.VMEM)

# rows of the per-stage packed vector slab (shape [10, 4*D], f32)
ROW_LN1_W, ROW_LN1_B, ROW_LN2_W, ROW_LN2_B = 0, 1, 2, 3
ROW_QKV_B, ROW_PROJ_B, ROW_FC1_B, ROW_FC2_B = 4, 5, 6, 7
ROW_DS_B, ROW_NECK_B = 8, 9
N_VEC_ROWS = 10


# ---------------------------- kernel helpers ----------------------------------
def _mm(a, b):
    """a @ b on the MXU with bf16 inputs and f32 accumulation."""
    return jax.lax.dot_general(
        a.astype(jnp.bfloat16), b.astype(jnp.bfloat16),
        dimension_numbers=(((1,), (0,)), ((), ())),
        preferred_element_type=jnp.float32)


def _mm_t(a, b):
    """a @ b.T without materializing a transpose (contract last dims)."""
    return jax.lax.dot_general(
        a.astype(jnp.bfloat16), b.astype(jnp.bfloat16),
        dimension_numbers=(((1,), (1,)), ((), ())),
        preferred_element_type=jnp.float32)


def _layernorm(v, w, b, eps=1e-6):
    mu = jnp.mean(v, axis=-1, keepdims=True)
    var = jnp.mean((v - mu) ** 2, axis=-1, keepdims=True)
    return (v - mu) * jax.lax.rsqrt(var + eps) * w + b


def _block(x, vec_ref, qkv_w_ref, proj_w_ref, fc1_w_ref, fc2_w_ref, heads):
    """Pre-norm attention + MLP on an [S, D] token slab (values in vregs).

    QKV is one fused [D, 3D] matmul; per-head attention uses 32-lane slices of
    the fused result; the head contexts are lane-concatenated and hit a single
    [D, D] output projection.  For S > Q_TILE the query rows are processed in
    tiles so the score/exp working set never approaches the register file size.
    """
    S, D = x.shape
    hd = D // heads
    scale = 1.0 / float(np.sqrt(hd))

    ln1_w = vec_ref[ROW_LN1_W:ROW_LN1_W + 1, 0:D]
    ln1_b = vec_ref[ROW_LN1_B:ROW_LN1_B + 1, 0:D]
    ln2_w = vec_ref[ROW_LN2_W:ROW_LN2_W + 1, 0:D]
    ln2_b = vec_ref[ROW_LN2_B:ROW_LN2_B + 1, 0:D]
    qkv_b = vec_ref[ROW_QKV_B:ROW_QKV_B + 1, 0:3 * D]
    proj_b = vec_ref[ROW_PROJ_B:ROW_PROJ_B + 1, 0:D]
    fc1_b = vec_ref[ROW_FC1_B:ROW_FC1_B + 1, 0:4 * D]
    fc2_b = vec_ref[ROW_FC2_B:ROW_FC2_B + 1, 0:D]

    h = _layernorm(x, ln1_w, ln1_b)
    qkv = _mm(h, qkv_w_ref[...]) + qkv_b                   # [S, 3D] f32
    q = qkv[:, 0:D]
    k_bf = qkv[:, D:2 * D].astype(jnp.bfloat16)
    v_bf = qkv[:, 2 * D:3 * D].astype(jnp.bfloat16)

    def attend(q_rows):                                    # [T, D] -> [T, D]
        ctx_heads = []
        for hh in range(heads):                            # static unroll, <= 4
            s = _mm_t(q_rows[:, hh * hd:(hh + 1) * hd],
                      k_bf[:, hh * hd:(hh + 1) * hd]) * scale
            s = s - jnp.max(s, axis=-1, keepdims=True)
            e = jnp.exp(s)
            # TODO(synk): approx EUP reciprocal vs torch's exact softmax divide.
            a = e * pl.reciprocal(jnp.sum(e, axis=-1, keepdims=True), approx=True)
            ctx_heads.append(_mm(a, v_bf[:, hh * hd:(hh + 1) * hd]))
        if heads == 1:
            return ctx_heads[0]
        return jnp.concatenate(ctx_heads, axis=-1)

    if S <= Q_TILE:
        ctx = attend(q)
    else:                                                  # stage 1: S=256
        ctx = jnp.concatenate(
            [attend(q[t * Q_TILE:(t + 1) * Q_TILE, :]) for t in range(S // Q_TILE)],
            axis=0)

    x = x + _mm(ctx, proj_w_ref[...]) + proj_b

    h2 = _layernorm(x, ln2_w, ln2_b)
    h2 = _mm(h2, fc1_w_ref[...]) + fc1_b
    # TODO(synk): torch nn.GELU defaults to exact erf; tanh approximation used.
    h2 = jax.nn.gelu(h2, approximate=True)
    h2 = _mm(h2, fc2_w_ref[...]) + fc2_b
    return x + h2


# ---------------------------- fused, feat_dim-specialized kernel --------------
def _make_kernel(feat_dim):
    def kernel(*refs):
        out_ref = refs[-1]
        it = iter(refs[:-1])
        take = lambda n: [next(it) for _ in range(n)]

        # ---- stage 1 (stride 4, D0): patch embed (ImageNet mean/std folded
        #      into patch_w; patch bias folded into the pos embed) ----
        patches_ref, patch_w_ref, pos_ref, vec1_ref, qkv1, proj1, fc11, fc21 = take(8)
        x = _mm(patches_ref[...], patch_w_ref[...]) + pos_ref[...]     # [NP0, D0]
        x = _block(x, vec1_ref, qkv1, proj1, fc11, fc21, heads=H0)
        if feat_dim == 32:                       # high_res_feats[0] only
            (neck_w,) = take(1)
            out_ref[...] = (_mm(x, neck_w[...])
                            + vec1_ref[ROW_NECK_B:ROW_NECK_B + 1, 0:LANE])
            return

        # ---- downsample to stride 8, D1: 2x2 mean pool as matmul + expand ----
        pool1_ref, ds1_w_ref, vec2_ref, qkv2, proj2, fc12, fc22 = take(7)
        x = _mm(pool1_ref[...], x)                                      # [NP1, D0]
        x = _mm(x, ds1_w_ref[...]) + vec2_ref[ROW_DS_B:ROW_DS_B + 1, 0:D1]
        x = _block(x, vec2_ref, qkv2, proj2, fc12, fc22, heads=H1)
        if feat_dim == 64:                       # high_res_feats[1] only
            (neck_w,) = take(1)
            out_ref[...] = (_mm(x, neck_w[...])
                            + vec2_ref[ROW_NECK_B:ROW_NECK_B + 1, 0:LANE])
            return

        # ---- downsample to stride 16, D2 ----
        pool2_ref, ds2_w_ref, vec3_ref, qkv3, proj3, fc13, fc23 = take(7)
        x = _mm(pool2_ref[...], x)                                      # [NP2, D1]
        x = _mm(x, ds2_w_ref[...]) + vec3_ref[ROW_DS_B:ROW_DS_B + 1, 0:D2]
        x = _block(x, vec3_ref, qkv3, proj3, fc13, fc23, heads=H2)
        (neck_w,) = take(1)
        out_ref[...] = (_mm(x, neck_w[...])                              # image_embed
                        + vec3_ref[ROW_NECK_B:ROW_NECK_B + 1, 0:OUT256])

    return kernel


_OUT_SHAPES = {
    32: jax.ShapeDtypeStruct((NP0, LANE), jnp.float32),
    64: jax.ShapeDtypeStruct((NP1, LANE), jnp.float32),
    256: jax.ShapeDtypeStruct((NP2, OUT256), jnp.float32),
}
_FLOPS = {32: 21_000_000, 64: 34_000_000, 256: 46_000_000}
_TRANS = {32: 100_000, 64: 135_000, 256: 145_000}


def _collect_args(patches, p, feat_dim):
    args = [patches, p['patch_w'], p['pos0'], p['vec1'],
            p['qkv_w1'], p['proj_w1'], p['fc1_w1'], p['fc2_w1']]
    if feat_dim == 32:
        return args + [p['neck32_w']]
    args += [p['pool1'], p['ds1_w'], p['vec2'],
             p['qkv_w2'], p['proj_w2'], p['fc1_w2'], p['fc2_w2']]
    if feat_dim == 64:
        return args + [p['neck64_w']]
    args += [p['pool2'], p['ds2_w'], p['vec3'],
             p['qkv_w3'], p['proj_w3'], p['fc1_w3'], p['fc2_w3']]
    return args + [p['neck256_w']]


def sam2_fused_pallas(args, feat_dim):
    out_shape = _OUT_SHAPES[feat_dim]
    bytes_accessed = int(sum(int(np.prod(a.shape)) * a.dtype.itemsize for a in args)
                         + int(np.prod(out_shape.shape)) * 4)
    return pl.pallas_call(
        _make_kernel(feat_dim),
        out_shape=out_shape,
        in_specs=[VMEM_SPEC] * len(args),
        out_specs=VMEM_SPEC,
        cost_estimate=pl.CostEstimate(flops=_FLOPS[feat_dim],
                                      transcendentals=_TRANS[feat_dim],
                                      bytes_accessed=bytes_accessed),
    )(*args)


# ---------------------------- parameter setup ---------------------------------
def _make_pool_matrix(g_in):
    """[g_out^2, g_in^2] matrix averaging 2x2 spatial blocks (row-major grid)."""
    g_out = g_in // 2
    m = np.zeros((g_out * g_out, g_in * g_in), np.float32)
    for oy in range(g_out):
        for ox in range(g_out):
            for dy in range(2):
                for dx in range(2):
                    m[oy * g_out + ox, (2 * oy + dy) * g_in + (2 * ox + dx)] = 0.25
    return jnp.asarray(m, dtype=jnp.bfloat16)


def _fold_normalization(patch_w, patch_b):
    """Fold (x - mean) / std into the linear patch embed (rows ordered c,py,px)."""
    mean = jnp.array([0.485, 0.456, 0.406], jnp.float32)
    std = jnp.array([0.229, 0.224, 0.225], jnp.float32)
    inv_std = jnp.repeat(1.0 / std, PATCH * PATCH)[:, None]        # [C*P*P, 1]
    shift = jnp.repeat(mean / std, PATCH * PATCH)[:, None]         # [C*P*P, 1]
    w_f = patch_w * inv_std
    b_f = patch_b - jnp.sum(shift * patch_w, axis=0, keepdims=True)
    return w_f, b_f


def init_params(key):
    ks = iter(jax.random.split(key, 64))

    def nrm(shape, scale=0.02):
        return scale * jax.random.normal(next(ks), shape, dtype=jnp.float32)

    def bf(x):
        return x.astype(jnp.bfloat16)

    def vec_slab(dim):
        # rows: ln1_w ln1_b ln2_w ln2_b qkv_b proj_b fc1_b fc2_b ds_b neck_b
        slab = jnp.zeros((N_VEC_ROWS, 4 * dim), jnp.float32)
        slab = slab.at[ROW_LN1_W, :dim].set(1.0)
        slab = slab.at[ROW_LN2_W, :dim].set(1.0)
        return slab

    def make_block(dim, idx, p):
        p[f'qkv_w{idx}'] = bf(nrm((dim, 3 * dim)))       # [q | k | v], heads contiguous
        p[f'proj_w{idx}'] = bf(nrm((dim, dim)))          # rows = concat'd head ctx
        p[f'fc1_w{idx}'] = bf(nrm((dim, 4 * dim)))
        p[f'fc2_w{idx}'] = bf(nrm((4 * dim, dim)))
        p[f'vec{idx}'] = vec_slab(dim)

    p = {}
    patch_w = nrm((C_IN * PATCH * PATCH, D0))
    patch_b = jnp.zeros((1, D0), jnp.float32)
    # fold ImageNet normalization into the (linear) patch embed -> no separate
    # normalize pass and no extra HBM round trip of the image.
    patch_w, patch_b = _fold_normalization(patch_w, patch_b)
    p['patch_w'] = bf(patch_w)
    p['pos0'] = nrm((NP0, D0)) + patch_b                 # patch bias folded into pos
    make_block(D0, 1, p)
    p['pool1'] = _make_pool_matrix(G0)                   # [NP1, NP0]
    p['ds1_w'] = bf(nrm((D0, D1)))
    make_block(D1, 2, p)
    p['pool2'] = _make_pool_matrix(G1)                   # [NP2, NP1]
    p['ds2_w'] = bf(nrm((D1, D2)))
    make_block(D2, 3, p)
    # neck projections; 32/64-ch weights zero-padded to 128 output lanes so the
    # kernel's output stores are unmasked / lane-dense (sliced back in wrapper).
    p['neck32_w'] = bf(jnp.pad(nrm((D0, OUT32)), ((0, 0), (0, LANE - OUT32))))
    p['neck64_w'] = bf(jnp.pad(nrm((D1, OUT64)), ((0, 0), (0, LANE - OUT64))))
    p['neck256_w'] = bf(nrm((D2, OUT256)))
    return p


# ---------------------------- forward pass ------------------------------------
def sam2_extractor_forward(img, params, feat_dim=32):
    """img: [C, H, W] float32 in [0, 1] -> [H', W', feat_dim] (channels last)."""
    assert feat_dim in (32, 64, 256)
    # preprocess_image (cv2 square resize) + predictor's model-res resize, combined.
    # TODO(synk): cv2.INTER_LINEAR / torchvision bilinear differ slightly from
    # jax.image.resize half-pixel conventions.
    img = jax.image.resize(img, (C_IN, IMG_SIZE, IMG_SIZE), method='bilinear')

    # patchify (strided conv == matmul on flattened patches); glue reshape only.
    patches = (img.reshape(C_IN, G0, PATCH, G0, PATCH)
                  .transpose(1, 3, 0, 2, 4)
                  .reshape(NP0, C_IN * PATCH * PATCH)).astype(jnp.bfloat16)

    # feat_dim-specialized fused pallas_call: only the required stages are traced.
    # TODO(synk): real SAM2 FPN neck (top-down conv pathway) simplified to
    # per-level linear projections; window attention / rel-pos omitted.
    out = sam2_fused_pallas(_collect_args(patches, params, feat_dim), feat_dim)

    if feat_dim == 32:
        return out[:, :OUT32].reshape(G0, G0, OUT32)     # == .squeeze().permute(1,2,0)
    if feat_dim == 64:
        return out[:, :OUT64].reshape(G1, G1, OUT64)
    return out.reshape(G2, G2, OUT256)


# ---------------------------- main --------------------------------------------
if __name__ == "__main__":
    key = jax.random.PRNGKey(0)
    pkey, ikey = jax.random.split(key)
    params = init_params(pkey)
    img = jax.random.uniform(ikey, (C_IN, 64, 96), dtype=jnp.float32)

    expected = {32: (G0, G0, OUT32), 64: (G1, G1, OUT64), 256: (G2, G2, OUT256)}
    for fd in (32, 64, 256):
        fwd = jax.jit(lambda im, fd=fd: sam2_extractor_forward(im, params, feat_dim=fd))
        out = fwd(img)
        jax.block_until_ready(out)
        assert out.shape == expected[fd], (fd, out.shape)
        assert out.dtype == jnp.float32
        assert bool(jnp.all(jnp.isfinite(out))), fd
    print("KERNEL_OK")
</pallas_src>

<mosaic_0001>
module attributes {stable_mosaic.version = 11 : i64} {
  func.func @kernel(%arg0: memref<256x48xbf16, #tpu.memory_space<vmem>>, %arg1: memref<48x32xbf16, #tpu.memory_space<vmem>>, %arg2: memref<256x32xf32, #tpu.memory_space<vmem>>, %arg3: memref<10x128xf32, #tpu.memory_space<vmem>>, %arg4: memref<32x96xbf16, #tpu.memory_space<vmem>>, %arg5: memref<32x32xbf16, #tpu.memory_space<vmem>>, %arg6: memref<32x128xbf16, #tpu.memory_space<vmem>>, %arg7: memref<128x32xbf16, #tpu.memory_space<vmem>>, %arg8: memref<32x128xbf16, #tpu.memory_space<vmem>>, %arg9: memref<256x128xf32, #tpu.memory_space<vmem>>) attributes {dimension_semantics = [], scalar_prefetch = 0 : i64, scratch_operands = 0 : i64, tpu.core_type = #tpu.core_type<tc>} {
    %c0 = arith.constant 0 : index
    %c0_0 = arith.constant 0 : index
    %0 = vector.load %arg0[%c0, %c0_0] : memref<256x48xbf16, #tpu.memory_space<vmem>>, vector<256x48xbf16>
    %c0_1 = arith.constant 0 : index
    %c0_2 = arith.constant 0 : index
    %1 = vector.load %arg1[%c0_1, %c0_2] : memref<48x32xbf16, #tpu.memory_space<vmem>>, vector<48x32xbf16>
    %cst = arith.constant dense<0.000000e+00> : vector<256x32xf32>
    %2 = tpu.matmul %0, %1, %cst {dimension_numbers = #tpu.dot_dimension_numbers<[1], [0], [0], [1], [0, 0, 1, 1], [], []>} : vector<256x48xbf16>, vector<48x32xbf16>, vector<256x32xf32> -> vector<256x32xf32>
    %c0_3 = arith.constant 0 : index
    %c0_4 = arith.constant 0 : index
    %3 = vector.load %arg2[%c0_3, %c0_4] : memref<256x32xf32, #tpu.memory_space<vmem>>, vector<256x32xf32>
    %4 = arith.addf %2, %3 : vector<256x32xf32>
    %c0_5 = arith.constant 0 : index
    %c0_6 = arith.constant 0 : index
    %5 = vector.load %arg3[%c0_5, %c0_6] : memref<10x128xf32, #tpu.memory_space<vmem>>, vector<1x32xf32>
    %c1 = arith.constant 1 : index
    %c0_7 = arith.constant 0 : index
    %6 = vector.load %arg3[%c1, %c0_7] : memref<10x128xf32, #tpu.memory_space<vmem>>, vector<1x32xf32>
    %c2 = arith.constant 2 : index
    %c0_8 = arith.constant 0 : index
    %7 = vector.load %arg3[%c2, %c0_8] : memref<10x128xf32, #tpu.memory_space<vmem>>, vector<1x32xf32>
    %c3 = arith.constant 3 : index
    %c0_9 = arith.constant 0 : index
    %8 = vector.load %arg3[%c3, %c0_9] : memref<10x128xf32, #tpu.memory_space<vmem>>, vector<1x32xf32>
    %c4 = arith.constant 4 : index
    %c0_10 = arith.constant 0 : index
    %9 = vector.load %arg3[%c4, %c0_10] : memref<10x128xf32, #tpu.memory_space<vmem>>, vector<1x96xf32>
    %c5 = arith.constant 5 : index
    %c0_11 = arith.constant 0 : index
    %10 = vector.load %arg3[%c5, %c0_11] : memref<10x128xf32, #tpu.memory_space<vmem>>, vector<1x32xf32>
    %c6 = arith.constant 6 : index
    %c0_12 = arith.constant 0 : index
    %11 = vector.load %arg3[%c6, %c0_12] : memref<10x128xf32, #tpu.memory_space<vmem>>, vector<1x128xf32>
    %c7 = arith.constant 7 : index
    %c0_13 = arith.constant 0 : index
    %12 = vector.load %arg3[%c7, %c0_13] : memref<10x128xf32, #tpu.memory_space<vmem>>, vector<1x32xf32>
    %cst_14 = arith.constant dense<0.000000e+00> : vector<256xf32>
    %13 = vector.multi_reduction <add>, %4, %cst_14 [1] : vector<256x32xf32> to vector<256xf32>
    %14 = vector.shape_cast %13 : vector<256xf32> to vector<256x1xf32>
    %cst_15 = arith.constant 3.200000e+01 : f32
    %15 = vector.broadcast %cst_15 : f32 to vector<256x1xf32>
    %16 = arith.divf %14, %15 : vector<256x1xf32>
    %17 = vector.broadcast %16 : vector<256x1xf32> to vector<256x32xf32>
    %18 = arith.subf %4, %17 : vector<256x32xf32>
    %19 = arith.mulf %18, %18 : vector<256x32xf32>
    %cst_16 = arith.constant dense<0.000000e+00> : vector<256xf32>
    %20 = vector.multi_reduction <add>, %19, %cst_16 [1] : vector<256x32xf32> to vector<256xf32>
    %21 = vector.shape_cast %20 : vector<256xf32> to vector<256x1xf32>
    %cst_17 = arith.constant 3.200000e+01 : f32
    %22 = vector.broadcast %cst_17 : f32 to vector<256x1xf32>
    %23 = arith.divf %21, %22 : vector<256x1xf32>
    %24 = vector.broadcast %16 : vector<256x1xf32> to vector<256x32xf32>
    %25 = arith.subf %4, %24 : vector<256x32xf32>
    %cst_18 = arith.constant 9.99999997E-7 : f32
    %26 = vector.broadcast %cst_18 : f32 to vector<256x1xf32>
    %27 = arith.addf %23, %26 : vector<256x1xf32>
    %28 = math.rsqrt %27 : vector<256x1xf32>
    %29 = vector.broadcast %28 : vector<256x1xf32> to vector<256x32xf32>
    %30 = arith.mulf %25, %29 : vector<256x32xf32>
    %31 = vector.broadcast %5 : vector<1x32xf32> to vector<256x32xf32>
    %32 = arith.mulf %30, %31 : vector<256x32xf32>
    %33 = vector.broadcast %6 : vector<1x32xf32> to vector<256x32xf32>
    %34 = arith.addf %32, %33 : vector<256x32xf32>
    %c0_19 = arith.constant 0 : index
    %c0_20 = arith.constant 0 : index
    %35 = vector.load %arg4[%c0_19, %c0_20] : memref<32x96xbf16, #tpu.memory_space<vmem>>, vector<32x96xbf16>
    %36 = arith.truncf %34 : vector<256x32xf32> to vector<256x32xbf16>
    %cst_21 = arith.constant dense<0.000000e+00> : vector<256x96xf32>
    %37 = tpu.matmul %36, %35, %cst_21 {dimension_numbers = #tpu.dot_dimension_numbers<[1], [0], [0], [1], [0, 0, 1, 1], [], []>} : vector<256x32xbf16>, vector<32x96xbf16>, vector<256x96xf32> -> vector<256x96xf32>
    %38 = vector.broadcast %9 : vector<1x96xf32> to vector<256x96xf32>
    %39 = arith.addf %37, %38 : vector<256x96xf32>
    %40 = vector.extract_strided_slice %39 {offsets = [0, 0], sizes = [256, 32], strides = [1, 1]} : vector<256x96xf32> to vector<256x32xf32>
    %41 = vector.extract_strided_slice %39 {offsets = [0, 32], sizes = [256, 32], strides = [1, 1]} : vector<256x96xf32> to vector<256x32xf32>
    %42 = arith.truncf %41 : vector<256x32xf32> to vector<256x32xbf16>
    %43 = vector.extract_strided_slice %39 {offsets = [0, 64], sizes = [256, 32], strides = [1, 1]} : vector<256x96xf32> to vector<256x32xf32>
    %44 = arith.truncf %43 : vector<256x32xf32> to vector<256x32xbf16>
    %45 = vector.extract_strided_slice %40 {offsets = [0, 0], sizes = [64, 32], strides = [1, 1]} : vector<256x32xf32> to vector<64x32xf32>
    %46 = arith.truncf %45 : vector<64x32xf32> to vector<64x32xbf16>
    %cst_22 = arith.constant dense<0.000000e+00> : vector<64x256xf32>
    %47 = tpu.matmul %46, %42, %cst_22 {dimension_numbers = #tpu.dot_dimension_numbers<[1], [1], [0], [0], [0, 0, 1, 0], [], []>} : vector<64x32xbf16>, vector<256x32xbf16>, vector<64x256xf32> -> vector<64x256xf32>
    %cst_23 = arith.constant 0.176776692 : f32
    %48 = vector.broadcast %cst_23 : f32 to vector<64x256xf32>
    %49 = arith.mulf %47, %48 : vector<64x256xf32>
    %cst_24 = arith.constant dense<0xFF800000> : vector<64xf32>
    %50 = vector.multi_reduction <maximumf>, %49, %cst_24 [1] : vector<64x256xf32> to vector<64xf32>
    %51 = vector.shape_cast %50 : vector<64xf32> to vector<64x1xf32>
    %52 = vector.broadcast %51 : vector<64x1xf32> to vector<64x256xf32>
    %53 = arith.subf %49, %52 : vector<64x256xf32>
    %54 = math.exp %53 : vector<64x256xf32>
    %cst_25 = arith.constant dense<0.000000e+00> : vector<64xf32>
    %55 = vector.multi_reduction <add>, %54, %cst_25 [1] : vector<64x256xf32> to vector<64xf32>
    %56 = vector.shape_cast %55 : vector<64xf32> to vector<64x1xf32>
    %57 = tpu.reciprocal %56 {approx = true} : vector<64x1xf32> -> vector<64x1xf32>
    %58 = vector.broadcast %57 : vector<64x1xf32> to vector<64x256xf32>
    %59 = arith.mulf %54, %58 : vector<64x256xf32>
    %60 = arith.truncf %59 : vector<64x256xf32> to vector<64x256xbf16>
    %cst_26 = arith.constant dense<0.000000e+00> : vector<64x32xf32>
    %61 = tpu.matmul %60, %44, %cst_26 {dimension_numbers = #tpu.dot_dimension_numbers<[1], [0], [0], [1], [0, 0, 1, 1], [], []>} : vector<64x256xbf16>, vector<256x32xbf16>, vector<64x32xf32> -> vector<64x32xf32>
    %62 = vector.extract_strided_slice %40 {offsets = [64, 0], sizes = [64, 32], strides = [1, 1]} : vector<256x32xf32> to vector<64x32xf32>
    %63 = arith.truncf %62 : vector<64x32xf32> to vector<64x32xbf16>
    %cst_27 = arith.constant dense<0.000000e+00> : vector<64x256xf32>
    %64 = tpu.matmul %63, %42, %cst_27 {dimension_numbers = #tpu.dot_dimension_numbers<[1], [1], [0], [0], [0, 0, 1, 0], [], []>} : vector<64x32xbf16>, vector<256x32xbf16>, vector<64x256xf32> -> vector<64x256xf32>
    %cst_28 = arith.constant 0.176776692 : f32
    %65 = vector.broadcast %cst_28 : f32 to vector<64x256xf32>
    %66 = arith.mulf %64, %65 : vector<64x256xf32>
    %cst_29 = arith.constant dense<0xFF800000> : vector<64xf32>
    %67 = vector.multi_reduction <maximumf>, %66, %cst_29 [1] : vector<64x256xf32> to vector<64xf32>
    %68 = vector.shape_cast %67 : vector<64xf32> to vector<64x1xf32>
    %69 = vector.broadcast %68 : vector<64x1xf32> to vector<64x256xf32>
    %70 = arith.subf %66, %69 : vector<64x256xf32>
    %71 = math.exp %70 : vector<64x256xf32>
    %cst_30 = arith.constant dense<0.000000e+00> : vector<64xf32>
    %72 = vector.multi_reduction <add>, %71, %cst_30 [1] : vector<64x256xf32> to vector<64xf32>
    %73 = vector.shape_cast %72 : vector<64xf32> to vector<64x1xf32>
    %74 = tpu.reciprocal %73 {approx = true} : vector<64x1xf32> -> vector<64x1xf32>
    %75 = vector.broadcast %74 : vector<64x1xf32> to vector<64x256xf32>
    %76 = arith.mulf %71, %75 : vector<64x256xf32>
    %77 = arith.truncf %76 : vector<64x256xf32> to vector<64x256xbf16>
    %cst_31 = arith.constant dense<0.000000e+00> : vector<64x32xf32>
    %78 = tpu.matmul %77, %44, %cst_31 {dimension_numbers = #tpu.dot_dimension_numbers<[1], [0], [0], [1], [0, 0, 1, 1], [], []>} : vector<64x256xbf16>, vector<256x32xbf16>, vector<64x32xf32> -> vector<64x32xf32>
    %79 = vector.extract_strided_slice %40 {offsets = [128, 0], sizes = [64, 32], strides = [1, 1]} : vector<256x32xf32> to vector<64x32xf32>
    %80 = arith.truncf %79 : vector<64x32xf32> to vector<64x32xbf16>
    %cst_32 = arith.constant dense<0.000000e+00> : vector<64x256xf32>
    %81 = tpu.matmul %80, %42, %cst_32 {dimension_numbers = #tpu.dot_dimension_numbers<[1], [1], [0], [0], [0, 0, 1, 0], [], []>} : vector<64x32xbf16>, vector<256x32xbf16>, vector<64x256xf32> -> vector<64x256xf32>
    %cst_33 = arith.constant 0.176776692 : f32
    %82 = vector.broadcast %cst_33 : f32 to vector<64x256xf32>
    %83 = arith.mulf %81, %82 : vector<64x256xf32>
    %cst_34 = arith.constant dense<0xFF800000> : vector<64xf32>
    %84 = vector.multi_reduction <maximumf>, %83, %cst_34 [1] : vector<64x256xf32> to vector<64xf32>
    %85 = vector.shape_cast %84 : vector<64xf32> to vector<64x1xf32>
    %86 = vector.broadcast %85 : vector<64x1xf32> to vector<64x256xf32>
    %87 = arith.subf %83, %86 : vector<64x256xf32>
    %88 = math.exp %87 : vector<64x256xf32>
    %cst_35 = arith.constant dense<0.000000e+00> : vector<64xf32>
    %89 = vector.multi_reduction <add>, %88, %cst_35 [1] : vector<64x256xf32> to vector<64xf32>
    %90 = vector.shape_cast %89 : vector<64xf32> to vector<64x1xf32>
    %91 = tpu.reciprocal %90 {approx = true} : vector<64x1xf32> -> vector<64x1xf32>
    %92 = vector.broadcast %91 : vector<64x1xf32> to vector<64x256xf32>
    %93 = arith.mulf %88, %92 : vector<64x256xf32>
    %94 = arith.truncf %93 : vector<64x256xf32> to vector<64x256xbf16>
    %cst_36 = arith.constant dense<0.000000e+00> : vector<64x32xf32>
    %95 = tpu.matmul %94, %44, %cst_36 {dimension_numbers = #tpu.dot_dimension_numbers<[1], [0], [0], [1], [0, 0, 1, 1], [], []>} : vector<64x256xbf16>, vector<256x32xbf16>, vector<64x32xf32> -> vector<64x32xf32>
    %96 = vector.extract_strided_slice %40 {offsets = [192, 0], sizes = [64, 32], strides = [1, 1]} : vector<256x32xf32> to vector<64x32xf32>
    %97 = arith.truncf %96 : vector<64x32xf32> to vector<64x32xbf16>
    %cst_37 = arith.constant dense<0.000000e+00> : vector<64x256xf32>
    %98 = tpu.matmul %97, %42, %cst_37 {dimension_numbers = #tpu.dot_dimension_numbers<[1], [1], [0], [0], [0, 0, 1, 0], [], []>} : vector<64x32xbf16>, vector<256x32xbf16>, vector<64x256xf32> -> vector<64x256xf32>
    %cst_38 = arith.constant 0.176776692 : f32
    %99 = vector.broadcast %cst_38 : f32 to vector<64x256xf32>
    %100 = arith.mulf %98, %99 : vector<64x256xf32>
    %cst_39 = arith.constant dense<0xFF800000> : vector<64xf32>
    %101 = vector.multi_reduction <maximumf>, %100, %cst_39 [1] : vector<64x256xf32> to vector<64xf32>
    %102 = vector.shape_cast %101 : vector<64xf32> to vector<64x1xf32>
    %103 = vector.broadcast %102 : vector<64x1xf32> to vector<64x256xf32>
    %104 = arith.subf %100, %103 : vector<64x256xf32>
    %105 = math.exp %104 : vector<64x256xf32>
    %cst_40 = arith.constant dense<0.000000e+00> : vector<64xf32>
    %106 = vector.multi_reduction <add>, %105, %cst_40 [1] : vector<64x256xf32> to vector<64xf32>
    %107 = vector.shape_cast %106 : vector<64xf32> to vector<64x1xf32>
    %108 = tpu.reciprocal %107 {approx = true} : vector<64x1xf32> -> vector<64x1xf32>
    %109 = vector.broadcast %108 : vector<64x1xf32> to vector<64x256xf32>
    %110 = arith.mulf %105, %109 : vector<64x256xf32>
    %111 = arith.truncf %110 : vector<64x256xf32> to vector<64x256xbf16>
    %cst_41 = arith.constant dense<0.000000e+00> : vector<64x32xf32>
    %112 = tpu.matmul %111, %44, %cst_41 {dimension_numbers = #tpu.dot_dimension_numbers<[1], [0], [0], [1], [0, 0, 1, 1], [], []>} : vector<64x256xbf16>, vector<256x32xbf16>, vector<64x32xf32> -> vector<64x32xf32>
    %113 = tpu.concatenate %61, %78, %95, %112 in 0 : vector<64x32xf32>, vector<64x32xf32>, vector<64x32xf32>, vector<64x32xf32> -> vector<256x32xf32>
    %c0_42 = arith.constant 0 : index
    %c0_43 = arith.constant 0 : index
    %114 = vector.load %arg5[%c0_42, %c0_43] : memref<32x32xbf16, #tpu.memory_space<vmem>>, vector<32x32xbf16>
    %115 = arith.truncf %113 : vector<256x32xf32> to vector<256x32xbf16>
    %cst_44 = arith.constant dense<0.000000e+00> : vector<256x32xf32>
    %116 = tpu.matmul %115, %114, %cst_44 {dimension_numbers = #tpu.dot_dimension_numbers<[1], [0], [0], [1], [0, 0, 1, 1], [], []>} : vector<256x32xbf16>, vector<32x32xbf16>, vector<256x32xf32> -> vector<256x32xf32>
    %117 = arith.addf %4, %116 : vector<256x32xf32>
    %118 = vector.broadcast %10 : vector<1x32xf32> to vector<256x32xf32>
    %119 = arith.addf %117, %118 : vector<256x32xf32>
    %cst_45 = arith.constant dense<0.000000e+00> : vector<256xf32>
    %120 = vector.multi_reduction <add>, %119, %cst_45 [1] : vector<256x32xf32> to vector<256xf32>
    %121 = vector.shape_cast %120 : vector<256xf32> to vector<256x1xf32>
    %cst_46 = arith.constant 3.200000e+01 : f32
    %122 = vector.broadcast %cst_46 : f32 to vector<256x1xf32>
    %123 = arith.divf %121, %122 : vector<256x1xf32>
    %124 = vector.broadcast %123 : vector<256x1xf32> to vector<256x32xf32>
    %125 = arith.subf %119, %124 : vector<256x32xf32>
    %126 = arith.mulf %125, %125 : vector<256x32xf32>
    %cst_47 = arith.constant dense<0.000000e+00> : vector<256xf32>
    %127 = vector.multi_reduction <add>, %126, %cst_47 [1] : vector<256x32xf32> to vector<256xf32>
    %128 = vector.shape_cast %127 : vector<256xf32> to vector<256x1xf32>
    %cst_48 = arith.constant 3.200000e+01 : f32
    %129 = vector.broadcast %cst_48 : f32 to vector<256x1xf32>
    %130 = arith.divf %128, %129 : vector<256x1xf32>
    %131 = vector.broadcast %123 : vector<256x1xf32> to vector<256x32xf32>
    %132 = arith.subf %119, %131 : vector<256x32xf32>
    %cst_49 = arith.constant 9.99999997E-7 : f32
    %133 = vector.broadcast %cst_49 : f32 to vector<256x1xf32>
    %134 = arith.addf %130, %133 : vector<256x1xf32>
    %135 = math.rsqrt %134 : vector<256x1xf32>
    %136 = vector.broadcast %135 : vector<256x1xf32> to vector<256x32xf32>
    %137 = arith.mulf %132, %136 : vector<256x32xf32>
    %138 = vector.broadcast %7 : vector<1x32xf32> to vector<256x32xf32>
    %139 = arith.mulf %137, %138 : vector<256x32xf32>
    %140 = vector.broadcast %8 : vector<1x32xf32> to vector<256x32xf32>
    %141 = arith.addf %139, %140 : vector<256x32xf32>
    %c0_50 = arith.constant 0 : index
    %c0_51 = arith.constant 0 : index
    %142 = vector.load %arg6[%c0_50, %c0_51] : memref<32x128xbf16, #tpu.memory_space<vmem>>, vector<32x128xbf16>
    %143 = arith.truncf %141 : vector<256x32xf32> to vector<256x32xbf16>
    %cst_52 = arith.constant dense<0.000000e+00> : vector<256x128xf32>
    %144 = tpu.matmul %143, %142, %cst_52 {dimension_numbers = #tpu.dot_dimension_numbers<[1], [0], [0], [1], [0, 0, 1, 1], [], []>} : vector<256x32xbf16>, vector<32x128xbf16>, vector<256x128xf32> -> vector<256x128xf32>
    %145 = vector.broadcast %11 : vector<1x128xf32> to vector<256x128xf32>
    %146 = arith.addf %144, %145 : vector<256x128xf32>
    %147 = arith.mulf %146, %146 : vector<256x128xf32>
    %148 = arith.mulf %146, %147 : vector<256x128xf32>
    %cst_53 = arith.constant 4.471500e-02 : f32
    %149 = vector.broadcast %cst_53 : f32 to vector<256x128xf32>
    %150 = arith.mulf %149, %148 : vector<256x128xf32>
    %151 = arith.addf %146, %150 : vector<256x128xf32>
    %cst_54 = arith.constant 0.797884583 : f32
    %152 = vector.broadcast %cst_54 : f32 to vector<256x128xf32>
    %153 = arith.mulf %152, %151 : vector<256x128xf32>
    %154 = math.tanh %153 : vector<256x128xf32>
    %cst_55 = arith.constant 1.000000e+00 : f32
    %155 = vector.broadcast %cst_55 : f32 to vector<256x128xf32>
    %156 = arith.addf %155, %154 : vector<256x128xf32>
    %cst_56 = arith.constant 5.000000e-01 : f32
    %157 = vector.broadcast %cst_56 : f32 to vector<256x128xf32>
    %158 = arith.mulf %157, %156 : vector<256x128xf32>
    %159 = arith.mulf %146, %158 : vector<256x128xf32>
    %c0_57 = arith.constant 0 : index
    %c0_58 = arith.constant 0 : index
    %160 = vector.load %arg7[%c0_57, %c0_58] : memref<128x32xbf16, #tpu.memory_space<vmem>>, vector<128x32xbf16>
    %161 = arith.truncf %159 : vector<256x128xf32> to vector<256x128xbf16>
    %cst_59 = arith.constant dense<0.000000e+00> : vector<256x32xf32>
    %162 = tpu.matmul %161, %160, %cst_59 {dimension_numbers = #tpu.dot_dimension_numbers<[1], [0], [0], [1], [0, 0, 1, 1], [], []>} : vector<256x128xbf16>, vector<128x32xbf16>, vector<256x32xf32> -> vector<256x32xf32>
    %163 = vector.broadcast %12 : vector<1x32xf32> to vector<256x32xf32>
    %164 = arith.addf %162, %163 : vector<256x32xf32>
    %165 = arith.addf %119, %164 : vector<256x32xf32>
    %c0_60 = arith.constant 0 : index
    %c0_61 = arith.constant 0 : index
    %166 = vector.load %arg8[%c0_60, %c0_61] : memref<32x128xbf16, #tpu.memory_space<vmem>>, vector<32x128xbf16>
    %167 = arith.truncf %165 : vector<256x32xf32> to vector<256x32xbf16>
    %cst_62 = arith.constant dense<0.000000e+00> : vector<256x128xf32>
    %168 = tpu.matmul %167, %166, %cst_62 {dimension_numbers = #tpu.dot_dimension_numbers<[1], [0], [0], [1], [0, 0, 1, 1], [], []>} : vector<256x32xbf16>, vector<32x128xbf16>, vector<256x128xf32> -> vector<256x128xf32>
    %c9 = arith.constant 9 : index
    %c0_63 = arith.constant 0 : index
    %169 = vector.load %arg3[%c9, %c0_63] : memref<10x128xf32, #tpu.memory_space<vmem>>, vector<1x128xf32>
    %170 = vector.broadcast %169 : vector<1x128xf32> to vector<256x128xf32>
    %171 = arith.addf %168, %170 : vector<256x128xf32>
    %c0_64 = arith.constant 0 : index
    %c0_65 = arith.constant 0 : index
    %172 = vector.load %arg9[%c0_64, %c0_65] : memref<256x128xf32, #tpu.memory_space<vmem>>, vector<256x128xf32>
    tpu.vector_store %arg9[%c0_64, %c0_65], %171 {strides = array<i32>} : memref<256x128xf32, #tpu.memory_space<vmem>>, vector<256x128xf32>,
    return
  }
}

</mosaic_0001>

<bundles_post_ra>
// kernel: _lambda_.1
= control target key start
LH: loop header
LB: loop body
LE: loop exit
PB: predicated region body
PF: predicated region fallthrough
CT: control target
= control target key end

     0   :  { %s8213_s0 = inlined_call_operand.vmem [shape: bf16[256,48], index: 0, kind: input, shape index: {}]   ;;  %s8214_s1 = inlined_call_operand.vmem [shape: bf16[48,32], index: 1, kind: input, shape index: {}]   ;;  %s8215_s2 = inlined_call_operand.vmem [shape: f32[256,32], index: 2, kind: input, shape index: {}]   ;;  %s8216_s3 = inlined_call_operand.vmem [shape: f32[10,128], index: 3, kind: input, shape index: {}]   ;;  %s8217_s4 = inlined_call_operand.vmem [shape: bf16[32,96], index: 4, kind: input, shape index: {}]   ;;  %s8218_s5 = inlined_call_operand.vmem [shape: bf16[32,32], index: 5, kind: input, shape index: {}]   ;;  %s8219_s6 = inlined_call_operand.vmem [shape: bf16[32,128], index: 6, kind: input, shape index: {}]   ;;  %s8220_s7 = inlined_call_operand.vmem [shape: bf16[128,32], index: 7, kind: input, shape index: {}]   ;;  %s8221_s8 = inlined_call_operand.vmem [shape: bf16[32,128], index: 8, kind: input, shape index: {}]   ;;  %s8222_s9 = inlined_call_operand.hbm [shape: f32[256,128], index: 9, kind: output, shape index: {}]  }
   0x1   :  { %v4699_v0 = vld [vmem:[%s8214_s1 + $0x10] sm:$0xff]  ;;  %v4698_v1 = vld [vmem:[%s8214_s1 + $0x8] sm:$0xff] }
   0x2   :  { %256 = vmatpush.bf16.msra.mxu0 %v4699_v0 }
   0x3   :  { %14 = vsyncpa [#allocation3], 0  ;;  %v4697_v2 = vld [vmem:[%s8214_s1] sm:$0xff]  ;;  %vm202_vm0 = vcmask 392192   ;;  %v4682_v4 = vld [vmem:[%s8213_s0 + $0x8] sm:$0xff]  ;;  %vm348_vm1 = vcmask 261120  }
   0x4   :  { %v4681_v3 = vld [vmem:[%s8213_s0] sm:$0xff]  ;;  %v4683_v5 = vld [vmem:[%s8213_s0 + $0x10] sm:$0xff]  ;;  %v4684_v6 = vld [vmem:[%s8213_s0 + $0x18] sm:$0xff]  ;;  %v5169_v39 = vmov 32.0   ;;  %s5170_s30 = smov 96   ;;  %s5171_s10 = smov 64  }
   0x5   :  { %v4685_v7 = vld [vmem:[%s8213_s0 + $0x20] sm:$0xff]  ;;  %v4686_v8 = vld [vmem:[%s8213_s0 + $0x28] sm:$0xff]  ;;  %v4687_v17 = vld [vmem:[%s8213_s0 + $0x30] sm:$0xff]  ;;  %4747 = vrcp.f32 %v5169_v39  ;;  %s4417_s14 = sshll.u32 %s8222_s9, 4  ;;  %s4418_s14 = int_to_ptr.hbm [resolvable:$true] %s4417_s14 }
   0x6   :  { %257 = vmatpush.bf16.msra.mxu0 %v4698_v1  ;;  %v72_v9 = vld [vmem:[%s8215_s2] sm:$0xff]  ;;  %v73_v13 = vld [vmem:[%s8215_s2 + $0x8] sm:$0xff]  ;;  %v74_v18 = vld [vmem:[%s8215_s2 + $0x10] sm:$0xff] }
   0x7   :  { %v75_v22 = vld [vmem:[%s8215_s2 + $0x18] sm:$0xff]  ;;  %v76_v27 = vld [vmem:[%s8215_s2 + $0x20] sm:$0xff]  ;;  %v77_v31 = vld [vmem:[%s8215_s2 + $0x28] sm:$0xff] }
   0x8   :  { %v4688_v25 = vld [vmem:[%s8213_s0 + $0x38] sm:$0xff]  ;;  %v78_v35 = vld [vmem:[%s8215_s2 + $0x30] sm:$0xff]  ;;  %v4689_v44 = vld [vmem:[%s8213_s0 + $0x40] sm:$0xff] }
   0x9   :  { %v79_v54 = vld [vmem:[%s8215_s2 + $0x38] sm:$0xff]  ;;  %v80_v60 = vld [vmem:[%s8215_s2 + $0x40] sm:$0xff]  ;;  %v4690_v1 = vld [vmem:[%s8213_s0 + $0x48] sm:$0xff] }
   0xa   :  { %258 = vmatpush.bf16.msra.mxu0 %v4697_v2 }
   0xb   :  { %v4748_v40 = vpop.eup %4747 }
   0xc   :  { %v446_v41 = vmul.f32 32.0, %v4748_v40  ;;  %vm450_vm2 = vweird.f32 %v4748_v40 }
   0xd   :  { %4505 = vmatmul.msk.bf16.vlgmr.msra.gmra.mxu0 %vm202_vm0, %v4681_v3 }
   0xe   :  { %v447_v42 = vsub.f32 1.0, %v446_v41 }
  0x10   :  { %v448_v43 = vmul.f32 %v4748_v40, %v447_v42  ;;  %v84_v42 = vld [vmem:[%s8215_s2 + $0x60] sm:$0xff] }
  0x12   :  { %v449_v45 = vadd.f32 %v4748_v40, %v448_v43  ;;  %v4692_v43 = vld [vmem:[%s8213_s0 + $0x58] sm:$0xff] }
  0x14   :  { %v5319_v47 = vsel %vm450_vm2, %v4748_v40, %v449_v45 }
  0x15   :  { %8278 = vst [vmem:[#allocation12_spill] sm:$0xff] %v5319_v47 }
  0x1d   :  { %4506 = vmatmul.msk.bf16.gmra.mxu0 %vm202_vm0, %v4682_v4 }
  0x2d   :  { %4507 = vmatmul.msk.bf16.gmra.mxu0 %vm202_vm0, %v4683_v5 }
  0x3d   :  { %4508 = vmatmul.msk.bf16.gmra.mxu0 %vm202_vm0, %v4684_v6 }
  0x4d   :  { %4509 = vmatmul.msk.bf16.gmra.mxu0 %vm202_vm0, %v4685_v7 }
  0x5d   :  { %4510 = vmatmul.msk.bf16.gmra.mxu0 %vm202_vm0, %v4686_v8 }
  0x6d   :  { %4511 = vmatmul.msk.bf16.gmra.mxu0 %vm202_vm0, %v4687_v17  ;;  %v82_v17 = vld [vmem:[%s8215_s2 + $0x50] sm:$0xff] }
  0x7d   :  { %4512 = vmatmul.msk.bf16.gmra.mxu0 %vm202_vm0, %v4688_v25 }
  0x8a   :  { %v260_v10 = vpop.f32.mrf.mxu0 }
  0x8b   :  { %v5261_v11 = vadd.f32 %v260_v10, %v72_v9  ;;  %v81_v9 = vld [vmem:[%s8215_s2 + $0x48] sm:$0xff] }
  0x8d   :  { %8271 = vst [vmem:[#allocation5_spill] sm:$0xff] %v5261_v11  ;;  %v349_v12 = vsel %vm348_vm1, %v5261_v11, 0.0  ;;  %4513 = vmatmul.msk.bf16.gmra.mxu0 %vm202_vm0, %v4689_v44 }
  0x8e   :  { %350 = vadd.xlane.f32.xlu0 %v349_v12 }
  0x92   :  { %v262_v14 = vpop.f32.mrf.mxu0 }
  0x93   :  { %v5268_v15 = vadd.f32 %v262_v14, %v73_v13 }
  0x95   :  { %8272 = vst [vmem:[#allocation6_spill] sm:$0xff] %v5268_v15  ;;  %v352_v16 = vsel %vm348_vm1, %v5268_v15, 0.0 }
  0x96   :  { %353 = vadd.xlane.f32.xlu0 %v352_v16 }
  0x9a   :  { %v265_v19 = vpop.f32.mrf.mxu0 }
  0x9b   :  { %v5279_v20 = vadd.f32 %v265_v19, %v74_v18 }
  0x9d   :  { %8273 = vst [vmem:[#allocation7_spill] sm:$0xff] %v5279_v20  ;;  %v355_v21 = vsel %vm348_vm1, %v5279_v20, 0.0  ;;  %4514 = vmatmul.msk.bf16.gmra.mxu0 %vm202_vm0, %v4690_v1 }
  0x9e   :  { %356 = vadd.xlane.f32.xlu1 %v355_v21 }
  0xa2   :  { %v267_v23 = vpop.f32.mrf.mxu0 }
  0xa3   :  { %v5286_v24 = vadd.f32 %v267_v23, %v75_v22  ;;  %v4691_v23 = vld [vmem:[%s8213_s0 + $0x50] sm:$0xff] }
  0xa5   :  { %8274 = vst [vmem:[#allocation8_spill] sm:$0xff] %v5286_v24  ;;  %v358_v26 = vsel %vm348_vm1, %v5286_v24, 0.0 }
  0xa6   :  { %359 = vadd.xlane.f32.xlu1 %v358_v26 }
  0xaa   :  { %v270_v28 = vpop.f32.mrf.mxu0 }
  0xab   :  { %v5297_v29 = vadd.f32 %v270_v28, %v76_v27 }
  0xad   :  { %8275 = vst [vmem:[#allocation9_spill] sm:$0xff] %v5297_v29  ;;  %v361_v30 = vsel %vm348_vm1, %v5297_v29, 0.0  ;;  %4515 = vmatmul.msk.bf16.gmra.mxu0 %vm202_vm0, %v4691_v23 }
  0xae   :  { %362 = vadd.xlane.f32.xlu2 %v361_v30 }
  0xb2   :  { %v272_v32 = vpop.f32.mrf.mxu0 }
  0xb3   :  { %v5304_v33 = vadd.f32 %v272_v32, %v77_v31  ;;  %v83_v31 = vld [vmem:[%s8215_s2 + $0x58] sm:$0xff] }
  0xb5   :  { %8276 = vst [vmem:[#allocation10_spill] sm:$0xff] %v5304_v33  ;;  %v364_v34 = vsel %vm348_vm1, %v5304_v33, 0.0 }
  0xb6   :  { %365 = vadd.xlane.f32.xlu2 %v364_v34 }
  0xba   :  { %v275_v36 = vpop.f32.mrf.mxu0 }
  0xbb   :  { %v5311_v37 = vadd.f32 %v275_v36, %v78_v35 }
  0xbd   :  { %8277 = vst [vmem:[#allocation11_spill] sm:$0xff] %v5311_v37  ;;  %v367_v38 = vsel %vm348_vm1, %v5311_v37, 0.0  ;;  %4516 = vmatmul.msk.bf16.gmra.mxu0 %vm202_vm0, %v4692_v43 }
  0xbe   :  { %368 = vadd.xlane.f32.xlu2 %v367_v38 }
  0xc2   :  { %v277_v46 = vpop.f32.mrf.mxu0 }
  0xc3   :  { %v5332_v57 = vadd.f32 %v277_v46, %v79_v54  ;;  %v85_v54 = vld [vmem:[%s8215_s2 + $0x68] sm:$0xff] }
  0xc5   :  { %8279 = vst [vmem:[#allocation13_spill] sm:$0xff] %v5332_v57  ;;  %v370_v62 = vsel %vm348_vm1, %v5332_v57, 0.0 }
  0xca   :  { %v280_v51 = vpop.f32.mrf.mxu0 }
  0xcb   :  { %v5348_v2 = vadd.f32 %v280_v51, %v80_v60  ;;  %v86_v60 = vld [vmem:[%s8215_s2 + $0x70] sm:$0xff] }
  0xcd   :  { %8280 = vst [vmem:[#allocation14_spill] sm:$0xff] %v5348_v2  ;;  %v373_v5 = vsel %vm348_vm1, %v5348_v2, 0.0 }
  0xd2   :  { %v282_v61 = vpop.f32.mrf.mxu0 }
  0xd3   :  { %v5364_v13 = vadd.f32 %v282_v61, %v81_v9  ;;  %v4693_v9 = vld [vmem:[%s8213_s0 + $0x60] sm:$0xff] }
  0xd4   :  { %4517 = vmatmul.msk.bf16.gmra.mxu0 %vm202_vm0, %v4693_v9 }
  0xd5   :  { %8281 = vst [vmem:[#allocation15_spill] sm:$0xff] %v5364_v13  ;;  %v376_v19 = vsel %vm348_vm1, %v5364_v13, 0.0 }
  0xda   :  { %v285_v7 = vpop.f32.mrf.mxu0 }
  0xdb   :  { %v5381_v26 = vadd.f32 %v285_v7, %v82_v17 }
  0xdd   :  { %8282 = vst [vmem:[#allocation16_spill] sm:$0xff] %v5381_v26  ;;  %v379_v30 = vsel %vm348_vm1, %v5381_v26, 0.0 }
  0xe2   :  { %v287_v22 = vpop.f32.mrf.mxu0 }
  0xe3   :  { %v5396_v36 = vadd.f32 %v287_v22, %v83_v31 }
  0xe5   :  { %8283 = vst [vmem:[#allocation17_spill] sm:$0xff] %v5396_v36  ;;  %v382_v40 = vsel %vm348_vm1, %v5396_v36, 0.0 }
  0xea   :  { %v290_v38 = vpop.f32.mrf.mxu0 }
  0xf2   :  { %v292_v51 = vpop.f32.mrf.mxu0 }
  0xfa   :  { %v295_v61 = vpop.f32.mrf.mxu0 }
 0x101   :  { %v351_v48 = vpop.xlane.xlu0 %350 }
 0x102   :  { %v452_v49 = vmul.f32 %v5319_v47, %v351_v48  ;;  %v5413_v48 = vadd.f32 %v290_v38, %v84_v42 }
 0x104   :  { %v5323_v50 = vsub.f32 %v5261_v11, %v452_v49  ;;  %8284 = vst [vmem:[#allocation18_spill] sm:$0xff] %v5413_v48 }
 0x106   :  { %v516_v52 = vmul.f32 %v5323_v50, %v5323_v50 }
 0x108   :  { %v548_v53 = vsel %vm348_vm1, %v516_v52, 0.0  ;;  %v385_v52 = vsel %vm348_vm1, %v5413_v48, 0.0 }
 0x109   :  { %549 = vadd.xlane.f32.xlu0 %v548_v53  ;;  %v354_v55 = vpop.xlane.xlu0 %353 }
 0x10a   :  { %v453_v56 = vmul.f32 %v5319_v47, %v354_v55 }
 0x10c   :  { %v5335_v58 = vsub.f32 %v5268_v15, %v453_v56  ;;  %v5427_v56 = vadd.f32 %v292_v51, %v85_v54 }
 0x10e   :  { %v517_v59 = vmul.f32 %v5335_v58, %v5335_v58  ;;  %8285 = vst [vmem:[#allocation19_spill] sm:$0xff] %v5427_v56 }
 0x110   :  { %v551_v63 = vsel %vm348_vm1, %v517_v59, 0.0  ;;  %v388_v59 = vsel %vm348_vm1, %v5427_v56, 0.0 }
 0x111   :  { %v357_v0 = vpop.xlane.xlu1 %356  ;;  %371 = vadd.xlane.f32.xlu0 %v370_v62  ;;  %552 = vadd.xlane.f32.xlu1 %v551_v63  ;;  %v5434_v62 = vadd.f32 %v295_v61, %v86_v60 }
 0x112   :  { %v454_v3 = vmul.f32 %v5319_v47, %v357_v0  ;;  %v4701_v0 = vld [vmem:[%s8217_s4 + $0x8] sm:$0xff] }
 0x113   :  { %8286 = vst [vmem:[#allocation20_spill] sm:$0xff] %v5434_v62  ;;  %v391_v63 = vsel %vm348_vm1, %v5434_v62, 0.0  ;;  %1213 = vmatpush.bf16.msra.mxu1 %v4701_v0 }
 0x114   :  { %v5353_v4 = vsub.f32 %v5279_v20, %v454_v3 }
 0x116   :  { %v518_v6 = vmul.f32 %v5353_v4, %v5353_v4 }
 0x118   :  { %v554_v8 = vsel %vm348_vm1, %v518_v6, 0.0 }
 0x119   :  { %v360_v10 = vpop.xlane.xlu1 %359  ;;  %374 = vadd.xlane.f32.xlu0 %v373_v5  ;;  %555 = vadd.xlane.f32.xlu1 %v554_v8  ;;  %v4700_v5 = vld [vmem:[%s8217_s4] sm:$0xff] }
 0x11a   :  { %v455_v12 = vmul.f32 %v5319_v47, %v360_v10  ;;  %1214 = vmatpush.bf16.msra.mxu1 %v4700_v5 }
 0x11c   :  { %v5367_v14 = vsub.f32 %v5286_v24, %v455_v12 }
 0x11e   :  { %v519_v16 = vmul.f32 %v5367_v14, %v5367_v14 }
 0x120   :  { %v557_v18 = vsel %vm348_vm1, %v519_v16, 0.0  ;;  %v297_v16 = vpop.f32.mrf.mxu0 }
 0x121   :  { %v363_v21 = vpop.xlane.xlu2 %362  ;;  %558 = vadd.xlane.f32.xlu2 %v557_v18  ;;  %377 = vadd.xlane.f32.xlu1 %v376_v19 }
 0x122   :  { %v456_v25 = vmul.f32 %v5319_v47, %v363_v21 }
 0x124   :  { %v5385_v27 = vsub.f32 %v5297_v29, %v456_v25 }
 0x126   :  { %v520_v28 = vmul.f32 %v5385_v27, %v5385_v27 }
 0x128   :  { %v560_v32 = vsel %vm348_vm1, %v520_v28, 0.0  ;;  %v300_v42 = vpop.f32.mrf.mxu0 }
 0x129   :  { %v366_v34 = vpop.xlane.xlu2 %365  ;;  %561 = vadd.xlane.f32.xlu2 %v560_v32  ;;  %380 = vadd.xlane.f32.xlu1 %v379_v30 }
 0x12a   :  { %v457_v35 = vmul.f32 %v5319_v47, %v366_v34 }
 0x12c   :  { %v5399_v39 = vsub.f32 %v5304_v33, %v457_v35 }
 0x12e   :  { %v521_v41 = vmul.f32 %v5399_v39, %v5399_v39 }
 0x130   :  { %v563_v44 = vsel %vm348_vm1, %v521_v41, 0.0 }
 0x131   :  { %v369_v45 = vpop.xlane.xlu2 %368  ;;  %383 = vadd.xlane.f32.xlu2 %v382_v40  ;;  %564 = vadd.xlane.f32.xlu0 %v563_v44 }
 0x132   :  { %v458_v46 = vmul.f32 %v5319_v47, %v369_v45 }
 0x134   :  { %v5417_v49 = vsub.f32 %v5311_v37, %v458_v46 }
 0x136   :  { %v522_v53 = vmul.f32 %v5417_v49, %v5417_v49 }
 0x138   :  { %v566_v55 = vsel %vm348_vm1, %v522_v53, 0.0 }
 0x139   :  { %386 = vadd.xlane.f32.xlu2 %v385_v52  ;;  %567 = vadd.xlane.f32.xlu0 %v566_v55  ;;  %v87_v55 = vld [vmem:[%s8215_s2 + $0x78] sm:$0xff] }
 0x141   :  { %389 = vadd.xlane.f32.xlu0 %v388_v59 }
 0x149   :  { %392 = vadd.xlane.f32.xlu0 %v391_v63 }
 0x17c   :  { %v550_v1 = vpop.xlane.xlu0 %549 }
 0x17d   :  { %v644_v3 = vmul.f32 %v550_v1, %v5319_v47 }
 0x17f   :  { %v676_v6 = vadd.f32 1e-06, %v644_v3  ;;  %v5481_v3 = vadd.f32 %v297_v16, %v87_v55  ;;  %v302_v16 = vpop.f32.mrf.mxu0 }
 0x181   :  { %4749 = vrsqrt.f32 %v676_v6  ;;  %vm714_vm4 = vweird.f32 %v676_v6  ;;  %8289 = vst [vmem:[#allocation21_spill] sm:$0xff] %v5481_v3 }
 0x184   :  { %v553_v7 = vpop.xlane.xlu1 %552  ;;  %v372_v8 = vpop.xlane.xlu0 %371 }
 0x185   :  { %v645_v10 = vmul.f32 %v553_v7, %v5319_v47  ;;  %v459_v12 = vmul.f32 %v5319_v47, %v372_v8  ;;  %v5492_v8 = vld [vmem:[%s8216_s3] ss:$0 sm:$0xff] }
 0x187   :  { %v4750_v17 = vpop.eup %4749  ;;  %v677_v18 = vadd.f32 1e-06, %v645_v10  ;;  %v5452_v19 = vsub.f32 %v5332_v57, %v459_v12 }
 0x188   :  { %v709_v21 = vmul.f32 %v4750_v17, %v676_v6  ;;  %vm715_vm3 = vweird.f32 %v4750_v17 }
 0x189   :  { %4751 = vrsqrt.f32 %v677_v18  ;;  %v523_v22 = vmul.f32 %v5452_v19, %v5452_v19  ;;  %vm5467_vm5 = vmor %vm714_vm4, %vm715_vm3  ;;  %vm724_vm7 = vweird.f32 %v677_v18 }
 0x18a   :  { %v710_v23 = vmul.f32 %v4750_v17, %v709_v21  ;;  %v88_v21 = vld [vmem:[%s8215_s2 + $0x80] sm:$0xff] }
 0x18b   :  { %v569_v25 = vsel %vm348_vm1, %v523_v22, 0.0 }
 0x18c   :  { %v711_v28 = vmul.f32 0.5, %v710_v23  ;;  %v556_v30 = vpop.xlane.xlu1 %555  ;;  %570 = vadd.xlane.f32.xlu1 %v569_v25  ;;  %v375_v31 = vpop.xlane.xlu0 %374 }
 0x18d   :  { %v646_v32 = vmul.f32 %v556_v30, %v5319_v47  ;;  %v460_v34 = vmul.f32 %v5319_v47, %v375_v31 }
 0x18e   :  { %v712_v35 = vsub.f32 1.5, %v711_v28  ;;  %v5511_v28 = vld [vmem:[%s8216_s3 + $0x1] ss:$0 sm:$0xff] }
 0x18f   :  { %v4752_v38 = vpop.eup %4751  ;;  %v5459_v40 = vadd.f32 1e-06, %v646_v32  ;;  %v5462_v41 = vsub.f32 %v5348_v2, %v460_v34  ;;  %v4694_v34 = vld [vmem:[%s8213_s0 + $0x68] sm:$0xff] }
 0x190   :  { %v713_v43 = vmul.f32 %v4750_v17, %v712_v35  ;;  %v719_v44 = vmul.f32 %v4752_v38, %v677_v18  ;;  %vm725_vm6 = vweird.f32 %v4752_v38  ;;  %v394_v18 = vsel %vm348_vm1, %v5481_v3, 0.0  ;;  %4518 = vmatmul.msk.bf16.gmra.mxu0 %vm202_vm0, %v4694_v34 }
 0x191   :  { %4753 = vrsqrt.f32 %v5459_v40  ;;  %v524_v45 = vmul.f32 %v5462_v41, %v5462_v41  ;;  %vm726_vm8 = vmor %vm724_vm7, %vm725_vm6  ;;  %v5516_v35 = vadd.f32 %v300_v42, %v88_v21  ;;  %vm734_vm10 = vweird.f32 %v5459_v40 }
 0x192   :  { %v720_v46 = vmul.f32 %v4752_v38, %v719_v44  ;;  %v717_v53 = vsel %vm5467_vm5, %v4750_v17, %v713_v43 }
 0x193   :  { %v572_v52 = vsel %vm348_vm1, %v524_v45, 0.0  ;;  %v1028_v7 = vmul.f32 %v717_v53, %v5323_v50  ;;  %8290 = vst [vmem:[#allocation22_spill] sm:$0xff] %v5516_v35 }
 0x194   :  { %v721_v54 = vmul.f32 0.5, %v720_v46  ;;  %v559_v59 = vpop.xlane.xlu2 %558  ;;  %v378_v60 = vpop.xlane.xlu1 %377  ;;  %573 = vadd.xlane.f32.xlu1 %v572_v52 }
 0x195   :  { %v647_v61 = vmul.f32 %v559_v59, %v5319_v47  ;;  %v461_v63 = vmul.f32 %v5319_v47, %v378_v60  ;;  %v1061_v25 = vmul.f32 %v5492_v8, %v1028_v7  ;;  %v397_v60 = vsel %vm348_vm1, %v5516_v35, 0.0 }
 0x196   :  { %v722_v0 = vsub.f32 1.5, %v721_v54 }
 0x197   :  { %v5479_v1 = vpop.eup %4753  ;;  %v5483_v5 = vadd.f32 1e-06, %v647_v61  ;;  %v5486_v6 = vsub.f32 %v5364_v13, %v461_v63  ;;  %v1094_v52 = vadd.f32 %v5511_v28, %v1061_v25  ;;  %v305_v61 = vpop.f32.mrf.mxu0 }
 0x198   :  { %v723_v9 = vmul.f32 %v4752_v38, %v722_v0  ;;  %v729_v10 = vmul.f32 %v5479_v1, %v5459_v40  ;;  %vm735_vm9 = vweird.f32 %v5479_v1 }
 0x199   :  { %4755 = vrsqrt.f32 %v5483_v5  ;;  %v525_v12 = vmul.f32 %v5486_v6, %v5486_v6  ;;  %vm5538_vm11 = vmor %vm734_vm10, %vm735_vm9  ;;  %vm744_vm13 = vweird.f32 %v5483_v5 }
 0x19a   :  { %v727_v17 = vsel %vm726_vm8, %v4752_v38, %v723_v9  ;;  %v730_v50 = vmul.f32 %v5479_v1, %v729_v10 }
 0x19b   :  { %v575_v22 = vsel %vm348_vm1, %v525_v12, 0.0  ;;  %v1029_v23 = vmul.f32 %v727_v17, %v5335_v58  ;;  %v89_v12 = vld [vmem:[%s8215_s2 + $0x88] sm:$0xff] }
 0x19c   :  { %v731_v30 = vmul.f32 0.5, %v730_v50  ;;  %v562_v31 = vpop.xlane.xlu2 %561  ;;  %576 = vadd.xlane.f32.xlu2 %v575_v22  ;;  %v381_v32 = vpop.xlane.xlu1 %380  ;;  %395 = vadd.xlane.f32.xlu1 %v394_v18 }
 0x19d   :  { %v648_v58 = vmul.f32 %v562_v31, %v5319_v47  ;;  %v462_v38 = vmul.f32 %v5319_v47, %v381_v32  ;;  %v1062_v43 = vmul.f32 %v5492_v8, %v1029_v23  ;;  %v5552_v23 = vadd.f32 %v302_v16, %v89_v12  ;;  %v90_v16 = vld [vmem:[%s8215_s2 + $0x90] sm:$0xff] }
 0x19e   :  { %v732_v44 = vsub.f32 1.5, %v731_v30 }
 0x19f   :  { %v4756_v45 = vpop.eup %4755  ;;  %v5522_v46 = vadd.f32 1e-06, %v648_v58  ;;  %v5525_v51 = vsub.f32 %v5381_v26, %v462_v38  ;;  %v1095_v42 = vadd.f32 %v5511_v28, %v1062_v43  ;;  %8293 = vst [vmem:[#allocation23_spill] sm:$0xff] %v5552_v23 }
 0x1a0   :  { %v733_v53 = vmul.f32 %v5479_v1, %v732_v44  ;;  %v739_v54 = vmul.f32 %v4756_v45, %v5483_v5  ;;  %vm745_vm12 = vweird.f32 %v4756_v45 }
 0x1a1   :  { %4757 = vrsqrt.f32 %v5522_v46  ;;  %v1130_v55 = vpack.c.bf16 %v1095_v42, %v1094_v52  ;;  %v526_v59 = vmul.f32 %v5525_v51, %v5525_v51  ;;  %vm746_vm14 = vmor %vm744_vm13, %vm745_vm12  ;;  %v307_v52 = vpop.f32.mrf.mxu0  ;;  %vm754_vm2 = vweird.f32 %v5522_v46 }
 0x1a2   :  { %v740_v63 = vmul.f32 %v4756_v45, %v739_v54  ;;  %v737_v9 = vsel %vm5538_vm11, %v5479_v1, %v733_v53  ;;  %v4695_v54 = vld [vmem:[%s8213_s0 + $0x70] sm:$0xff] }
 0x1a3   :  { %4529 = vmatmul.msk.bf16.vlgmr.msra.gmra.mxu1 %vm348_vm1, %v1130_v55  ;;  %v578_v7 = vsel %vm348_vm1, %v526_v59, 0.0  ;;  %v1030_v30 = vmul.f32 %v737_v9, %v5353_v4  ;;  %v400_v4 = vsel %vm348_vm1, %v5552_v23, 0.0  ;;  %v5576_v59 = vadd.f32 %v305_v61, %v90_v16  ;;  %4519 = vmatmul.msk.bf16.gmra.mxu0 %vm202_vm0, %v4695_v54 }
 0x1a4   :  { %v741_v10 = vmul.f32 0.5, %v740_v63  ;;  %v384_v17 = vpop.xlane.xlu2 %383  ;;  %579 = vadd.xlane.f32.xlu2 %v578_v7  ;;  %398 = vadd.xlane.f32.xlu1 %v397_v60  ;;  %v565_v40 = vpop.xlane.xlu0 %564 }
 0x1a5   :  { %v463_v50 = vmul.f32 %v5319_v47, %v384_v17  ;;  %v649_v21 = vmul.f32 %v565_v40, %v5319_v47  ;;  %v1063_v44 = vmul.f32 %v5492_v8, %v1030_v30  ;;  %8294 = vst [vmem:[#allocation24_spill] sm:$0xff] %v5576_v59  ;;  %v403_v40 = vsel %vm348_vm1, %v5576_v59, 0.0 }
 0x1a6   :  { %v742_v22 = vsub.f32 1.5, %v741_v10 }
 0x1a7   :  { %v4758_v18 = vpop.eup %4757  ;;  %v5555_v1 = vsub.f32 %v5396_v36, %v463_v50  ;;  %v681_v25 = vadd.f32 1e-06, %v649_v21  ;;  %v1096_v7 = vadd.f32 %v5511_v28, %v1063_v44  ;;  %v91_v21 = vld [vmem:[%s8215_s2 + $0x98] sm:$0xff] }
 0x1a8   :  { %v743_v31 = vmul.f32 %v4756_v45, %v742_v22  ;;  %v749_v32 = vmul.f32 %v4758_v18, %v5522_v46  ;;  %vm755_vm15 = vweird.f32 %v4758_v18 }
 0x1a9   :  { %4759 = vrsqrt.f32 %v681_v25  ;;  %v527_v34 = vmul.f32 %v5555_v1, %v5555_v1  ;;  %vm756_vm3 = vmor %vm754_vm2, %vm755_vm15  ;;  %vm764_vm5 = vweird.f32 %v681_v25 }
 0x1aa   :  { %v747_v58 = vsel %vm746_vm14, %v4756_v45, %v743_v31  ;;  %v750_v38 = vmul.f32 %v4758_v18, %v749_v32 }
 0x1ab   :  { %v581_v43 = vsel %vm348_vm1, %v527_v34, 0.0  ;;  %v1031_v5 = vmul.f32 %v747_v58, %v5367_v14  ;;  %v5596_v58 = vadd.f32 %v307_v52, %v91_v21  ;;  %v92_v52 = vld [vmem:[%s8215_s2 + $0xa0] sm:$0xff] }
 0x1ac   :  { %v751_v42 = vmul.f32 0.5, %v750_v38  ;;  %v387_v53 = vpop.xlane.xlu2 %386  ;;  %582 = vadd.xlane.f32.xlu0 %v581_v43  ;;  %401 = vadd.xlane.f32.xlu2 %v400_v4  ;;  %v5570_v45 = vpop.xlane.xlu0 %567 }
 0x1ad   :  { %v464_v55 = vmul.f32 %v5319_v47, %v387_v53  ;;  %v1064_v60 = vmul.f32 %v5492_v8, %v1031_v5  ;;  %8295 = vst [vmem:[#allocation25_spill] sm:$0xff] %v5596_v58  ;;  %v310_v38 = vpop.f32.mrf.mxu0 }
 0x1ae   :  { %v752_v14 = vsub.f32 1.5, %v751_v42  ;;  %v4696_v42 = vld [vmem:[%s8213_s0 + $0x78] sm:$0xff] }
 0x1af   :  { %v4760_v63 = vpop.eup %4759  ;;  %v5581_v0 = vsub.f32 %v5413_v48, %v464_v55  ;;  %v1097_v9 = vadd.f32 %v5511_v28, %v1064_v60  ;;  %v5616_v60 = vadd.f32 %v310_v38, %v92_v52 }
 0x1b0   :  { %v753_v10 = vmul.f32 %v4758_v18, %v752_v14  ;;  %v759_v12 = vmul.f32 %v4760_v63, %v681_v25  ;;  %vm765_vm4 = vweird.f32 %v4760_v63 }
 0x1b1   :  { %v1131_v17 = vpack.c.bf16 %v1097_v9, %v1096_v7  ;;  %v528_v61 = vmul.f32 %v5581_v0, %v5581_v0  ;;  %vm766_vm6 = vmor %vm764_vm5, %vm765_vm4  ;;  %8296 = vst [vmem:[#allocation26_spill] sm:$0xff] %v5616_v60 }
 0x1b2   :  { %v760_v50 = vmul.f32 %v4760_v63, %v759_v12  ;;  %v757_v30 = vsel %vm756_vm3, %v4758_v18, %v753_v10  ;;  %v406_v18 = vsel %vm348_vm1, %v5596_v58, 0.0  ;;  %v409_v12 = vsel %vm348_vm1, %v5616_v60, 0.0 }
 0x1b3   :  { %4530 = vmatmul.msk.bf16.gmra.mxu1 %vm348_vm1, %v1131_v17  ;;  %v584_v22 = vsel %vm348_vm1, %v528_v61, 0.0  ;;  %v1032_v43 = vmul.f32 %v757_v30, %v5385_v27  ;;  %4520 = vmatmul.msk.bf16.gmra.mxu0 %vm202_vm0, %v4696_v42  ;;  %v93_v61 = vld [vmem:[%s8215_s2 + $0xa8] sm:$0xff] }
 0x1b4   :  { %v761_v31 = vmul.f32 0.5, %v760_v50  ;;  %585 = vadd.xlane.f32.xlu0 %v584_v22  ;;  %404 = vadd.xlane.f32.xlu2 %v403_v40  ;;  %v390_v32 = vpop.xlane.xlu0 %389  ;;  %v94_v22 = vld [vmem:[%s8215_s2 + $0xb0] sm:$0xff] }
 0x1b5   :  { %v465_v34 = vmul.f32 %v5319_v47, %v390_v32  ;;  %v1065_v53 = vmul.f32 %v5492_v8, %v1032_v43  ;;  %v312_v9 = vpop.f32.mrf.mxu0 }
 0x1b6   :  { %v762_v46 = vsub.f32 1.5, %v761_v31  ;;  %v5634_v50 = vadd.f32 %v312_v9, %v93_v61 }
 0x1b7   :  { %v5599_v16 = vsub.f32 %v5427_v56, %v465_v34  ;;  %v1098_v7 = vadd.f32 %v5511_v28, %v1065_v53  ;;  %v650_v34 = vmul.f32 %v5570_v45, %v5319_v47 }
 0x1b8   :  { %v763_v4 = vmul.f32 %v4760_v63, %v762_v46  ;;  %8297 = vst [vmem:[#allocation27_spill] sm:$0xff] %v5634_v50  ;;  %v412_v21 = vsel %vm348_vm1, %v5634_v50, 0.0 }
 0x1b9   :  { %v529_v5 = vmul.f32 %v5599_v16, %v5599_v16  ;;  %v682_v46 = vadd.f32 1e-06, %v650_v34 }
 0x1ba   :  { %v767_v44 = vsel %vm766_vm6, %v4760_v63, %v763_v4 }
 0x1bb   :  { %v587_v27 = vsel %vm348_vm1, %v529_v5, 0.0  ;;  %v1033_v25 = vmul.f32 %v767_v44, %v5399_v39  ;;  %4761 = vrsqrt.f32 %v682_v46  ;;  %vm774_vm7 = vweird.f32 %v682_v46 }
 0x1bc   :  { %407 = vadd.xlane.f32.xlu0 %v406_v18  ;;  %588 = vadd.xlane.f32.xlu1 %v587_v27  ;;  %v393_v54 = vpop.xlane.xlu0 %392 }
 0x1bd   :  { %v466_v55 = vmul.f32 %v5319_v47, %v393_v54  ;;  %v1066_v14 = vmul.f32 %v5492_v8, %v1033_v25  ;;  %v315_v30 = vpop.f32.mrf.mxu0 }
 0x1be   :  { %v5641_v31 = vadd.f32 %v315_v30, %v94_v22 }
 0x1bf   :  { %v5621_v63 = vsub.f32 %v5434_v62, %v466_v55  ;;  %v1099_v39 = vadd.f32 %v5511_v28, %v1066_v14 }
 0x1c0   :  { %8298 = vst [vmem:[#allocation28_spill] sm:$0xff] %v5641_v31  ;;  %v415_v32 = vsel %vm348_vm1, %v5641_v31, 0.0 }
 0x1c1   :  { %v1132_v10 = vpack.c.bf16 %v1099_v39, %v1098_v7  ;;  %v530_v17 = vmul.f32 %v5621_v63, %v5621_v63  ;;  %v4762_v38 = vpop.eup %4761 }
 0x1c2   :  { %v769_v43 = vmul.f32 %v4762_v38, %v682_v46  ;;  %vm775_vm0 = vweird.f32 %v4762_v38 }
 0x1c3   :  { %4531 = vmatmul.msk.bf16.gmra.mxu1 %vm348_vm1, %v1132_v10  ;;  %v590_v40 = vsel %vm348_vm1, %v530_v17, 0.0  ;;  %vm776_vm8 = vmor %vm774_vm7, %vm775_vm0 }
 0x1c4   :  { %410 = vadd.xlane.f32.xlu0 %v409_v12  ;;  %591 = vadd.xlane.f32.xlu1 %v590_v40  ;;  %v770_v4 = vmul.f32 %v4762_v38, %v769_v43 }
 0x1c5   :  { %v317_v61 = vpop.f32.mrf.mxu0 }
 0x1c6   :  { %v771_v52 = vmul.f32 0.5, %v770_v4 }
 0x1c8   :  { %v772_v42 = vsub.f32 1.5, %v771_v52 }
 0x1ca   :  { %v773_v55 = vmul.f32 %v4762_v38, %v772_v42 }
 0x1cc   :  { %413 = vadd.xlane.f32.xlu1 %v412_v21  ;;  %v777_v7 = vsel %vm776_vm8, %v4762_v38, %v773_v55 }
 0x1d4   :  { %416 = vadd.xlane.f32.xlu1 %v415_v32  ;;  %v1034_v32 = vmul.f32 %v777_v7, %v5417_v49 }
 0x1d6   :  { %v1067_v52 = vmul.f32 %v5492_v8, %v1034_v32 }
 0x1ff   :  { %v571_v18 = vpop.xlane.xlu1 %570 }
 0x200   :  { %v651_v5 = vmul.f32 %v571_v18, %v5319_v47 }
 0x202   :  { %v683_v44 = vadd.f32 1e-06, %v651_v5 }
 0x204   :  { %4763 = vrsqrt.f32 %v683_v44  ;;  %vm784_vm10 = vweird.f32 %v683_v44 }
 0x207   :  { %v574_v27 = vpop.xlane.xlu1 %573 }
 0x208   :  { %v652_v25 = vmul.f32 %v574_v27, %v5319_v47 }
 0x20a   :  { %v4764_v53 = vpop.eup %4763  ;;  %v684_v54 = vadd.f32 1e-06, %v652_v25 }
 0x20b   :  { %v779_v45 = vmul.f32 %v4764_v53, %v683_v44  ;;  %vm785_vm9 = vweird.f32 %v4764_v53 }
 0x20c   :  { %4765 = vrsqrt.f32 %v684_v54  ;;  %vm786_vm11 = vmor %vm784_vm10, %vm785_vm9  ;;  %vm794_vm13 = vweird.f32 %v684_v54 }
 0x20d   :  { %v780_v14 = vmul.f32 %v4764_v53, %v779_v45 }
 0x20f   :  { %v781_v39 = vmul.f32 0.5, %v780_v14  ;;  %v577_v9 = vpop.xlane.xlu2 %576  ;;  %v396_v10 = vpop.xlane.xlu1 %395 }
 0x210   :  { %v653_v12 = vmul.f32 %v577_v9, %v5319_v47  ;;  %v467_v17 = vmul.f32 %v5319_v47, %v396_v10  ;;  %v320_v9 = vpop.f32.mrf.mxu0 }
 0x211   :  { %v782_v40 = vsub.f32 1.5, %v781_v39 }
 0x212   :  { %v4766_v21 = vpop.eup %4765  ;;  %v685_v22 = vadd.f32 1e-06, %v653_v12  ;;  %v5652_v30 = vsub.f32 %v5481_v3, %v467_v17 }
 0x213   :  { %v783_v34 = vmul.f32 %v4764_v53, %v782_v40  ;;  %v789_v46 = vmul.f32 %v4766_v21, %v684_v54  ;;  %vm795_vm12 = vweird.f32 %v4766_v21 }
 0x214   :  { %4767 = vrsqrt.f32 %v685_v22  ;;  %v531_v38 = vmul.f32 %v5652_v30, %v5652_v30  ;;  %vm5673_vm14 = vmor %vm794_vm13, %vm795_vm12  ;;  %vm804_vm2 = vweird.f32 %v685_v22 }
 0x215   :  { %v787_v43 = vsel %vm786_vm11, %v4764_v53, %v783_v34  ;;  %v790_v4 = vmul.f32 %v4766_v21, %v789_v46 }
 0x216   :  { %v593_v18 = vsel %vm348_vm1, %v531_v38, 0.0  ;;  %v1035_v5 = vmul.f32 %v787_v43, %v5452_v19  ;;  %v1100_v19 = vadd.f32 %v5511_v28, %v1067_v52 }
 0x217   :  { %v791_v42 = vmul.f32 0.5, %v790_v4  ;;  %v580_v27 = vpop.xlane.xlu2 %579  ;;  %594 = vadd.xlane.f32.xlu2 %v593_v18  ;;  %v399_v49 = vpop.xlane.xlu1 %398  ;;  %v95_v4 = vld [vmem:[%s8215_s2 + $0xb8] sm:$0xff] }
 0x218   :  { %v654_v44 = vmul.f32 %v580_v27, %v5319_v47  ;;  %v468_v25 = vmul.f32 %v5319_v47, %v399_v49  ;;  %v1068_v55 = vmul.f32 %v5492_v8, %v1035_v5  ;;  %v5688_v49 = vadd.f32 %v317_v61, %v95_v4  ;;  %v322_v61 = vpop.f32.mrf.mxu0 }
 0x219   :  { %v792_v45 = vsub.f32 1.5, %v791_v42 }
 0x21a   :  { %v4768_v14 = vpop.eup %4767  ;;  %v5663_v53 = vadd.f32 1e-06, %v654_v44  ;;  %v5666_v7 = vsub.f32 %v5516_v35, %v468_v25  ;;  %v1101_v39 = vadd.f32 %v5511_v28, %v1068_v55  ;;  %8301 = vst [vmem:[#allocation29_spill] sm:$0xff] %v5688_v49 }
 0x21b   :  { %v793_v10 = vmul.f32 %v4766_v21, %v792_v45  ;;  %v799_v12 = vmul.f32 %v4768_v14, %v685_v22  ;;  %vm805_vm15 = vweird.f32 %v4768_v14  ;;  %v418_v22 = vsel %vm348_vm1, %v5688_v49, 0.0 }
 0x21c   :  { %4769 = vrsqrt.f32 %v5663_v53  ;;  %v1133_v17 = vpack.c.bf16 %v1101_v39, %v1100_v19  ;;  %v532_v40 = vmul.f32 %v5666_v7, %v5666_v7  ;;  %vm806_vm3 = vmor %vm804_vm2, %vm805_vm15  ;;  %vm814_vm5 = vweird.f32 %v5663_v53 }
 0x21d   :  { %v800_v32 = vmul.f32 %v4768_v14, %v799_v12  ;;  %v797_v38 = vsel %vm5673_vm14, %v4766_v21, %v793_v10  ;;  %v96_v12 = vld [vmem:[%s8215_s2 + $0xc0] sm:$0xff] }
 0x21e   :  { %4532 = vmatmul.msk.bf16.gmra.mxu1 %vm348_vm1, %v1133_v17  ;;  %v596_v46 = vsel %vm348_vm1, %v532_v40, 0.0  ;;  %v1036_v25 = vmul.f32 %v797_v38, %v5462_v41 }
 0x21f   :  { %v801_v43 = vmul.f32 0.5, %v800_v32  ;;  %v402_v18 = vpop.xlane.xlu2 %401  ;;  %597 = vadd.xlane.f32.xlu2 %v596_v46  ;;  %v583_v54 = vpop.xlane.xlu0 %582  ;;  %v5710_v46 = vadd.f32 %v320_v9, %v96_v12 }
 0x220   :  { %v469_v5 = vmul.f32 %v5319_v47, %v402_v18  ;;  %v655_v52 = vmul.f32 %v583_v54, %v5319_v47  ;;  %v1069_v40 = vmul.f32 %v5492_v8, %v1036_v25 }
 0x221   :  { %v802_v42 = vsub.f32 1.5, %v801_v43  ;;  %8302 = vst [vmem:[#allocation30_spill] sm:$0xff] %v5710_v46 }
 0x222   :  { %v5686_v27 = vpop.eup %4769  ;;  %v5691_v21 = vsub.f32 %v5552_v23, %v469_v5  ;;  %v5693_v44 = vadd.f32 1e-06, %v655_v52  ;;  %v1102_v52 = vadd.f32 %v5511_v28, %v1069_v40  ;;  %v97_v40 = vld [vmem:[%s8215_s2 + $0xc8] sm:$0xff] }
 0x223   :  { %v803_v55 = vmul.f32 %v4768_v14, %v802_v42  ;;  %v809_v45 = vmul.f32 %v5686_v27, %v5663_v53  ;;  %vm815_vm4 = vweird.f32 %v5686_v27 }
 0x224   :  { %4771 = vrsqrt.f32 %v5693_v44  ;;  %v533_v19 = vmul.f32 %v5691_v21, %v5691_v21  ;;  %vm5731_vm6 = vmor %vm814_vm5, %vm815_vm4  ;;  %vm824_vm7 = vweird.f32 %v5693_v44 }
 0x225   :  { %v807_v39 = vsel %vm806_vm3, %v4768_v14, %v803_v55  ;;  %v810_v10 = vmul.f32 %v5686_v27, %v809_v45 }
 0x226   :  { %v599_v41 = vsel %vm348_vm1, %v533_v19, 0.0  ;;  %v1037_v17 = vmul.f32 %v807_v39, %v5486_v6  ;;  %v421_v19 = vsel %vm348_vm1, %v5710_v46, 0.0  ;;  %v325_v39 = vpop.f32.mrf.mxu0 }
 0x227   :  { %v811_v32 = vmul.f32 0.5, %v810_v10  ;;  %600 = vadd.xlane.f32.xlu0 %v599_v41  ;;  %v405_v34 = vpop.xlane.xlu2 %404  ;;  %419 = vadd.xlane.f32.xlu2 %v418_v22  ;;  %v586_v14 = vpop.xlane.xlu0 %585 }
 0x228   :  { %v470_v38 = vmul.f32 %v5319_v47, %v405_v34  ;;  %v656_v43 = vmul.f32 %v586_v14, %v5319_v47  ;;  %v1070_v4 = vmul.f32 %v5492_v8, %v1037_v17 }
 0x229   :  { %v812_v18 = vsub.f32 1.5, %v811_v32 }
 0x22a   :  { %v4772_v54 = vpop.eup %4771  ;;  %v5716_v5 = vsub.f32 %v5576_v59, %v470_v38  ;;  %v5718_v6 = vadd.f32 1e-06, %v656_v43  ;;  %v1103_v42 = vadd.f32 %v5511_v28, %v1070_v4  ;;  %v5745_v4 = vadd.f32 %v322_v61, %v97_v40  ;;  %v98_v61 = vld [vmem:[%s8215_s2 + $0xd0] sm:$0xff] }
 0x22b   :  { %v813_v9 = vmul.f32 %v5686_v27, %v812_v18  ;;  %v819_v25 = vmul.f32 %v4772_v54, %v5693_v44  ;;  %vm825_vm0 = vweird.f32 %v4772_v54  ;;  %v5766_v40 = vadd.f32 %v325_v39, %v98_v61 }
 0x22c   :  { %4773 = vrsqrt.f32 %v5718_v6  ;;  %v1134_v55 = vpack.c.bf16 %v1103_v42, %v1102_v52  ;;  %v534_v45 = vmul.f32 %v5716_v5, %v5716_v5  ;;  %8305 = vst [vmem:[#allocation31_spill] sm:$0xff] %v5745_v4  ;;  %vm826_vm8 = vmor %vm824_vm7, %vm825_vm0  ;;  %vm834_vm10 = vweird.f32 %v5718_v6 }
 0x22d   :  { %v820_v10 = vmul.f32 %v4772_v54, %v819_v25  ;;  %v817_v22 = vsel %vm5731_vm6, %v5686_v27, %v813_v9  ;;  %8306 = vst [vmem:[#allocation32_spill] sm:$0xff] %v5766_v40 }
 0x22e   :  { %4533 = vmatmul.msk.bf16.gmra.mxu1 %vm348_vm1, %v1134_v55  ;;  %v602_v41 = vsel %vm348_vm1, %v534_v45, 0.0  ;;  %v1038_v52 = vmul.f32 %v817_v22, %v5525_v51  ;;  %v327_v12 = vpop.f32.mrf.mxu0 }
 0x22f   :  { %v821_v17 = vmul.f32 0.5, %v820_v10  ;;  %603 = vadd.xlane.f32.xlu0 %v602_v41  ;;  %422 = vadd.xlane.f32.xlu2 %v421_v19  ;;  %v589_v53 = vpop.xlane.xlu1 %588  ;;  %v408_v32 = vpop.xlane.xlu0 %407  ;;  %v424_v19 = vsel %vm348_vm1, %v5745_v4, 0.0 }
 0x230   :  { %v657_v34 = vmul.f32 %v589_v53, %v5319_v47  ;;  %v471_v14 = vmul.f32 %v5319_v47, %v408_v32  ;;  %v1071_v10 = vmul.f32 %v5492_v8, %v1038_v52 }
 0x231   :  { %v822_v38 = vsub.f32 1.5, %v821_v17 }
 0x232   :  { %v4774_v43 = vpop.eup %4773  ;;  %v689_v18 = vadd.f32 1e-06, %v657_v34  ;;  %v5748_v27 = vsub.f32 %v5596_v58, %v471_v14 }
 0x233   :  { %v823_v42 = vmul.f32 %v4772_v54, %v822_v38  ;;  %v829_v9 = vmul.f32 %v4774_v43, %v5718_v6  ;;  %vm835_vm9 = vweird.f32 %v4774_v43 }
 0x234   :  { %4775 = vrsqrt.f32 %v689_v18  ;;  %v535_v25 = vmul.f32 %v5748_v27, %v5748_v27  ;;  %vm836_vm11 = vmor %vm834_vm10, %vm835_vm9  ;;  %vm844_vm13 = vweird.f32 %v689_v18 }
 0x235   :  { %v827_v55 = vsel %vm826_vm8, %v4772_v54, %v823_v42  ;;  %v830_v45 = vmul.f32 %v4774_v43, %v829_v9 }
 0x236   :  { %v605_v51 = vsel %vm348_vm1, %v535_v25, 0.0  ;;  %v1039_v44 = vmul.f32 %v827_v55, %v5555_v1  ;;  %v1104_v1 = vadd.f32 %v5511_v28, %v1071_v10  ;;  %v427_v25 = vsel %vm348_vm1, %v5766_v40, 0.0 }
 0x237   :  { %v831_v41 = vmul.f32 0.5, %v830_v45  ;;  %425 = vadd.xlane.f32.xlu0 %v424_v19  ;;  %v5763_v22 = vpop.xlane.xlu1 %591  ;;  %606 = vadd.xlane.f32.xlu1 %v605_v51  ;;  %v411_v54 = vpop.xlane.xlu0 %410  ;;  %v99_v45 = vld [vmem:[%s8215_s2 + $0xd8] sm:$0xff] }
 0x238   :  { %v472_v17 = vmul.f32 %v5319_v47, %v411_v54  ;;  %v1072_v53 = vmul.f32 %v5492_v8, %v1039_v44  ;;  %v330_v54 = vpop.f32.mrf.mxu0 }
 0x239   :  { %v832_v32 = vsub.f32 1.5, %v831_v41  ;;  %v5785_v41 = vadd.f32 %v327_v12, %v99_v45  ;;  %v100_v12 = vld [vmem:[%s8215_s2 + $0xe0] sm:$0xff] }
 0x23a   :  { %v4776_v34 = vpop.eup %4775  ;;  %v5770_v14 = vsub.f32 %v5616_v60, %v472_v17  ;;  %v1105_v38 = vadd.f32 %v5511_v28, %v1072_v53 }
 0x23b   :  { %v833_v52 = vmul.f32 %v4774_v43, %v832_v32  ;;  %v839_v42 = vmul.f32 %v4776_v34, %v689_v18  ;;  %8307 = vst [vmem:[#allocation33_spill] sm:$0xff] %v5785_v41  ;;  %vm845_vm12 = vweird.f32 %v4776_v34 }
 0x23c   :  { %v1135_v9 = vpack.c.bf16 %v1105_v38, %v1104_v1  ;;  %v536_v39 = vmul.f32 %v5770_v14, %v5770_v14  ;;  %vm846_vm14 = vmor %vm844_vm13, %vm845_vm12  ;;  %v430_v1 = vsel %vm348_vm1, %v5785_v41, 0.0 }
 0x23d   :  { %v840_v55 = vmul.f32 %v4776_v34, %v839_v42  ;;  %v837_v19 = vsel %vm836_vm11, %v4774_v43, %v833_v52 }
 0x23e   :  { %4534 = vmatmul.msk.bf16.gmra.mxu1 %vm348_vm1, %v1135_v9  ;;  %v608_v61 = vsel %vm348_vm1, %v536_v39, 0.0  ;;  %v1040_v53 = vmul.f32 %v837_v19, %v5581_v0 }
 0x23f   :  { %v841_v51 = vmul.f32 0.5, %v840_v55  ;;  %428 = vadd.xlane.f32.xlu0 %v427_v25  ;;  %v414_v44 = vpop.xlane.xlu1 %413  ;;  %609 = vadd.xlane.f32.xlu1 %v608_v61  ;;  %v5802_v25 = vadd.f32 %v330_v54, %v100_v12 }
 0x240   :  { %v473_v10 = vmul.f32 %v5319_v47, %v414_v44  ;;  %v1073_v0 = vmul.f32 %v5492_v8, %v1040_v53  ;;  %v332_v61 = vpop.f32.mrf.mxu0  ;;  %v101_v44 = vld [vmem:[%s8215_s2 + $0xe8] sm:$0xff]  ;;  %v102_v53 = vld [vmem:[%s8215_s2 + $0xf0] sm:$0xff] }
 0x241   :  { %v842_v6 = vsub.f32 1.5, %v841_v51  ;;  %8308 = vst [vmem:[#allocation34_spill] sm:$0xff] %v5802_v25  ;;  %v433_v51 = vsel %vm348_vm1, %v5802_v25, 0.0 }
 0x242   :  { %v5788_v17 = vsub.f32 %v5634_v50, %v473_v10  ;;  %v1106_v55 = vadd.f32 %v5511_v28, %v1073_v0 }
 0x243   :  { %v843_v32 = vmul.f32 %v4776_v34, %v842_v6  ;;  %v5819_v6 = vadd.f32 %v332_v61, %v101_v44 }
 0x244   :  { %v537_v43 = vmul.f32 %v5788_v17, %v5788_v17 }
 0x245   :  { %v847_v38 = vsel %vm846_vm14, %v4776_v34, %v843_v32  ;;  %8309 = vst [vmem:[#allocation35_spill] sm:$0xff] %v5819_v6  ;;  %v436_v54 = vsel %vm348_vm1, %v5819_v6, 0.0 }
 0x246   :  { %v611_v52 = vsel %vm348_vm1, %v537_v43, 0.0  ;;  %v1041_v42 = vmul.f32 %v847_v38, %v5599_v16  ;;  %v658_v38 = vmul.f32 %v5763_v22, %v5319_v47 }
 0x247   :  { %612 = vadd.xlane.f32.xlu2 %v611_v52  ;;  %v417_v18 = vpop.xlane.xlu1 %416  ;;  %431 = vadd.xlane.f32.xlu1 %v430_v1 }
 0x248   :  { %v474_v9 = vmul.f32 %v5319_v47, %v417_v18  ;;  %v1074_v39 = vmul.f32 %v5492_v8, %v1041_v42  ;;  %v335_v32 = vpop.f32.mrf.mxu0  ;;  %v690_v12 = vadd.f32 1e-06, %v658_v38 }
 0x249   :  { %v5826_v43 = vadd.f32 %v335_v32, %v102_v53 }
 0x24a   :  { %v5806_v34 = vsub.f32 %v5641_v31, %v474_v9  ;;  %v1107_v45 = vadd.f32 %v5511_v28, %v1074_v39  ;;  %4777 = vrsqrt.f32 %v690_v12  ;;  %vm854_vm2 = vweird.f32 %v690_v12 }
 0x24b   :  { %8310 = vst [vmem:[#allocation36_spill] sm:$0xff] %v5826_v43  ;;  %v439_v1 = vsel %vm348_vm1, %v5826_v43, 0.0 }
 0x24c   :  { %v1136_v16 = vpack.c.bf16 %v1107_v45, %v1106_v55  ;;  %v538_v19 = vmul.f32 %v5806_v34, %v5806_v34 }
 0x24e   :  { %4535 = vmatmul.msk.bf16.gmra.mxu1 %vm348_vm1, %v1136_v16  ;;  %v614_v10 = vsel %vm348_vm1, %v538_v19, 0.0 }
 0x24f   :  { %615 = vadd.xlane.f32.xlu2 %v614_v10  ;;  %434 = vadd.xlane.f32.xlu1 %v433_v51 }
 0x250   :  { %v4778_v52 = vpop.eup %4777 }
 0x251   :  { %v849_v42 = vmul.f32 %v4778_v52, %v690_v12  ;;  %vm855_vm15 = vweird.f32 %v4778_v52 }
 0x252   :  { %vm856_vm3 = vmor %vm854_vm2, %vm855_vm15 }
 0x253   :  { %v850_v0 = vmul.f32 %v4778_v52, %v849_v42 }
 0x255   :  { %v851_v55 = vmul.f32 0.5, %v850_v0 }
 0x257   :  { %437 = vadd.xlane.f32.xlu2 %v436_v54  ;;  %v852_v45 = vsub.f32 1.5, %v851_v55 }
 0x259   :  { %v853_v44 = vmul.f32 %v4778_v52, %v852_v45 }
 0x25b   :  { %v857_v54 = vsel %vm856_vm3, %v4778_v52, %v853_v44 }
 0x25c   :  { %v1042_v12 = vmul.f32 %v857_v54, %v5621_v63 }
 0x25f   :  { %440 = vadd.xlane.f32.xlu2 %v439_v1 }
 0x28a   :  { %v595_v18 = vpop.xlane.xlu2 %594 }
 0x28b   :  { %v659_v9 = vmul.f32 %v595_v18, %v5319_v47 }
 0x28d   :  { %v691_v39 = vadd.f32 1e-06, %v659_v9  ;;  %v5836_v9 = vpop.f32.mrf.mxu1 }
 0x28f   :  { %4779 = vrsqrt.f32 %v691_v39  ;;  %vm864_vm5 = vweird.f32 %v691_v39 }
 0x292   :  { %v598_v61 = vpop.xlane.xlu2 %597 }
 0x293   :  { %v660_v16 = vmul.f32 %v598_v61, %v5319_v47 }
 0x295   :  { %v4780_v19 = vpop.eup %4779  ;;  %v692_v51 = vadd.f32 1e-06, %v660_v16 }
 0x296   :  { %v859_v22 = vmul.f32 %v4780_v19, %v691_v39  ;;  %vm865_vm4 = vweird.f32 %v4780_v19 }
 0x297   :  { %4781 = vrsqrt.f32 %v692_v51  ;;  %vm866_vm6 = vmor %vm864_vm5, %vm865_vm4  ;;  %vm874_vm7 = vweird.f32 %v692_v51 }
 0x298   :  { %v860_v10 = vmul.f32 %v4780_v19, %v859_v22 }
 0x29a   :  { %v861_v53 = vmul.f32 0.5, %v860_v10  ;;  %v420_v32 = vpop.xlane.xlu2 %419  ;;  %v601_v1 = vpop.xlane.xlu0 %600 }
 0x29b   :  { %v475_v38 = vmul.f32 %v5319_v47, %v420_v32  ;;  %v661_v42 = vmul.f32 %v601_v1, %v5319_v47  ;;  %v1075_v32 = vmul.f32 %v5492_v8, %v1042_v12 }
 0x29c   :  { %v862_v0 = vsub.f32 1.5, %v861_v53 }
 0x29d   :  { %v4782_v18 = vpop.eup %4781  ;;  %v5839_v55 = vsub.f32 %v5688_v49, %v475_v38  ;;  %v693_v45 = vadd.f32 1e-06, %v661_v42 }
 0x29e   :  { %v863_v61 = vmul.f32 %v4780_v19, %v862_v0  ;;  %v869_v52 = vmul.f32 %v4782_v18, %v692_v51  ;;  %vm875_vm0 = vweird.f32 %v4782_v18 }
 0x29f   :  { %4783 = vrsqrt.f32 %v693_v45  ;;  %v539_v16 = vmul.f32 %v5839_v55, %v5839_v55  ;;  %vm5862_vm8 = vmor %vm874_vm7, %vm875_vm0  ;;  %vm884_vm10 = vweird.f32 %v693_v45 }
 0x2a0   :  { %v867_v44 = vsel %vm866_vm6, %v4780_v19, %v863_v61  ;;  %v870_v22 = vmul.f32 %v4782_v18, %v869_v52 }
 0x2a1   :  { %v617_v10 = vsel %vm348_vm1, %v539_v16, 0.0  ;;  %v1043_v53 = vmul.f32 %v867_v44, %v5652_v30  ;;  %v1108_v30 = vadd.f32 %v5511_v28, %v1075_v32  ;;  %v5857_v44 = vpop.f32.mrf.mxu1  ;;  %v337_v32 = vpop.f32.mrf.mxu0 }
 0x2a2   :  { %v871_v1 = vmul.f32 0.5, %v870_v22  ;;  %618 = vadd.xlane.f32.xlu0 %v617_v10  ;;  %v423_v38 = vpop.xlane.xlu2 %422  ;;  %v604_v63 = vpop.xlane.xlu0 %603 }
 0x2a3   :  { %v476_v39 = vmul.f32 %v5319_v47, %v423_v38  ;;  %v662_v54 = vmul.f32 %v604_v63, %v5319_v47  ;;  %v1076_v42 = vmul.f32 %v5492_v8, %v1043_v53 }
 0x2a4   :  { %v872_v0 = vsub.f32 1.5, %v871_v1 }
 0x2a5   :  { %v4784_v49 = vpop.eup %4783  ;;  %v5851_v19 = vsub.f32 %v5710_v46, %v476_v39  ;;  %v5853_v61 = vadd.f32 1e-06, %v662_v54  ;;  %v1109_v12 = vadd.f32 %v5511_v28, %v1076_v42  ;;  %v103_v54 = vld [vmem:[%s8215_s2 + $0xf8] sm:$0xff] }
 0x2a6   :  { %v873_v52 = vmul.f32 %v4782_v18, %v872_v0  ;;  %v879_v16 = vmul.f32 %v4784_v49, %v693_v45  ;;  %vm885_vm9 = vweird.f32 %v4784_v49 }
 0x2a7   :  { %4785 = vrsqrt.f32 %v5853_v61  ;;  %v1137_v22 = vpack.c.bf16 %v1109_v12, %v1108_v30  ;;  %v540_v10 = vmul.f32 %v5851_v19, %v5851_v19  ;;  %vm886_vm11 = vmor %vm884_vm10, %vm885_vm9  ;;  %vm894_vm13 = vweird.f32 %v5853_v61 }
 0x2a8   :  { %v880_v53 = vmul.f32 %v4784_v49, %v879_v16  ;;  %v877_v63 = vsel %vm5862_vm8, %v4782_v18, %v873_v52 }
 0x2a9   :  { %4536 = vmatmul.msk.bf16.gmra.mxu1 %vm348_vm1, %v1137_v22  ;;  %v620_v38 = vsel %vm348_vm1, %v540_v10, 0.0  ;;  %v5875_v22 = vadd.f32 %v337_v32, %v103_v54  ;;  %v1044_v52 = vmul.f32 %v877_v63, %v5666_v7 }
 0x2aa   :  { %v881_v39 = vmul.f32 0.5, %v880_v53  ;;  %621 = vadd.xlane.f32.xlu0 %v620_v38  ;;  %v607_v51 = vpop.xlane.xlu1 %606  ;;  %v426_v42 = vpop.xlane.xlu0 %425 }
 0x2ab   :  { %v663_v0 = vmul.f32 %v607_v51, %v5319_v47  ;;  %v477_v30 = vmul.f32 %v5319_v47, %v426_v42  ;;  %8313 = vst [vmem:[#allocation37_spill] sm:$0xff] %v5875_v22  ;;  %v5884_v42 = vpop.f32.mrf.mxu1  ;;  %v442_v32 = vsel %vm348_vm1, %v5875_v22, 0.0  ;;  %v1077_v45 = vmul.f32 %v5492_v8, %v1044_v52 }
 0x2ac   :  { %v882_v12 = vsub.f32 1.5, %v881_v39 }
 0x2ad   :  { %v4786_v16 = vpop.eup %4785  ;;  %v695_v10 = vadd.f32 1e-06, %v663_v0  ;;  %v5878_v18 = vsub.f32 %v5745_v4, %v477_v30 }
 0x2ae   :  { %v883_v53 = vmul.f32 %v4784_v49, %v882_v12  ;;  %v889_v1 = vmul.f32 %v4786_v16, %v5853_v61  ;;  %vm895_vm12 = vweird.f32 %v4786_v16 }
 0x2af   :  { %4787 = vrsqrt.f32 %v695_v10  ;;  %v541_v38 = vmul.f32 %v5878_v18, %v5878_v18  ;;  %vm5902_vm14 = vmor %vm894_vm13, %vm895_vm12  ;;  %vm904_vm2 = vweird.f32 %v695_v10 }
 0x2b0   :  { %v887_v39 = vsel %vm886_vm11, %v4784_v49, %v883_v53  ;;  %v890_v51 = vmul.f32 %v4786_v16, %v889_v1 }
 0x2b1   :  { %v623_v54 = vsel %vm348_vm1, %v541_v38, 0.0  ;;  %v1045_v7 = vmul.f32 %v887_v39, %v5691_v21  ;;  %v1110_v21 = vadd.f32 %v5511_v28, %v1077_v45 }
 0x2b2   :  { %v891_v63 = vmul.f32 0.5, %v890_v51  ;;  %443 = vadd.xlane.f32.xlu0 %v442_v32  ;;  %v610_v0 = vpop.xlane.xlu1 %609  ;;  %624 = vadd.xlane.f32.xlu1 %v623_v54  ;;  %v429_v30 = vpop.xlane.xlu0 %428 }
 0x2b3   :  { %v664_v12 = vmul.f32 %v610_v0, %v5319_v47  ;;  %v478_v49 = vmul.f32 %v5319_v47, %v429_v30  ;;  %v1078_v53 = vmul.f32 %v5492_v8, %v1045_v7 }
 0x2b4   :  { %v892_v1 = vsub.f32 1.5, %v891_v63 }
 0x2b5   :  { %v4788_v4 = vpop.eup %4787  ;;  %v696_v46 = vadd.f32 1e-06, %v664_v12  ;;  %v5895_v38 = vsub.f32 %v5766_v40, %v478_v49  ;;  %v1111_v52 = vadd.f32 %v5511_v28, %v1078_v53  ;;  %v5912_v49 = vpop.f32.mrf.mxu1 }
 0x2b6   :  { %v893_v39 = vmul.f32 %v4786_v16, %v892_v1  ;;  %v899_v51 = vmul.f32 %v4788_v4, %v695_v10  ;;  %vm905_vm15 = vweird.f32 %v4788_v4 }
 0x2b7   :  { %4789 = vrsqrt.f32 %v696_v46  ;;  %v1138_v32 = vpack.c.bf16 %v1111_v52, %v1110_v21  ;;  %v542_v54 = vmul.f32 %v5895_v38, %v5895_v38  ;;  %vm906_vm3 = vmor %vm904_vm2, %vm905_vm15  ;;  %vm914_vm5 = vweird.f32 %v696_v46 }
 0x2b8   :  { %v900_v8 = vmul.f32 %v4788_v4, %v899_v51  ;;  %v897_v28 = vsel %vm5902_vm14, %v4786_v16, %v893_v39 }
 0x2b9   :  { %4537 = vmatmul.msk.bf16.gmra.mxu1 %vm348_vm1, %v1138_v32  ;;  %v626_v45 = vsel %vm348_vm1, %v542_v54, 0.0  ;;  %v1046_v51 = vmul.f32 %v897_v28, %v5716_v5 }
 0x2ba   :  { %v901_v63 = vmul.f32 0.5, %v900_v8  ;;  %v613_v0 = vpop.xlane.xlu2 %612  ;;  %v432_v30 = vpop.xlane.xlu1 %431  ;;  %627 = vadd.xlane.f32.xlu1 %v626_v45 }
 0x2bb   :  { %v665_v12 = vmul.f32 %v613_v0, %v5319_v47  ;;  %v479_v61 = vmul.f32 %v5319_v47, %v432_v30 }
 0x2bc   :  { %v902_v53 = vsub.f32 1.5, %v901_v63  ;;  %v5925_v63 = vld [vmem:[%s8216_s3] ss:$0 sm:$0xff] }
 0x2bd   :  { %v4790_v1 = vpop.eup %4789  ;;  %v697_v21 = vadd.f32 1e-06, %v665_v12  ;;  %v5915_v52 = vsub.f32 %v5785_v41, %v479_v61  ;;  %v1079_v5 = vmul.f32 %v5925_v63, %v1046_v51 }
 0x2be   :  { %v903_v16 = vmul.f32 %v4788_v4, %v902_v53  ;;  %v909_v39 = vmul.f32 %v4790_v1, %v696_v46  ;;  %vm915_vm4 = vweird.f32 %v4790_v1 }
 0x2bf   :  { %4791 = vrsqrt.f32 %v697_v21  ;;  %v543_v32 = vmul.f32 %v5915_v52, %v5915_v52  ;;  %vm916_vm6 = vmor %vm914_vm5, %vm915_vm4  ;;  %vm924_vm7 = vweird.f32 %v697_v21 }
 0x2c0   :  { %v907_v54 = vsel %vm906_vm3, %v4788_v4, %v903_v16  ;;  %v910_v8 = vmul.f32 %v4790_v1, %v909_v39  ;;  %v5940_v39 = vpop.f32.mrf.mxu1 }
 0x2c1   :  { %v629_v7 = vsel %vm348_vm1, %v543_v32, 0.0  ;;  %v1047_v45 = vmul.f32 %v907_v54, %v5748_v27  ;;  %v5936_v27 = vld [vmem:[%s8216_s3 + $0x1] ss:$0 sm:$0xff] }
 0x2c2   :  { %v911_v10 = vmul.f32 0.5, %v910_v8  ;;  %v616_v28 = vpop.xlane.xlu2 %615  ;;  %630 = vadd.xlane.f32.xlu2 %v629_v7  ;;  %v435_v0 = vpop.xlane.xlu1 %434  ;;  %v1112_v51 = vadd.f32 %v5936_v27, %v1079_v5 }
 0x2c3   :  { %v480_v30 = vmul.f32 %v5319_v47, %v435_v0  ;;  %v1080_v4 = vmul.f32 %v5925_v63, %v1047_v45 }
 0x2c4   :  { %v912_v12 = vsub.f32 1.5, %v911_v10 }
 0x2c5   :  { %v4792_v61 = vpop.eup %4791  ;;  %v5931_v53 = vsub.f32 %v5802_v25, %v480_v30  ;;  %v1113_v16 = vadd.f32 %v5936_v27, %v1080_v4 }
 0x2c6   :  { %v913_v32 = vmul.f32 %v4790_v1, %v912_v12  ;;  %v919_v54 = vmul.f32 %v4792_v61, %v697_v21  ;;  %vm925_vm0 = vweird.f32 %v4792_v61 }
 0x2c7   :  { %v1139_v8 = vpack.c.bf16 %v1113_v16, %v1112_v51  ;;  %v544_v7 = vmul.f32 %v5931_v53, %v5931_v53  ;;  %vm926_vm8 = vmor %vm924_vm7, %vm925_vm0 }
 0x2c8   :  { %v920_v45 = vmul.f32 %v4792_v61, %v919_v54  ;;  %v917_v0 = vsel %vm916_vm6, %v4790_v1, %v913_v32 }
 0x2c9   :  { %4538 = vmatmul.msk.bf16.gmra.mxu1 %vm348_vm1, %v1139_v8  ;;  %v632_v10 = vsel %vm348_vm1, %v544_v7, 0.0  ;;  %v1048_v16 = vmul.f32 %v917_v0, %v5770_v14  ;;  %v5953_v8 = vpop.f32.mrf.mxu1 }
 0x2ca   :  { %v921_v5 = vmul.f32 0.5, %v920_v45  ;;  %v438_v30 = vpop.xlane.xlu2 %437  ;;  %633 = vadd.xlane.f32.xlu0 %v632_v10 }
 0x2cb   :  { %v481_v4 = vmul.f32 %v5319_v47, %v438_v30  ;;  %v1081_v45 = vmul.f32 %v5925_v63, %v1048_v16 }
 0x2cc   :  { %v922_v12 = vsub.f32 1.5, %v921_v5 }
 0x2cd   :  { %v5948_v51 = vsub.f32 %v5819_v6, %v481_v4  ;;  %v1114_v0 = vadd.f32 %v5936_v27, %v1081_v45 }
 0x2ce   :  { %v923_v46 = vmul.f32 %v4792_v61, %v922_v12 }
 0x2cf   :  { %v545_v54 = vmul.f32 %v5948_v51, %v5948_v51 }
 0x2d0   :  { %v927_v1 = vsel %vm926_vm8, %v4792_v61, %v923_v46 }
 0x2d1   :  { %v635_v32 = vsel %vm348_vm1, %v545_v54, 0.0  ;;  %v1049_v7 = vmul.f32 %v927_v1, %v5788_v17  ;;  %v5967_v17 = vpop.f32.mrf.mxu1 }
 0x2d2   :  { %v441_v10 = vpop.xlane.xlu2 %440  ;;  %636 = vadd.xlane.f32.xlu1 %v635_v32  ;;  %v666_v32 = vmul.f32 %v616_v28, %v5319_v47 }
 0x2d3   :  { %v482_v5 = vmul.f32 %v5319_v47, %v441_v10  ;;  %v1082_v14 = vmul.f32 %v5925_v63, %v1049_v7 }
 0x2d4   :  { %v698_v7 = vadd.f32 1e-06, %v666_v32 }
 0x2d5   :  { %v5961_v21 = vsub.f32 %v5826_v43, %v482_v5  ;;  %v1115_v30 = vadd.f32 %v5936_v27, %v1082_v14 }
 0x2d6   :  { %4793 = vrsqrt.f32 %v698_v7  ;;  %vm934_vm10 = vweird.f32 %v698_v7 }
 0x2d7   :  { %v1140_v61 = vpack.c.bf16 %v1115_v30, %v1114_v0  ;;  %v546_v4 = vmul.f32 %v5961_v21, %v5961_v21 }
 0x2d9   :  { %4539 = vmatmul.msk.bf16.gmra.mxu1 %vm348_vm1, %v1140_v61  ;;  %v638_v12 = vsel %vm348_vm1, %v546_v4, 0.0  ;;  %v5971_v16 = vpop.f32.mrf.mxu1 }
 0x2da   :  { %639 = vadd.xlane.f32.xlu2 %v638_v12 }
 0x2dc   :  { %v4794_v10 = vpop.eup %4793 }
 0x2dd   :  { %v929_v5 = vmul.f32 %v4794_v10, %v698_v7  ;;  %vm935_vm9 = vweird.f32 %v4794_v10 }
 0x2de   :  { %vm936_vm11 = vmor %vm934_vm10, %vm935_vm9 }
 0x2df   :  { %v930_v0 = vmul.f32 %v4794_v10, %v929_v5 }
 0x2e1   :  { %v5973_v46 = vpop.f32.mrf.mxu1  ;;  %v931_v12 = vmul.f32 0.5, %v930_v0 }
 0x2e3   :  { %v932_v43 = vsub.f32 1.5, %v931_v12 }
 0x2e5   :  { %v933_v40 = vmul.f32 %v4794_v10, %v932_v43 }
 0x2e7   :  { %v937_v50 = vsel %vm936_vm11, %v4794_v10, %v933_v40 }
 0x2e8   :  { %v1050_v7 = vmul.f32 %v937_v50, %v5806_v34 }
 0x2e9   :  { %v5975_v54 = vpop.f32.mrf.mxu1 }
 0x2f1   :  { %v5977_v1 = vpop.f32.mrf.mxu1 }
 0x2f9   :  { %v5980_v45 = vpop.f32.mrf.mxu1 }
 0x301   :  { %v5982_v14 = vpop.f32.mrf.mxu1 }
 0x309   :  { %v5985_v25 = vpop.f32.mrf.mxu1 }
 0x315   :  { %v619_v30 = vpop.xlane.xlu0 %618 }
 0x316   :  { %v667_v61 = vmul.f32 %v619_v30, %v5319_v47 }
 0x318   :  { %v699_v4 = vadd.f32 1e-06, %v667_v61 }
 0x31a   :  { %4795 = vrsqrt.f32 %v699_v4  ;;  %vm944_vm13 = vweird.f32 %v699_v4 }
 0x31d   :  { %v622_v6 = vpop.xlane.xlu0 %621 }
 0x31e   :  { %v668_v28 = vmul.f32 %v622_v6, %v5319_v47 }
 0x320   :  { %v4796_v32 = vpop.eup %4795  ;;  %v700_v41 = vadd.f32 1e-06, %v668_v28 }
 0x321   :  { %v939_v31 = vmul.f32 %v4796_v32, %v699_v4  ;;  %vm945_vm12 = vweird.f32 %v4796_v32 }
 0x322   :  { %4797 = vrsqrt.f32 %v700_v41  ;;  %vm946_vm14 = vmor %vm944_vm13, %vm945_vm12  ;;  %vm954_vm2 = vweird.f32 %v700_v41 }
 0x323   :  { %v940_v5 = vmul.f32 %v4796_v32, %v939_v31 }
 0x325   :  { %v941_v30 = vmul.f32 0.5, %v940_v5  ;;  %v625_v61 = vpop.xlane.xlu1 %624  ;;  %v444_v0 = vpop.xlane.xlu0 %443 }
 0x326   :  { %v669_v12 = vmul.f32 %v625_v61, %v5319_v47  ;;  %v483_v60 = vmul.f32 %v5319_v47, %v444_v0  ;;  %v1251_v58 = vpop.f32.mrf.mxu1 }
 0x327   :  { %v942_v59 = vsub.f32 1.5, %v941_v30 }
 0x328   :  { %v4798_v6 = vpop.eup %4797  ;;  %v701_v28 = vadd.f32 1e-06, %v669_v12  ;;  %v5991_v43 = vsub.f32 %v5875_v22, %v483_v60  ;;  %v1083_v12 = vmul.f32 %v5925_v63, %v1050_v7  ;;  %v6002_v60 = vld [vmem:[%s8216_s3 + $0x4] ss:$0 sm:$0xff] }
 0x329   :  { %v943_v31 = vmul.f32 %v4796_v32, %v942_v59  ;;  %v949_v40 = vmul.f32 %v4798_v6, %v700_v41  ;;  %vm955_vm15 = vweird.f32 %v4798_v6 }
 0x32a   :  { %4799 = vrsqrt.f32 %v701_v28  ;;  %v547_v10 = vmul.f32 %v5991_v43, %v5991_v43  ;;  %vm956_vm3 = vmor %vm954_vm2, %vm955_vm15  ;;  %vm964_vm5 = vweird.f32 %v701_v28 }
 0x32b   :  { %v947_v5 = vsel %vm946_vm14, %v4796_v32, %v943_v31  ;;  %v950_v61 = vmul.f32 %v4798_v6, %v949_v40  ;;  %v1252_v40 = vadd.f32 %v6002_v60, %v1251_v58  ;;  %v1244_v58 = vadd.f32 %v6002_v60, %v5980_v45 }
 0x32c   :  { %v641_v30 = vsel %vm348_vm1, %v547_v10, 0.0  ;;  %v1051_v0 = vmul.f32 %v947_v5, %v5839_v55  ;;  %v1116_v5 = vadd.f32 %v5936_v27, %v1083_v12 }
 0x32d   :  { %v951_v59 = vmul.f32 0.5, %v950_v61  ;;  %v628_v50 = vpop.xlane.xlu1 %627  ;;  %642 = vadd.xlane.f32.xlu0 %v641_v30 }
 0x32e   :  { %v670_v34 = vmul.f32 %v628_v50, %v5319_v47  ;;  %v1253_v4 = vpop.f32.mrf.mxu1  ;;  %v1084_v32 = vmul.f32 %v5925_v63, %v1051_v0 }
 0x32f   :  { %v952_v31 = vsub.f32 1.5, %v951_v59  ;;  %v1254_v55 = vadd.f32 %v6002_v60, %v1253_v4 }
 0x330   :  { %v4800_v10 = vpop.eup %4799  ;;  %v702_v7 = vadd.f32 1e-06, %v670_v34  ;;  %v1117_v22 = vadd.f32 %v5936_v27, %v1084_v32 }
 0x331   :  { %v953_v23 = vmul.f32 %v4798_v6, %v952_v31  ;;  %v959_v61 = vmul.f32 %v4800_v10, %v701_v28  ;;  %v6010_v30 = vpack.c.bf16 %v1254_v55, %v1252_v40  ;;  %vm965_vm4 = vweird.f32 %v4800_v10 }
 0x332   :  { %4801 = vrsqrt.f32 %v702_v7  ;;  %v1141_v50 = vpack.c.bf16 %v1117_v22, %v1116_v5  ;;  %v1242_v22 = vadd.f32 %v6002_v60, %v5977_v1  ;;  %vm966_vm6 = vmor %vm964_vm5, %vm965_vm4  ;;  %vm974_vm7 = vweird.f32 %v702_v7 }
 0x333   :  { %v960_v0 = vmul.f32 %v4800_v10, %v959_v61  ;;  %1342 = vrot.lane.b32.xlu1 %v6010_v30, %s5170_s30  ;;  %v957_v12 = vsel %vm956_vm3, %v4798_v6, %v953_v23  ;;  %v1249_v23 = vadd.f32 %v6002_v60, %v5985_v25 }
 0x334   :  { %4540 = vmatmul.msk.bf16.gmra.mxu1 %vm348_vm1, %v1141_v50  ;;  %v1052_v31 = vmul.f32 %v957_v12, %v5851_v19  ;;  %v6021_v55 = vpack.c.bf16 %v1244_v58, %v1242_v22  ;;  %v1247_v50 = vadd.f32 %v6002_v60, %v5982_v14 }
 0x335   :  { %v961_v59 = vmul.f32 0.5, %v960_v0  ;;  %v631_v34 = vpop.xlane.xlu2 %630 }
 0x336   :  { %v671_v4 = vmul.f32 %v631_v34, %v5319_v47  ;;  %v1085_v19 = vmul.f32 %v5925_v63, %v1052_v31 }
 0x337   :  { %v962_v41 = vsub.f32 1.5, %v961_v59  ;;  %v6033_v59 = vpack.c.bf16 %v1249_v23, %v1247_v50 }
 0x338   :  { %v4802_v32 = vpop.eup %4801  ;;  %v703_v40 = vadd.f32 1e-06, %v671_v4  ;;  %v1118_v4 = vadd.f32 %v5936_v27, %v1085_v19 }
 0x339   :  { %v963_v5 = vmul.f32 %v4800_v10, %v962_v41  ;;  %v969_v61 = vmul.f32 %v4802_v32, %v702_v7  ;;  %vm975_vm0 = vweird.f32 %v4802_v32 }
 0x33a   :  { %4803 = vrsqrt.f32 %v703_v40  ;;  %vm976_vm8 = vmor %vm974_vm7, %vm975_vm0  ;;  %vm984_vm10 = vweird.f32 %v703_v40 }
 0x33b   :  { %v967_v45 = vsel %vm966_vm6, %v4800_v10, %v963_v5  ;;  %v970_v6 = vmul.f32 %v4802_v32, %v969_v61  ;;  %1338 = vrot.lane.b32.xlu1 %v6021_v55, %s5170_s30 }
 0x33c   :  { %v1053_v1 = vmul.f32 %v967_v45, %v5878_v18 }
 0x33d   :  { %v971_v0 = vmul.f32 0.5, %v970_v6  ;;  %v634_v28 = vpop.xlane.xlu0 %633 }
 0x33e   :  { %v672_v58 = vmul.f32 %v634_v28, %v5319_v47  ;;  %v1086_v12 = vmul.f32 %v5925_v63, %v1053_v1 }
 0x33f   :  { %v972_v25 = vsub.f32 1.5, %v971_v0 }
 0x340   :  { %v4804_v10 = vpop.eup %4803  ;;  %v704_v34 = vadd.f32 1e-06, %v672_v58  ;;  %v1119_v18 = vadd.f32 %v5936_v27, %v1086_v12 }
 0x341   :  { %v973_v22 = vmul.f32 %v4802_v32, %v972_v25  ;;  %v979_v41 = vmul.f32 %v4804_v10, %v703_v40  ;;  %1340 = vrot.lane.b32.xlu0 %v6033_v59, %s5170_s30  ;;  %vm985_vm9 = vweird.f32 %v4804_v10 }
 0x342   :  { %4805 = vrsqrt.f32 %v704_v34  ;;  %v1142_v14 = vpack.c.bf16 %v1119_v18, %v1118_v4  ;;  %vm986_vm11 = vmor %vm984_vm10, %vm985_vm9  ;;  %vm994_vm13 = vweird.f32 %v704_v34 }
 0x343   :  { %v980_v31 = vmul.f32 %v4804_v10, %v979_v41  ;;  %v977_v5 = vsel %vm976_vm8, %v4802_v32, %v973_v22 }
 0x344   :  { %4541 = vmatmul.msk.bf16.gmra.mxu1 %vm348_vm1, %v1142_v14  ;;  %v1054_v19 = vmul.f32 %v977_v5, %v5895_v38 }
 0x345   :  { %v981_v61 = vmul.f32 0.5, %v980_v31  ;;  %v637_v23 = vpop.xlane.xlu1 %636 }
 0x346   :  { %v673_v45 = vmul.f32 %v637_v23, %v5319_v47  ;;  %v1087_v32 = vmul.f32 %v5925_v63, %v1054_v19 }
 0x347   :  { %v982_v6 = vsub.f32 1.5, %v981_v61 }
 0x348   :  { %v4806_v1 = vpop.eup %4805  ;;  %v705_v50 = vadd.f32 1e-06, %v673_v45  ;;  %v1120_v41 = vadd.f32 %v5936_v27, %v1087_v32 }
 0x349   :  { %v983_v0 = vmul.f32 %v4804_v10, %v982_v6  ;;  %v989_v28 = vmul.f32 %v4806_v1, %v704_v34  ;;  %vm995_vm12 = vweird.f32 %v4806_v1 }
 0x34a   :  { %4807 = vrsqrt.f32 %v705_v50  ;;  %vm996_vm14 = vmor %vm994_vm13, %vm995_vm12  ;;  %vm1004_vm2 = vweird.f32 %v705_v50 }
 0x34b   :  { %v987_v7 = vsel %vm986_vm11, %v4804_v10, %v983_v0  ;;  %v990_v58 = vmul.f32 %v4806_v1, %v989_v28 }
 0x34c   :  { %v1055_v12 = vmul.f32 %v987_v7, %v5915_v52 }
 0x34d   :  { %v991_v25 = vmul.f32 0.5, %v990_v58  ;;  %v6055_v58 = vpop.f32.mrf.mxu1 }
 0x34e   :  { %v1088_v4 = vmul.f32 %v5925_v63, %v1055_v12 }
 0x34f   :  { %v992_v18 = vsub.f32 1.5, %v991_v25 }
 0x350   :  { %v4808_v22 = vpop.eup %4807  ;;  %v1121_v38 = vadd.f32 %v5936_v27, %v1088_v4 }
 0x351   :  { %v993_v14 = vmul.f32 %v4806_v1, %v992_v18  ;;  %v999_v40 = vmul.f32 %v4808_v22, %v705_v50  ;;  %vm1005_vm15 = vweird.f32 %v4808_v22  ;;  %v640_v50 = vpop.xlane.xlu2 %639 }
 0x352   :  { %v1143_v31 = vpack.c.bf16 %v1121_v38, %v1120_v41  ;;  %vm1006_vm3 = vmor %vm1004_vm2, %vm1005_vm15 }
 0x353   :  { %v1000_v10 = vmul.f32 %v4808_v22, %v999_v40  ;;  %v997_v52 = vsel %vm996_vm14, %v4806_v1, %v993_v14 }
 0x354   :  { %4542 = vmatmul.msk.bf16.gmra.mxu1 %vm348_vm1, %v1143_v31  ;;  %v1056_v23 = vmul.f32 %v997_v52, %v5931_v53 }
 0x355   :  { %v1001_v5 = vmul.f32 0.5, %v1000_v10  ;;  %v6057_v53 = vpop.f32.mrf.mxu1 }
 0x356   :  { %v1089_v0 = vmul.f32 %v5925_v63, %v1056_v23 }
 0x357   :  { %v1002_v61 = vsub.f32 1.5, %v1001_v5 }
 0x358   :  { %v1122_v28 = vadd.f32 %v5936_v27, %v1089_v0 }
 0x359   :  { %v1003_v45 = vmul.f32 %v4808_v22, %v1002_v61 }
 0x35b   :  { %v1007_v6 = vsel %vm1006_vm3, %v4808_v22, %v1003_v45 }
 0x35c   :  { %v1057_v19 = vmul.f32 %v1007_v6, %v5948_v51  ;;  %v674_v51 = vmul.f32 %v640_v50, %v5319_v47 }
 0x35d   :  { %v6059_v12 = vpop.f32.mrf.mxu1 }
 0x35e   :  { %v1090_v34 = vmul.f32 %v5925_v63, %v1057_v19  ;;  %v706_v32 = vadd.f32 1e-06, %v674_v51 }
 0x360   :  { %v1123_v7 = vadd.f32 %v5936_v27, %v1090_v34  ;;  %4809 = vrsqrt.f32 %v706_v32  ;;  %vm1014_vm5 = vweird.f32 %v706_v32 }
 0x362   :  { %v1144_v1 = vpack.c.bf16 %v1123_v7, %v1122_v28 }
 0x364   :  { %4543 = vmatmul.msk.bf16.gmra.mxu1 %vm348_vm1, %v1144_v1 }
 0x365   :  { %v1263_v25 = vpop.f32.mrf.mxu1 }
 0x366   :  { %v4810_v4 = vpop.eup %4809 }
 0x367   :  { %v1009_v18 = vmul.f32 %v4810_v4, %v706_v32  ;;  %vm1015_vm4 = vweird.f32 %v4810_v4 }
 0x368   :  { %vm1016_vm6 = vmor %vm1014_vm5, %vm1015_vm4 }
 0x369   :  { %v1010_v41 = vmul.f32 %v4810_v4, %v1009_v18 }
 0x36b   :  { %v1011_v31 = vmul.f32 0.5, %v1010_v41 }
 0x36d   :  { %v6062_v22 = vpop.f32.mrf.mxu1  ;;  %v1012_v5 = vsub.f32 1.5, %v1011_v31 }
 0x36f   :  { %v1013_v45 = vmul.f32 %v4810_v4, %v1012_v5 }
 0x371   :  { %v1017_v0 = vsel %vm1016_vm6, %v4810_v4, %v1013_v45 }
 0x372   :  { %v1058_v1 = vmul.f32 %v1017_v0, %v5961_v21  ;;  %v1227_v0 = vadd.f32 %v6002_v60, %v5940_v39  ;;  %v1234_v39 = vadd.f32 %v6002_v60, %v5971_v16  ;;  %v1217_v16 = vadd.f32 %v6002_v60, %v5836_v9 }
 0x373   :  { %v1239_v9 = vadd.f32 %v6002_v60, %v5975_v54 }
 0x374   :  { %v1091_v41 = vmul.f32 %v5925_v63, %v1058_v1 }
 0x375   :  { %v1268_v61 = vpop.f32.mrf.mxu1 }
 0x376   :  { %v1124_v31 = vadd.f32 %v5936_v27, %v1091_v41  ;;  %v1269_v41 = vadd.f32 %v6002_v60, %v1268_v61 }
 0x3a0   :  { %v643_v38 = vpop.xlane.xlu0 %642 }
 0x3a1   :  { %v675_v14 = vmul.f32 %v643_v38, %v5319_v47 }
 0x3a3   :  { %v707_v40 = vadd.f32 1e-06, %v675_v14 }
 0x3a5   :  { %4811 = vrsqrt.f32 %v707_v40  ;;  %v1343_v10 = vpop.permute.xlu1 %1342  ;;  %vm1024_vm7 = vweird.f32 %v707_v40 }
 0x3a6   :  { %v6066_v52 = vsel %vm348_vm1, %v1343_v10, 0 }
 0x3a7   :  { %1420 = vmatpush.bf16.xpose.msra.mxu2 %v6066_v52  ;;  %2012 = vmatpush.bf16.xpose.msrb.mxu1 %v6066_v52 }
 0x3ab   :  { %v4812_v23 = vpop.eup %4811 }
 0x3ac   :  { %v1019_v6 = vmul.f32 %v4812_v23, %v707_v40  ;;  %vm1025_vm0 = vweird.f32 %v4812_v23 }
 0x3ad   :  { %vm1026_vm8 = vmor %vm1024_vm7, %vm1025_vm0  ;;  %v1339_v38 = vpop.permute.xlu1 %1338 }
 0x3ae   :  { %v1020_v19 = vmul.f32 %v4812_v23, %v1019_v6  ;;  %v6084_v10 = vsel %vm348_vm1, %v1339_v38, 0  ;;  %v1267_v38 = vadd.f32 %v6002_v60, %v6062_v22 }
 0x3b0   :  { %v1021_v34 = vmul.f32 0.5, %v1020_v19 }
 0x3b1   :  { %v6070_v28 = vpop.f32.mrf.mxu1 }
 0x3b2   :  { %v1022_v7 = vsub.f32 1.5, %v1021_v34 }
 0x3b3   :  { %v1341_v50 = vpop.permute.xlu0 %1340 }
 0x3b4   :  { %v1023_v51 = vmul.f32 %v4812_v23, %v1022_v7  ;;  %v6074_v18 = vsel %vm348_vm1, %v1341_v50, 0  ;;  %v1264_v7 = vadd.f32 %v6002_v60, %v1263_v25  ;;  %v1262_v50 = vadd.f32 %v6002_v60, %v6059_v12 }
 0x3b5   :  { %1421 = vmatpush.bf16.xpose.msra.mxu2 %v6074_v18  ;;  %2013 = vmatpush.bf16.xpose.msrb.mxu1 %v6074_v18  ;;  %v1232_v12 = vadd.f32 %v6002_v60, %v5967_v17  ;;  %v1219_v17 = vadd.f32 %v6002_v60, %v5857_v44 }
 0x3b6   :  { %v1027_v32 = vsel %vm1026_vm8, %v4812_v23, %v1023_v51 }
 0x3b7   :  { %v1059_v4 = vmul.f32 %v1027_v32, %v5991_v43  ;;  %v6120_v25 = vpack.c.bf16 %v1234_v39, %v1232_v12 }
 0x3b9   :  { %v1273_v14 = vpop.f32.mrf.mxu1  ;;  %v1092_v21 = vmul.f32 %v5925_v63, %v1059_v4 }
 0x3ba   :  { %v1274_v44 = vadd.f32 %v6002_v60, %v1273_v14 }
 0x3bb   :  { %v1125_v40 = vadd.f32 %v5936_v27, %v1092_v21  ;;  %v1229_v27 = vadd.f32 %v6002_v60, %v5953_v8  ;;  %v6108_v8 = vpack.c.bf16 %v1264_v7, %v1262_v50  ;;  %v1222_v7 = vadd.f32 %v6002_v60, %v5884_v42 }
 0x3bc   :  { %v1259_v50 = vadd.f32 %v6002_v60, %v6057_v53 }
 0x3bd   :  { %1422 = vmatpush.bf16.xpose.msra.mxu2 %v6084_v10  ;;  %2014 = vmatpush.bf16.xpose.msrb.mxu1 %v6084_v10  ;;  %v1145_v5 = vpack.c.bf16 %v1125_v40, %v1124_v31  ;;  %v6099_v34 = vpack.c.bf16 %v1229_v27, %v1227_v0  ;;  %v6129_v31 = vpack.c.bf16 %v1269_v41, %v1267_v38 }
 0x3be   :  { %v6139_v40 = vpack.c.bf16 %v1219_v17, %v1217_v16  ;;  %v1224_v0 = vadd.f32 %v6002_v60, %v5912_v49 }
 0x3bf   :  { %4544 = vmatmul.msk.bf16.gmra.mxu1 %vm348_vm1, %v1145_v5 }
 0x3c1   :  { %v1276_v43 = vpop.f32.mrf.mxu1 }
 0x3c2   :  { %v1277_v45 = vadd.f32 %v6002_v60, %v1276_v43 }
 0x3c9   :  { %v1278_v23 = vpop.f32.mrf.mxu1 }
 0x3ca   :  { %v1279_v63 = vadd.f32 %v6002_v60, %v1278_v23  ;;  %v1237_v23 = vadd.f32 %v6002_v60, %v5973_v46 }
 0x3cc   :  { %v6091_v6 = vpack.c.bf16 %v1279_v63, %v1277_v45  ;;  %v1272_v45 = vadd.f32 %v6002_v60, %v6070_v28  ;;  %v6160_v63 = vpack.c.bf16 %v1239_v9, %v1237_v23 }
 0x3ce   :  { %1352 = vrot.lane.b32.xlu1 %v6091_v6, %s5170_s30  ;;  %v6162_v27 = vpack.c.bf16 %v1274_v44, %v1272_v45 }
 0x3d1   :  { %v1281_v19 = vpop.f32.mrf.mxu1 }
 0x3d2   :  { %v1282_v51 = vadd.f32 %v6002_v60, %v1281_v19 }
 0x3d6   :  { %1332 = vrot.lane.b32.xlu1 %v6099_v34, %s5170_s30 }
 0x3d9   :  { %v1283_v1 = vpop.f32.mrf.mxu1 }
 0x3da   :  { %v1284_v32 = vadd.f32 %v6002_v60, %v1283_v1  ;;  %v6188_v1 = vpack.c.bf16 %v1224_v0, %v1222_v7 }
 0x3dc   :  { %v6110_v4 = vpack.c.bf16 %v1284_v32, %v1282_v51  ;;  %v1257_v51 = vadd.f32 %v6002_v60, %v6055_v58 }
 0x3de   :  { %1346 = vrot.lane.b32.xlu1 %v6108_v8, %s5170_s30  ;;  %1354 = vrot.lane.b32.xlu0 %v6110_v4, %s5170_s30  ;;  %v6196_v32 = vpack.c.bf16 %v1259_v50, %v1257_v51 }
 0x3e1   :  { %v1286_v21 = vpop.f32.mrf.mxu1 }
 0x3e2   :  { %v1287_v5 = vadd.f32 %v6002_v60, %v1286_v21 }
 0x3e6   :  { %1636 = vrot.lane.b32.xlu1 %v6010_v30, %s5171_s10  ;;  %1334 = vrot.lane.b32.xlu0 %v6120_v25, %s5170_s30 }
 0x3e9   :  { %v1288_v61 = vpop.f32.mrf.mxu1 }
 0x3ea   :  { %v1289_v22 = vadd.f32 %v6002_v60, %v1288_v61 }
 0x3ec   :  { %v6147_v43 = vpack.c.bf16 %v1289_v22, %v1287_v5 }
 0x3ee   :  { %1632 = vrot.lane.b32.xlu1 %v6021_v55, %s5171_s10  ;;  %1348 = vrot.lane.b32.xlu0 %v6129_v31, %s5170_s30 }
 0x3f6   :  { %1646 = vrot.lane.b32.xlu1 %v6091_v6, %s5171_s10  ;;  %1328 = vrot.lane.b32.xlu0 %v6139_v40, %s5170_s30 }
 0x3fe   :  { %1628 = vrot.lane.b32.xlu1 %v6120_v25, %s5171_s10  ;;  %1650 = vrot.lane.b32.xlu0 %v6147_v43, %s5171_s10 }
 0x406   :  { %1644 = vrot.lane.b32.xlu1 %v6162_v27, %s5171_s10  ;;  %1630 = vrot.lane.b32.xlu0 %v6160_v63, %s5171_s10 }
 0x40e   :  { %1626 = vrot.lane.b32.xlu0 %v6099_v34, %s5171_s10 }
 0x43c   :  { %v1291_v54 = vpop.f32.mrf.mxu1 }
 0x43d   :  { %v1292_v46 = vadd.f32 %v6002_v60, %v1291_v54 }
 0x444   :  { %v1293_v14 = vpop.f32.mrf.mxu1 }
 0x445   :  { %v1294_v19 = vadd.f32 %v6002_v60, %v1293_v14  ;;  %v1353_v60 = vpop.permute.xlu1 %1352 }
 0x446   :  { %v6227_v5 = vsel %vm348_vm1, %v1353_v60, 0 }
 0x447   :  { %v6172_v28 = vpack.c.bf16 %v1294_v19, %v1292_v46 }
 0x449   :  { %1652 = vrot.lane.b32.xlu0 %v6172_v28, %s5171_s10  ;;  %1358 = vrot.lane.b32.xlu2 %v6172_v28, %s5170_s30 }
 0x44d   :  { %v1333_v38 = vpop.permute.xlu1 %1332 }
 0x44e   :  { %v6239_v45 = vsel %vm348_vm1, %v1333_v38, 0 }
 0x450   :  { %v1355_v42 = vpop.permute.xlu0 %1354 }
 0x451   :  { %1356 = vrot.lane.b32.xlu2 %v6147_v43, %s5170_s30  ;;  %v6217_v17 = vsel %vm348_vm1, %v1355_v42, 0 }
 0x455   :  { %v1347_v22 = vpop.permute.xlu1 %1346 }
 0x456   :  { %v6265_v42 = vsel %vm348_vm1, %v1347_v22, 0 }
 0x458   :  { %v1335_v49 = vpop.permute.xlu0 %1334 }
 0x459   :  { %1336 = vrot.lane.b32.xlu2 %v6160_v63, %s5170_s30  ;;  %v6230_v9 = vsel %vm348_vm1, %v1335_v49, 0 }
 0x45d   :  { %v6244_v14 = vpop.permute.xlu1 %1636 }
 0x460   :  { %v1349_v41 = vpop.permute.xlu0 %1348 }
 0x461   :  { %1350 = vrot.lane.b32.xlu2 %v6162_v27, %s5170_s30  ;;  %v6253_v0 = vsel %vm348_vm1, %v1349_v41, 0 }
 0x465   :  { %v6262_v50 = vpop.permute.xlu1 %1632 }
 0x468   :  { %v1329_v61 = vpop.permute.xlu0 %1328 }
 0x469   :  { %1330 = vrot.lane.b32.xlu2 %v6188_v1, %s5170_s30  ;;  %v6268_v49 = vsel %vm348_vm1, %v1329_v61, 0 }
 0x46d   :  { %v6278_v60 = vpop.permute.xlu1 %1646 }
 0x470   :  { %v6236_v23 = vpop.permute.xlu0 %1650 }
 0x471   :  { %1344 = vrot.lane.b32.xlu2 %v6196_v32, %s5170_s30 }
 0x478   :  { %v6250_v19 = vpop.permute.xlu0 %1630 }
 0x479   :  { %1634 = vrot.lane.b32.xlu2 %v6033_v59, %s5171_s10 }
 0x481   :  { %1648 = vrot.lane.b32.xlu2 %v6110_v4, %s5171_s10 }
 0x489   :  { %1642 = vrot.lane.b32.xlu2 %v6129_v31, %s5171_s10 }
 0x4a3   :  { %v1359_v53 = vpop.permute.xlu2 %1358 }
 0x4a4   :  { %v6207_v39 = vsel %vm348_vm1, %v1359_v53, 0  ;;  %v6270_v53 = vpop.permute.xlu0 %1626 }
 0x4a5   :  { %1449 = vmatpush.bf16.xpose.msra.mxu3 %v6207_v39  ;;  %2041 = vmatpush.bf16.xpose.msrb.mxu0 %v6207_v39 }
 0x4ab   :  { %v1357_v58 = vpop.permute.xlu2 %1356 }
 0x4ac   :  { %v6212_v12 = vsel %vm348_vm1, %v1357_v58, 0 }
 0x4ad   :  { %1450 = vmatpush.bf16.xpose.msra.mxu3 %v6212_v12  ;;  %2042 = vmatpush.bf16.xpose.msrb.mxu0 %v6212_v12 }
 0x4b3   :  { %v1337_v21 = vpop.permute.xlu2 %1336 }
 0x4b4   :  { %v6220_v16 = vsel %vm348_vm1, %v1337_v21, 0  ;;  %v6299_v21 = vpop.permute.xlu1 %1628 }
 0x4b5   :  { %1423 = vmatpush.bf16.xpose.msra.mxu2 %v6220_v16  ;;  %1451 = vmatpush.bf16.xpose.msra.mxu3 %v6217_v17 }
 0x4b6   :  { %2015 = vmatpush.bf16.xpose.msrb.mxu1 %v6220_v16  ;;  %2043 = vmatpush.bf16.xpose.msrb.mxu0 %v6217_v17 }
 0x4bb   :  { %v1351_v44 = vpop.permute.xlu2 %1350  ;;  %v6288_v38 = vpop.permute.xlu0 %1652 }
 0x4bc   :  { %v6242_v54 = vsel %vm348_vm1, %v1351_v44, 0  ;;  %v6316_v22 = vpop.permute.xlu1 %1644 }
 0x4bd   :  { %1424 = vmatpush.bf16.xpose.msra.mxu2 %v6230_v9  ;;  %1452 = vmatpush.bf16.xpose.msra.mxu3 %v6227_v5 }
 0x4be   :  { %2016 = vmatpush.bf16.xpose.msrb.mxu1 %v6230_v9  ;;  %2044 = vmatpush.bf16.xpose.msrb.mxu0 %v6227_v5 }
 0x4c3   :  { %v1331_v46 = vpop.permute.xlu2 %1330 }
 0x4c4   :  { %v6256_v7 = vsel %vm348_vm1, %v1331_v46, 0 }
 0x4c5   :  { %1425 = vmatpush.bf16.xpose.msra.mxu2 %v6239_v45  ;;  %1453 = vmatpush.bf16.xpose.msra.mxu3 %v6242_v54 }
 0x4c6   :  { %2017 = vmatpush.bf16.xpose.msrb.mxu1 %v6239_v45  ;;  %2045 = vmatpush.bf16.xpose.msrb.mxu0 %v6242_v54 }
 0x4cb   :  { %v1345_v51 = vpop.permute.xlu2 %1344 }
 0x4cc   :  { %v6284_v41 = vsel %vm348_vm1, %v1345_v51, 0 }
 0x4cd   :  { %1426 = vmatpush.bf16.xpose.msra.mxu2 %v6256_v7  ;;  %1454 = vmatpush.bf16.xpose.msra.mxu3 %v6253_v0 }
 0x4ce   :  { %2018 = vmatpush.bf16.xpose.msrb.mxu1 %v6256_v7  ;;  %2046 = vmatpush.bf16.xpose.msrb.mxu0 %v6253_v0 }
 0x4d3   :  { %v6280_v58 = vpop.permute.xlu2 %1634 }
 0x4d5   :  { %1427 = vmatpush.bf16.xpose.msra.mxu2 %v6268_v49  ;;  %1455 = vmatpush.bf16.xpose.msra.mxu3 %v6265_v42 }
 0x4d6   :  { %2019 = vmatpush.bf16.xpose.msrb.mxu1 %v6268_v49  ;;  %2047 = vmatpush.bf16.xpose.msrb.mxu0 %v6265_v42 }
 0x4db   :  { %v6304_v61 = vpop.permute.xlu2 %1648 }
 0x4dc   :  { %4545 = vmatmul.msk.bf16.vlgmr.msra.gmra.mxu2 %vm348_vm1, %v6139_v40 }
 0x4dd   :  { %1670 = vmatpush.bf16.msrb.mxu2 %v6244_v14  ;;  %4561 = vmatmul.msk.bf16.vlgmr.msrb.gmra.mxu1 %vm348_vm1, %v6196_v32 }
 0x4de   :  { %2284 = vmatpush.bf16.xpose.msra.mxu1 %v6066_v52  ;;  %1456 = vmatpush.bf16.xpose.msra.mxu3 %v6284_v41 }
 0x4df   :  { %2048 = vmatpush.bf16.xpose.msrb.mxu0 %v6284_v41 }
 0x4e1   :  { %1671 = vmatpush.bf16.msrb.mxu2 %v6280_v58 }
 0x4e3   :  { %v6323_v44 = vpop.permute.xlu2 %1642 }
 0x4e4   :  { %8316 = vst [vmem:[#allocation38_spill] sm:$0xff] %v6323_v44 }
 0x4e5   :  { %1672 = vmatpush.bf16.msrb.mxu2 %v6262_v50  ;;  %4549 = vmatmul.msk.bf16.vlgmr.msra.gmra.mxu3 %vm348_vm1, %v6139_v40 }
 0x4e6   :  { %1699 = vmatpush.bf16.msrb.mxu3 %v6288_v38  ;;  %2285 = vmatpush.bf16.xpose.msra.mxu1 %v6074_v18 }
 0x4e7   :  { %2313 = vmatpush.bf16.xpose.msra.mxu0 %v6207_v39 }
 0x4e8   :  { %4565 = vmatmul.msk.bf16.vlgmr.msrb.gmra.mxu0 %vm348_vm1, %v6196_v32 }
 0x4e9   :  { %1673 = vmatpush.bf16.msrb.mxu2 %v6250_v19 }
 0x4ea   :  { %1700 = vmatpush.bf16.msrb.mxu3 %v6236_v23 }
 0x4ec   :  { %4546 = vmatmul.msk.bf16.gmra.mxu2 %vm348_vm1, %v6188_v1 }
 0x4ed   :  { %1674 = vmatpush.bf16.msrb.mxu2 %v6299_v21  ;;  %4562 = vmatmul.msk.bf16.gmra.mxu1 %vm348_vm1, %v6108_v8 }
 0x4ee   :  { %1701 = vmatpush.bf16.msrb.mxu3 %v6304_v61  ;;  %2286 = vmatpush.bf16.xpose.msra.mxu1 %v6084_v10 }
 0x4ef   :  { %2314 = vmatpush.bf16.xpose.msra.mxu0 %v6212_v12 }
 0x4f1   :  { %1675 = vmatpush.bf16.msrb.mxu2 %v6270_v53 }
 0x4f2   :  { %1702 = vmatpush.bf16.msrb.mxu3 %v6278_v60 }
 0x4f5   :  { %4550 = vmatmul.msk.bf16.gmra.mxu3 %vm348_vm1, %v6188_v1 }
 0x4f6   :  { %1703 = vmatpush.bf16.msrb.mxu3 %v6316_v22  ;;  %2287 = vmatpush.bf16.xpose.msra.mxu1 %v6220_v16 }
 0x4f7   :  { %2315 = vmatpush.bf16.xpose.msra.mxu0 %v6217_v17 }
 0x4f8   :  { %4566 = vmatmul.msk.bf16.gmra.mxu0 %vm348_vm1, %v6108_v8 }
 0x4fa   :  { %1704 = vmatpush.bf16.msrb.mxu3 %v6323_v44 }
 0x4fc   :  { %4547 = vmatmul.msk.bf16.gmra.mxu2 %vm348_vm1, %v6099_v34 }
 0x4fd   :  { %4563 = vmatmul.msk.bf16.gmra.mxu1 %vm348_vm1, %v6129_v31 }
 0x4fe   :  { %2288 = vmatpush.bf16.xpose.msra.mxu1 %v6230_v9 }
 0x4ff   :  { %2316 = vmatpush.bf16.xpose.msra.mxu0 %v6227_v5 }
 0x505   :  { %4551 = vmatmul.msk.bf16.gmra.mxu3 %vm348_vm1, %v6099_v34 }
 0x506   :  { %2289 = vmatpush.bf16.xpose.msra.mxu1 %v6239_v45 }
 0x507   :  { %2317 = vmatpush.bf16.xpose.msra.mxu0 %v6242_v54 }
 0x508   :  { %4567 = vmatmul.msk.bf16.gmra.mxu0 %vm348_vm1, %v6129_v31 }
 0x50c   :  { %4548 = vmatmul.msk.bf16.gmra.mxu2 %vm348_vm1, %v6120_v25 }
 0x50d   :  { %4564 = vmatmul.msk.bf16.gmra.mxu1 %vm348_vm1, %v6162_v27 }
 0x50e   :  { %2290 = vmatpush.bf16.xpose.msra.mxu1 %v6256_v7 }
 0x50f   :  { %2318 = vmatpush.bf16.xpose.msra.mxu0 %v6253_v0 }
 0x515   :  { %4552 = vmatmul.msk.bf16.gmra.mxu3 %vm348_vm1, %v6120_v25 }
 0x516   :  { %2291 = vmatpush.bf16.xpose.msra.mxu1 %v6268_v49 }
 0x517   :  { %2319 = vmatpush.bf16.xpose.msra.mxu0 %v6265_v42 }
 0x518   :  { %4568 = vmatmul.msk.bf16.gmra.mxu0 %vm348_vm1, %v6162_v27 }
 0x51d   :  { %4569 = vmatmul.msk.bf16.vlgmr.msra.gmra.mxu1 %vm348_vm1, %v6091_v6 }
 0x51e   :  { %2486 = vmatpush.bf16.msrb.mxu1 %v6244_v14 }
 0x51f   :  { %2320 = vmatpush.bf16.xpose.msra.mxu0 %v6284_v41 }
 0x522   :  { %2487 = vmatpush.bf16.msrb.mxu1 %v6280_v58 }
 0x526   :  { %2488 = vmatpush.bf16.msrb.mxu1 %v6262_v50 }
 0x527   :  { %2515 = vmatpush.bf16.msrb.mxu0 %v6288_v38 }
 0x528   :  { %4573 = vmatmul.msk.bf16.vlgmr.msra.gmra.mxu0 %vm348_vm1, %v6091_v6 }
 0x52a   :  { %2489 = vmatpush.bf16.msrb.mxu1 %v6250_v19 }
 0x52b   :  { %2516 = vmatpush.bf16.msrb.mxu0 %v6236_v23 }
 0x52d   :  { %4570 = vmatmul.msk.bf16.gmra.mxu1 %vm348_vm1, %v6110_v4 }
 0x52e   :  { %2490 = vmatpush.bf16.msrb.mxu1 %v6299_v21 }
 0x52f   :  { %2517 = vmatpush.bf16.msrb.mxu0 %v6304_v61 }
 0x532   :  { %2491 = vmatpush.bf16.msrb.mxu1 %v6270_v53 }
 0x533   :  { %2518 = vmatpush.bf16.msrb.mxu0 %v6278_v60 }
 0x537   :  { %2519 = vmatpush.bf16.msrb.mxu0 %v6316_v22 }
 0x538   :  { %4574 = vmatmul.msk.bf16.gmra.mxu0 %vm348_vm1, %v6110_v4 }
 0x53b   :  { %2520 = vmatpush.bf16.msrb.mxu0 %v6323_v44 }
 0x53d   :  { %4571 = vmatmul.msk.bf16.gmra.mxu1 %vm348_vm1, %v6147_v43 }
 0x548   :  { %4575 = vmatmul.msk.bf16.gmra.mxu0 %vm348_vm1, %v6147_v43 }
 0x54d   :  { %4572 = vmatmul.msk.bf16.gmra.mxu1 %vm348_vm1, %v6172_v28 }
 0x558   :  { %4576 = vmatmul.msk.bf16.gmra.mxu0 %vm348_vm1, %v6172_v28 }
 0x55f   :  { %v1429_v6 = vpop.f32.mrf.mxu2 }
 0x560   :  { %v1478_v31 = vmul.f32 0.17677669, %v1429_v6 }
 0x567   :  { %v1431_v34 = vpop.f32.mrf.mxu2 }
 0x568   :  { %v1458_v25 = vpop.f32.mrf.mxu3  ;;  %v1480_v35 = vmul.f32 0.17677669, %v1431_v34 }
 0x569   :  { %v1479_v27 = vmul.f32 0.17677669, %v1458_v25 }
 0x56b   :  { %v1494_v46 = vmax.f32 %v1478_v31, %v1479_v27 }
 0x56d   :  { %1495 = vmax.xlane.f32.xlu1 %v1494_v46 }
 0x56f   :  { %v1434_v4 = vpop.f32.mrf.mxu2 }
 0x570   :  { %v1460_v51 = vpop.f32.mrf.mxu3  ;;  %v1482_v48 = vmul.f32 0.17677669, %v1434_v4 }
 0x571   :  { %v1481_v3 = vmul.f32 0.17677669, %v1460_v51 }
 0x573   :  { %v1497_v62 = vmax.f32 %v1480_v35, %v1481_v3 }
 0x575   :  { %1498 = vmax.xlane.f32.xlu0 %v1497_v62 }
 0x577   :  { %v1436_v43 = vpop.f32.mrf.mxu2 }
 0x578   :  { %v1463_v56 = vpop.f32.mrf.mxu3  ;;  %v6383_v2 = vmul.f32 0.17677669, %v1436_v43 }
 0x579   :  { %v1483_v36 = vmul.f32 0.17677669, %v1463_v56 }
 0x57b   :  { %v1500_v26 = vmax.f32 %v1482_v48, %v1483_v36 }
 0x57d   :  { %1501 = vmax.xlane.f32.xlu2 %v1500_v26 }
 0x57f   :  { %v1439_v28 = vpop.f32.mrf.mxu2 }
 0x580   :  { %v1465_v13 = vpop.f32.mrf.mxu3  ;;  %v6389_v46 = vmul.f32 0.17677669, %v1439_v28 }
 0x581   :  { %v6385_v6 = vmul.f32 0.17677669, %v1465_v13 }
 0x583   :  { %v1503_v25 = vmax.f32 %v6383_v2, %v6385_v6 }
 0x585   :  { %1504 = vmax.xlane.f32.xlu1 %v1503_v25 }
 0x587   :  { %v1441_v51 = vpop.f32.mrf.mxu2 }
 0x588   :  { %v1468_v34 = vpop.f32.mrf.mxu3  ;;  %v1488_v4 = vmul.f32 0.17677669, %v1441_v51 }
 0x589   :  { %v6391_v62 = vmul.f32 0.17677669, %v1468_v34 }
 0x58b   :  { %v1506_v56 = vmax.f32 %v6389_v46, %v6391_v62 }
 0x58d   :  { %1507 = vmax.xlane.f32.xlu0 %v1506_v56 }
 0x58f   :  { %v1444_v13 = vpop.f32.mrf.mxu2 }
 0x590   :  { %v1470_v26 = vpop.f32.mrf.mxu3  ;;  %v6395_v37 = vmul.f32 0.17677669, %v1444_v13 }
 0x591   :  { %v1489_v43 = vmul.f32 0.17677669, %v1470_v26 }
 0x593   :  { %v1509_v57 = vmax.f32 %v1488_v4, %v1489_v43 }
 0x595   :  { %1510 = vmax.xlane.f32.xlu2 %v1509_v57 }
 0x597   :  { %v1446_v34 = vpop.f32.mrf.mxu2 }
 0x598   :  { %v1473_v47 = vpop.f32.mrf.mxu3  ;;  %v6401_v29 = vmul.f32 0.17677669, %v1446_v34 }
 0x599   :  { %v6397_v25 = vmul.f32 0.17677669, %v1473_v47 }
 0x59b   :  { %v1512_v28 = vmax.f32 %v6395_v37, %v6397_v25 }
 0x59d   :  { %1513 = vmax.xlane.f32.xlu2 %v1512_v28 }
 0x5a0   :  { %v1475_v33 = vpop.f32.mrf.mxu3 }
 0x5a1   :  { %v6403_v56 = vmul.f32 0.17677669, %v1475_v33 }
 0x5a3   :  { %v1515_v51 = vmax.f32 %v6401_v29, %v6403_v56 }
 0x5a5   :  { %1516 = vmax.xlane.f32.xlu0 %v1515_v51 }
 0x5b9   :  { %1640 = vrot.lane.b32.xlu0 %v6108_v8, %s5171_s10 }
 0x5c1   :  { %1622 = vrot.lane.b32.xlu0 %v6139_v40, %s5171_s10 }
 0x5e0   :  { %v1496_v47 = vpop.xlane.xlu1 %1495 }
 0x5e1   :  { %v1518_v57 = vsub.f32 %v1478_v31, %v1496_v47  ;;  %v1519_v26 = vsub.f32 %v1479_v27, %v1496_v47 }
 0x5e3   :  { %v1534_v13 = vmul.f32 1.442695, %v1518_v57  ;;  %v1536_v28 = vmul.f32 1.442695, %v1519_v26 }
 0x5e5   :  { %4813 = vpow2.f32 %v1534_v13 }
 0x5e6   :  { %4815 = vpow2.f32 %v1536_v28 }
 0x5e8   :  { %v1499_v34 = vpop.xlane.xlu0 %1498 }
 0x5e9   :  { %v1520_v33 = vsub.f32 %v1480_v35, %v1499_v34  ;;  %v1521_v24 = vsub.f32 %v1481_v3, %v1499_v34 }
 0x5eb   :  { %v6411_v20 = vpop.eup %4813  ;;  %v1538_v15 = vmul.f32 1.442695, %v1520_v33  ;;  %v1540_v51 = vmul.f32 1.442695, %v1521_v24 }
 0x5ec   :  { %v6413_v11 = vpop.eup %4815 }
 0x5ed   :  { %4817 = vpow2.f32 %v1538_v15  ;;  %v1566_v8 = vadd.f32 %v6413_v11, %v6411_v20 }
 0x5ee   :  { %4819 = vpow2.f32 %v1540_v51 }
 0x5ef   :  { %1567 = vadd.xlane.f32.xlu1 %v1566_v8 }
 0x5f0   :  { %v1502_v40 = vpop.xlane.xlu2 %1501 }
 0x5f1   :  { %v1522_v31 = vsub.f32 %v1482_v48, %v1502_v40  ;;  %v1523_v27 = vsub.f32 %v1483_v36, %v1502_v40 }
 0x5f3   :  { %v6417_v47 = vpop.eup %4817  ;;  %v1542_v57 = vmul.f32 1.442695, %v1522_v31  ;;  %v1544_v35 = vmul.f32 1.442695, %v1523_v27 }
 0x5f4   :  { %v6419_v3 = vpop.eup %4819 }
 0x5f5   :  { %4821 = vpow2.f32 %v1542_v57  ;;  %v1569_v24 = vadd.f32 %v6419_v3, %v6417_v47 }
 0x5f6   :  { %4823 = vpow2.f32 %v1544_v35 }
 0x5f7   :  { %1570 = vadd.xlane.f32.xlu2 %v1569_v24 }
 0x5fb   :  { %v6423_v15 = vpop.eup %4821 }
 0x5fc   :  { %v6425_v26 = vpop.eup %4823 }
 0x5fd   :  { %v1572_v48 = vadd.f32 %v6425_v26, %v6423_v15 }
 0x5ff   :  { %1573 = vadd.xlane.f32.xlu0 %v1572_v48 }
 0x600   :  { %v1508_v31 = vpop.xlane.xlu0 %1507 }
 0x608   :  { %1624 = vrot.lane.b32.xlu1 %v6188_v1, %s5171_s10  ;;  %v1511_v36 = vpop.xlane.xlu2 %1510  ;;  %v1526_v1 = vsub.f32 %v6389_v46, %v1508_v31 }
 0x609   :  { %v1528_v13 = vsub.f32 %v1488_v4, %v1511_v36  ;;  %v1529_v28 = vsub.f32 %v1489_v43, %v1511_v36  ;;  %v1527_v4 = vsub.f32 %v6391_v62, %v1508_v31  ;;  %v1505_v43 = vpop.xlane.xlu1 %1504 }
 0x60a   :  { %v1550_v27 = vmul.f32 1.442695, %v1526_v1  ;;  %v1524_v24 = vsub.f32 %v6383_v2, %v1505_v43 }
 0x60b   :  { %v1554_v34 = vmul.f32 1.442695, %v1528_v13  ;;  %v1556_v33 = vmul.f32 1.442695, %v1529_v28  ;;  %v1552_v57 = vmul.f32 1.442695, %v1527_v4 }
 0x60c   :  { %v1546_v13 = vmul.f32 1.442695, %v1524_v24 }
 0x60d   :  { %4825 = vpow2.f32 %v1554_v34 }
 0x60e   :  { %4827 = vpow2.f32 %v1556_v33 }
 0x60f   :  { %1638 = vrot.lane.b32.xlu2 %v6196_v32, %s5171_s10  ;;  %v1525_v32 = vsub.f32 %v6385_v6, %v1505_v43  ;;  %4829 = vpow2.f32 %v1550_v27 }
 0x610   :  { %4831 = vpow2.f32 %v1552_v57  ;;  %v1514_v34 = vpop.xlane.xlu2 %1513 }
 0x611   :  { %v1548_v28 = vmul.f32 1.442695, %v1525_v32  ;;  %4833 = vpow2.f32 %v1546_v13  ;;  %v1530_v2 = vsub.f32 %v6395_v37, %v1514_v34  ;;  %v1531_v6 = vsub.f32 %v6397_v25, %v1514_v34 }
 0x613   :  { %v6433_v51 = vpop.eup %4825  ;;  %4835 = vpow2.f32 %v1548_v28  ;;  %v1560_v1 = vmul.f32 1.442695, %v1531_v6 }
 0x614   :  { %v6435_v8 = vpop.eup %4827 }
 0x615   :  { %v1581_v40 = vadd.f32 %v6435_v8, %v6433_v51 }
 0x617   :  { %1582 = vadd.xlane.f32.xlu0 %v1581_v40  ;;  %v6447_v40 = vpop.eup %4829 }
 0x618   :  { %v1517_v35 = vpop.xlane.xlu0 %1516 }
 0x619   :  { %v1532_v48 = vsub.f32 %v6401_v29, %v1517_v35  ;;  %v1533_v36 = vsub.f32 %v6403_v56, %v1517_v35  ;;  %v6452_v29 = vpop.eup %4831  ;;  %v1558_v56 = vmul.f32 1.442695, %v1530_v2 }
 0x61a   :  { %v1578_v31 = vadd.f32 %v6452_v29, %v6447_v40  ;;  %v4834_v4 = vpop.eup %4833 }
 0x61b   :  { %v1562_v46 = vmul.f32 1.442695, %v1532_v48  ;;  %v1564_v33 = vmul.f32 1.442695, %v1533_v36  ;;  %v4836_v43 = vpop.eup %4835 }
 0x61c   :  { %v1575_v57 = vadd.f32 %v4836_v43, %v4834_v4 }
 0x61d   :  { %4837 = vpow2.f32 %v1562_v46 }
 0x61e   :  { %4839 = vpow2.f32 %v1564_v33 }
 0x61f   :  { %4841 = vpow2.f32 %v1558_v56 }
 0x620   :  { %4843 = vpow2.f32 %v1560_v1 }
 0x623   :  { %v6457_v37 = vpop.eup %4837 }
 0x624   :  { %v6459_v27 = vpop.eup %4839 }
 0x625   :  { %v1587_v25 = vadd.f32 %v6459_v27, %v6457_v37  ;;  %v6463_v35 = vpop.eup %4841 }
 0x626   :  { %v6465_v24 = vpop.eup %4843 }
 0x627   :  { %v1584_v32 = vadd.f32 %v6465_v24, %v6463_v35 }
 0x62b   :  { %v6445_v62 = vpop.permute.xlu0 %1640 }
 0x62c   :  { %8317 = vst [vmem:[#allocation39_spill] sm:$0xff] %v6445_v62  ;;  %1705 = vmatpush.bf16.msrb.mxu3 %v6445_v62  ;;  %2521 = vmatpush.bf16.msrb.mxu0 %v6445_v62 }
 0x632   :  { %1579 = vadd.xlane.f32.xlu1 %v1578_v31 }
 0x633   :  { %v6482_v56 = vpop.permute.xlu0 %1622 }
 0x634   :  { %8320 = vst [vmem:[#allocation42_spill] sm:$0xff] %v6482_v56 }
 0x638   :  { %1576 = vadd.xlane.f32.xlu2 %v1575_v57 }
 0x63a   :  { %1588 = vadd.xlane.f32.xlu1 %v1587_v25 }
 0x640   :  { %1585 = vadd.xlane.f32.xlu2 %v1584_v32 }
 0x662   :  { %v1568_v48 = vpop.xlane.xlu1 %1567 }
 0x663   :  { %4845 = vrcp.f32 %v1568_v48 }
 0x669   :  { %v4846_v13 = vpop.eup %4845 }
 0x66a   :  { %v1571_v36 = vpop.xlane.xlu2 %1570  ;;  %v1599_v46 = vmul.f32 %v4846_v13, %v6413_v11 }
 0x66b   :  { %4847 = vrcp.f32 %v1571_v36 }
 0x671   :  { %v4848_v28 = vpop.eup %4847 }
 0x672   :  { %v6469_v34 = vpop.permute.xlu2 %1638  ;;  %v1601_v33 = vmul.f32 %v4848_v28, %v6419_v3  ;;  %v1600_v11 = vmul.f32 %v4848_v28, %v6417_v47  ;;  %v1598_v3 = vmul.f32 %v4846_v13, %v6411_v20  ;;  %v1574_v20 = vpop.xlane.xlu0 %1573 }
 0x673   :  { %8318 = vst [vmem:[#allocation40_spill] sm:$0xff] %v6469_v34  ;;  %1706 = vmatpush.bf16.msrb.mxu3 %v6469_v34  ;;  %2522 = vmatpush.bf16.msrb.mxu0 %v6469_v34  ;;  %4849 = vrcp.f32 %v1574_v20 }
 0x674   :  { %v1615_v2 = vpack.c.bf16 %v1601_v33, %v1599_v46 }
 0x676   :  { %1707 = vmatmul.bf16.vlgmr.msrb.gmra.mxu3 %v1615_v2 }
 0x677   :  { %1769 = vmatpush.bf16.xpose.msra.mxu3 %v6207_v39  ;;  %v1614_v39 = vpack.c.bf16 %v1600_v11, %v1598_v3 }
 0x67a   :  { %v6476_v6 = vpop.permute.xlu1 %1624 }
 0x67b   :  { %8319 = vst [vmem:[#allocation41_spill] sm:$0xff] %v6476_v6  ;;  %1676 = vmatpush.bf16.msrb.mxu2 %v6476_v6  ;;  %2492 = vmatpush.bf16.msrb.mxu1 %v6476_v6 }
 0x67f   :  { %1770 = vmatpush.bf16.xpose.msra.mxu3 %v6212_v12  ;;  %1677 = vmatpush.bf16.msrb.mxu2 %v6482_v56 }
 0x680   :  { %2493 = vmatpush.bf16.msrb.mxu1 %v6482_v56 }
 0x682   :  { %1678 = vmatmul.bf16.vlgmr.msrb.gmra.mxu2 %v1614_v39 }
 0x683   :  { %1740 = vmatpush.bf16.xpose.msra.mxu2 %v6066_v52 }
 0x687   :  { %1771 = vmatpush.bf16.xpose.msra.mxu3 %v6217_v17 }
 0x68b   :  { %1741 = vmatpush.bf16.xpose.msra.mxu2 %v6074_v18  ;;  %v4850_v18 = vpop.eup %4849 }
 0x68c   :  { %v1602_v12 = vmul.f32 %v4850_v18, %v6423_v15 }
 0x68f   :  { %1772 = vmatpush.bf16.xpose.msra.mxu3 %v6227_v5 }
 0x693   :  { %1742 = vmatpush.bf16.xpose.msra.mxu2 %v6084_v10 }
 0x697   :  { %1773 = vmatpush.bf16.xpose.msra.mxu3 %v6242_v54 }
 0x69b   :  { %1743 = vmatpush.bf16.xpose.msra.mxu2 %v6220_v16  ;;  %v1603_v16 = vmul.f32 %v4850_v18, %v6425_v26 }
 0x69f   :  { %1774 = vmatpush.bf16.xpose.msra.mxu3 %v6253_v0  ;;  %v1583_v0 = vpop.xlane.xlu0 %1582 }
 0x6a3   :  { %1744 = vmatpush.bf16.xpose.msra.mxu2 %v6230_v9 }
 0x6a5   :  { %v1580_v9 = vpop.xlane.xlu1 %1579 }
 0x6a7   :  { %1775 = vmatpush.bf16.xpose.msra.mxu3 %v6265_v42 }
 0x6ab   :  { %1745 = vmatpush.bf16.xpose.msra.mxu2 %v6239_v45  ;;  %v1577_v52 = vpop.xlane.xlu2 %1576 }
 0x6ac   :  { %4851 = vrcp.f32 %v1577_v52 }
 0x6ad   :  { %4853 = vrcp.f32 %v1580_v9 }
 0x6ae   :  { %4855 = vrcp.f32 %v1583_v0 }
 0x6af   :  { %1776 = vmatpush.bf16.xpose.msra.mxu3 %v6284_v41 }
 0x6b2   :  { %v4852_v10 = vpop.eup %4851 }
 0x6b3   :  { %1746 = vmatpush.bf16.xpose.msra.mxu2 %v6256_v7  ;;  %v1604_v17 = vmul.f32 %v4852_v10, %v4834_v4  ;;  %v1605_v5 = vmul.f32 %v4852_v10, %v4836_v43  ;;  %v4854_v7 = vpop.eup %4853  ;;  %v1586_v26 = vpop.xlane.xlu2 %1585 }
 0x6b4   :  { %v4856_v42 = vpop.eup %4855  ;;  %v1606_v41 = vmul.f32 %v4854_v7, %v6447_v40  ;;  %v1607_v47 = vmul.f32 %v4854_v7, %v6452_v29  ;;  %v1589_v4 = vpop.xlane.xlu1 %1588  ;;  %4857 = vrcp.f32 %v1586_v26 }
 0x6b5   :  { %v1616_v45 = vpack.c.bf16 %v1604_v17, %v1602_v12  ;;  %v1617_v54 = vpack.c.bf16 %v1605_v5, %v1603_v16  ;;  %v1609_v15 = vmul.f32 %v4856_v42, %v6435_v8  ;;  %4859 = vrcp.f32 %v1589_v4 }
 0x6b7   :  { %1971 = vmatpush.bf16.msrb.mxu3 %v6288_v38  ;;  %1683 = vmatmul.bf16.gmra.mxu2 %v1616_v45  ;;  %v1619_v1 = vpack.c.bf16 %v1609_v15, %v1607_v47 }
 0x6b8   :  { %1712 = vmatmul.bf16.gmra.mxu3 %v1617_v54 }
 0x6bb   :  { %1972 = vmatpush.bf16.msrb.mxu3 %v6236_v23  ;;  %1747 = vmatpush.bf16.xpose.msra.mxu2 %v6268_v49  ;;  %v1608_v49 = vmul.f32 %v4856_v42, %v6433_v51  ;;  %v4858_v51 = vpop.eup %4857 }
 0x6bc   :  { %v4860_v8 = vpop.eup %4859  ;;  %v1610_v40 = vmul.f32 %v4858_v51, %v6463_v35  ;;  %v1611_v29 = vmul.f32 %v4858_v51, %v6465_v24  ;;  %v6563_v35 = vpop.f32.mrf.mxu1 }
 0x6bd   :  { %v1618_v31 = vpack.c.bf16 %v1608_v49, %v1606_v41  ;;  %v1612_v43 = vmul.f32 %v4860_v8, %v6457_v37  ;;  %v1613_v57 = vmul.f32 %v4860_v8, %v6459_v27 }
 0x6bf   :  { %1973 = vmatpush.bf16.msrb.mxu3 %v6304_v61  ;;  %v1620_v25 = vpack.c.bf16 %v1612_v43, %v1610_v40  ;;  %v1621_v32 = vpack.c.bf16 %v1613_v57, %v1611_v29 }
 0x6c3   :  { %1942 = vmatpush.bf16.msrb.mxu2 %v6244_v14  ;;  %1974 = vmatpush.bf16.msrb.mxu3 %v6278_v60 }
 0x6c4   :  { %v6571_v13 = vpop.f32.mrf.mxu1 }
 0x6c7   :  { %1943 = vmatpush.bf16.msrb.mxu2 %v6280_v58  ;;  %1975 = vmatpush.bf16.msrb.mxu3 %v6316_v22 }
 0x6c8   :  { %1688 = vmatmul.bf16.gmra.mxu2 %v1618_v31  ;;  %1717 = vmatmul.bf16.gmra.mxu3 %v1619_v1 }
 0x6cb   :  { %1944 = vmatpush.bf16.msrb.mxu2 %v6262_v50  ;;  %1976 = vmatpush.bf16.msrb.mxu3 %v6323_v44 }
 0x6cc   :  { %v6577_v2 = vpop.f32.mrf.mxu1 }
 0x6cf   :  { %1945 = vmatpush.bf16.msrb.mxu2 %v6250_v19  ;;  %1977 = vmatpush.bf16.msrb.mxu3 %v6445_v62 }
 0x6d3   :  { %1946 = vmatpush.bf16.msrb.mxu2 %v6299_v21  ;;  %1978 = vmatpush.bf16.msrb.mxu3 %v6469_v34 }
 0x6d4   :  { %v6585_v52 = vpop.f32.mrf.mxu1 }
 0x6d7   :  { %1947 = vmatpush.bf16.msrb.mxu2 %v6270_v53 }
 0x6d8   :  { %1693 = vmatmul.bf16.gmra.mxu2 %v1620_v25  ;;  %1722 = vmatmul.bf16.gmra.mxu3 %v1621_v32 }
 0x6db   :  { %1948 = vmatpush.bf16.msrb.mxu2 %v6476_v6 }
 0x6dc   :  { %v6595_v16 = vpop.f32.mrf.mxu1 }
 0x6df   :  { %1949 = vmatpush.bf16.msrb.mxu2 %v6482_v56 }
 0x6e4   :  { %v6601_v0 = vpop.f32.mrf.mxu1 }
 0x6e8   :  { %4553 = vmatmul.msk.bf16.vlgmr.msra.gmra.mxu2 %vm348_vm1, %v6160_v63  ;;  %4557 = vmatmul.msk.bf16.vlgmr.msra.gmra.mxu3 %vm348_vm1, %v6160_v63 }
 0x6e9   :  { %2214 = vmatpush.bf16.msra.mxu2 %v6244_v14  ;;  %2243 = vmatpush.bf16.msra.mxu3 %v6288_v38 }
 0x6ec   :  { %v6609_v47 = vpop.f32.mrf.mxu1 }
 0x6ed   :  { %2215 = vmatpush.bf16.msra.mxu2 %v6280_v58  ;;  %2244 = vmatpush.bf16.msra.mxu3 %v6236_v23 }
 0x6f1   :  { %2216 = vmatpush.bf16.msra.mxu2 %v6262_v50  ;;  %2245 = vmatpush.bf16.msra.mxu3 %v6304_v61 }
 0x6f4   :  { %v6623_v43 = vpop.f32.mrf.mxu1 }
 0x6f5   :  { %2217 = vmatpush.bf16.msra.mxu2 %v6250_v19  ;;  %2246 = vmatpush.bf16.msra.mxu3 %v6278_v60 }
 0x6f8   :  { %4554 = vmatmul.msk.bf16.gmra.mxu2 %vm348_vm1, %v6021_v55  ;;  %4558 = vmatmul.msk.bf16.gmra.mxu3 %vm348_vm1, %v6021_v55  ;;  %v6561_v55 = vpop.f32.mrf.mxu0 }
 0x6f9   :  { %2218 = vmatpush.bf16.msra.mxu2 %v6299_v21  ;;  %2247 = vmatpush.bf16.msra.mxu3 %v6316_v22  ;;  %v1708_v63 = vpop.f32.mrf.mxu3 }
 0x6fd   :  { %2219 = vmatpush.bf16.msra.mxu2 %v6270_v53  ;;  %2248 = vmatpush.bf16.msra.mxu3 %v6323_v44 }
 0x700   :  { %v6569_v36 = vpop.f32.mrf.mxu0 }
 0x701   :  { %2220 = vmatpush.bf16.msra.mxu2 %v6476_v6  ;;  %2249 = vmatpush.bf16.msra.mxu3 %v6445_v62  ;;  %v6565_v24 = vpop.f32.mrf.mxu3 }
 0x702   :  { %8322 = vst [vmem:[#allocation44_spill] sm:$0xff] %v6565_v24 }
 0x705   :  { %2221 = vmatpush.bf16.msra.mxu2 %v6482_v56  ;;  %2250 = vmatpush.bf16.msra.mxu3 %v6469_v34  ;;  %v1679_v37 = vpop.f32.mrf.mxu2 }
 0x706   :  { %v6551_v27 = vadd.f32 %v1708_v63, %v1679_v37 }
 0x708   :  { %8321 = vst [vmem:[#allocation43_spill] sm:$0xff] %v6551_v27  ;;  %4555 = vmatmul.msk.bf16.gmra.mxu2 %vm348_vm1, %v6033_v59  ;;  %4559 = vmatmul.msk.bf16.gmra.mxu3 %vm348_vm1, %v6033_v59  ;;  %v6575_v33 = vpop.f32.mrf.mxu0 }
 0x70d   :  { %v6567_v48 = vpop.f32.mrf.mxu2 }
 0x70e   :  { %8323 = vst [vmem:[#allocation45_spill] sm:$0xff] %v6567_v48 }
 0x710   :  { %v6583_v3 = vpop.f32.mrf.mxu0 }
 0x718   :  { %4556 = vmatmul.msk.bf16.gmra.mxu2 %vm348_vm1, %v6010_v30  ;;  %4560 = vmatmul.msk.bf16.gmra.mxu3 %vm348_vm1, %v6010_v30  ;;  %v6593_v17 = vpop.f32.mrf.mxu0 }
 0x720   :  { %v6599_v54 = vpop.f32.mrf.mxu0 }
 0x728   :  { %v6607_v41 = vpop.f32.mrf.mxu0 }
 0x730   :  { %v6617_v4 = vpop.f32.mrf.mxu0 }
 0x73a   :  { %v1684_v28 = vpop.f32.mrf.mxu2 }
 0x73b   :  { %v1713_v59 = vpop.f32.mrf.mxu3 }
 0x73c   :  { %v6573_v46 = vadd.f32 %v1713_v59, %v1684_v28  ;;  %v2322_v28 = vpop.f32.mrf.mxu0 }
 0x73e   :  { %8324 = vst [vmem:[#allocation46_spill] sm:$0xff] %v6573_v46 }
 0x742   :  { %v6579_v30 = vpop.f32.mrf.mxu2 }
 0x743   :  { %8325 = vst [vmem:[#allocation47_spill] sm:$0xff] %v6579_v30  ;;  %v6581_v11 = vpop.f32.mrf.mxu3 }
 0x744   :  { %8326 = vst [vmem:[#allocation48_spill] sm:$0xff] %v6581_v11 }
 0x74b   :  { %v1689_v39 = vpop.f32.mrf.mxu2  ;;  %v1718_v20 = vpop.f32.mrf.mxu3 }
 0x74c   :  { %v6587_v18 = vadd.f32 %v1718_v20, %v1689_v39  ;;  %v2293_v39 = vpop.f32.mrf.mxu1 }
 0x74e   :  { %8327 = vst [vmem:[#allocation49_spill] sm:$0xff] %v6587_v18 }
 0x753   :  { %v6589_v10 = vpop.f32.mrf.mxu2  ;;  %v6591_v12 = vpop.f32.mrf.mxu3 }
 0x754   :  { %8328 = vst [vmem:[#allocation50_spill] sm:$0xff] %v6589_v10 }
 0x755   :  { %8329 = vst [vmem:[#allocation51_spill] sm:$0xff] %v6591_v12  ;;  %v6659_v12 = vmul.f32 0.17677669, %v2293_v39 }
 0x75b   :  { %v1694_v5 = vpop.f32.mrf.mxu2  ;;  %v1723_v9 = vpop.f32.mrf.mxu3 }
 0x75c   :  { %v6597_v45 = vadd.f32 %v1723_v9, %v1694_v5 }
 0x75e   :  { %8330 = vst [vmem:[#allocation52_spill] sm:$0xff] %v6597_v45 }
 0x763   :  { %v6603_v7 = vpop.f32.mrf.mxu2  ;;  %v6605_v42 = vpop.f32.mrf.mxu3 }
 0x764   :  { %8331 = vst [vmem:[#allocation53_spill] sm:$0xff] %v6603_v7 }
 0x765   :  { %8332 = vst [vmem:[#allocation54_spill] sm:$0xff] %v6605_v42 }
 0x76b   :  { %v1749_v49 = vpop.f32.mrf.mxu2  ;;  %v1778_v15 = vpop.f32.mrf.mxu3 }
 0x76c   :  { %v6611_v26 = vmul.f32 0.17677669, %v1749_v49  ;;  %v6613_v31 = vmul.f32 0.17677669, %v1778_v15 }
 0x76e   :  { %v1814_v1 = vmax.f32 %v6611_v26, %v6613_v31 }
 0x770   :  { %1815 = vmax.xlane.f32.xlu0 %v1814_v1  ;;  %v2324_v1 = vpop.f32.mrf.mxu0 }
 0x773   :  { %v1751_v51 = vpop.f32.mrf.mxu2  ;;  %v1780_v8 = vpop.f32.mrf.mxu3 }
 0x774   :  { %v6619_v40 = vmul.f32 0.17677669, %v1751_v51  ;;  %v6621_v29 = vmul.f32 0.17677669, %v1780_v8  ;;  %v2295_v51 = vpop.f32.mrf.mxu1  ;;  %v6639_v8 = vmul.f32 0.17677669, %v2324_v1 }
 0x776   :  { %v1817_v57 = vmax.f32 %v6619_v40, %v6621_v29 }
 0x778   :  { %1818 = vmax.xlane.f32.xlu2 %v1817_v57 }
 0x77b   :  { %v1754_v25 = vpop.f32.mrf.mxu2  ;;  %v1783_v32 = vpop.f32.mrf.mxu3 }
 0x77c   :  { %v6627_v63 = vmul.f32 0.17677669, %v1754_v25  ;;  %v6629_v37 = vmul.f32 0.17677669, %v1783_v32  ;;  %v6641_v32 = vmul.f32 0.17677669, %v2295_v51  ;;  %v2298_v46 = vpop.f32.mrf.mxu1 }
 0x77e   :  { %v1820_v59 = vmax.f32 %v6627_v63, %v6629_v37 }
 0x780   :  { %1821 = vmax.xlane.f32.xlu1 %v1820_v59 }
 0x783   :  { %v1756_v20 = vpop.f32.mrf.mxu2  ;;  %v1785_v5 = vpop.f32.mrf.mxu3 }
 0x784   :  { %v6633_v9 = vmul.f32 0.17677669, %v1756_v20  ;;  %v6635_v49 = vmul.f32 0.17677669, %v1785_v5  ;;  %v2361_v20 = vmax.f32 %v6641_v32, %v6639_v8 }
 0x786   :  { %v1823_v15 = vmax.f32 %v6633_v9, %v6635_v49 }
 0x788   :  { %1824 = vmax.xlane.f32.xlu0 %v1823_v15 }
 0x78b   :  { %v1759_v57 = vpop.f32.mrf.mxu2  ;;  %v1788_v25 = vpop.f32.mrf.mxu3 }
 0x78c   :  { %v6643_v45 = vmul.f32 0.17677669, %v1759_v57  ;;  %v6645_v59 = vmul.f32 0.17677669, %v1788_v25  ;;  %v6657_v57 = vmul.f32 0.17677669, %v2322_v28 }
 0x78d   :  { %v6670_v28 = vmul.f32 0.17677669, %v6561_v55  ;;  %v2300_v55 = vpop.f32.mrf.mxu1 }
 0x78e   :  { %v1826_v5 = vmax.f32 %v6643_v45, %v6645_v59  ;;  %v6685_v24 = vmul.f32 0.17677669, %v2300_v55 }
 0x790   :  { %2362 = vmax.xlane.f32.xlu0 %v2361_v20  ;;  %1827 = vmax.xlane.f32.xlu2 %v1826_v5  ;;  %v2327_v5 = vpop.f32.mrf.mxu0 }
 0x793   :  { %v1761_v15 = vpop.f32.mrf.mxu2  ;;  %v1790_v42 = vpop.f32.mrf.mxu3 }
 0x794   :  { %v6651_v1 = vmul.f32 0.17677669, %v1761_v15  ;;  %v6653_v7 = vmul.f32 0.17677669, %v1790_v42  ;;  %v2358_v15 = vmax.f32 %v6659_v12, %v6657_v57 }
 0x796   :  { %v1829_v51 = vmax.f32 %v6651_v1, %v6653_v7 }
 0x798   :  { %1830 = vmax.xlane.f32.xlu1 %v1829_v51 }
 0x79b   :  { %v1764_v25 = vpop.f32.mrf.mxu2  ;;  %v1793_v18 = vpop.f32.mrf.mxu3 }
 0x79c   :  { %v6661_v10 = vmul.f32 0.17677669, %v1764_v25  ;;  %v6663_v20 = vmul.f32 0.17677669, %v1793_v18  ;;  %v6673_v25 = vmul.f32 0.17677669, %v6563_v35 }
 0x79e   :  { %v1832_v42 = vmax.f32 %v6661_v10, %v6663_v20  ;;  %v2086_v30 = vmax.f32 %v6673_v25, %v6670_v28 }
 0x7a0   :  { %2359 = vmax.xlane.f32.xlu1 %v2358_v15  ;;  %1833 = vmax.xlane.f32.xlu0 %v1832_v42  ;;  %v2329_v15 = vpop.f32.mrf.mxu0 }
 0x7a1   :  { %v6683_v42 = vmul.f32 0.17677669, %v2329_v15 }
 0x7a3   :  { %v1766_v51 = vpop.f32.mrf.mxu2  ;;  %v1795_v39 = vpop.f32.mrf.mxu3  ;;  %v2367_v35 = vmax.f32 %v6685_v24, %v6683_v42 }
 0x7a4   :  { %v6675_v18 = vmul.f32 0.17677669, %v1766_v51  ;;  %v6677_v11 = vmul.f32 0.17677669, %v1795_v39  ;;  %v6690_v51 = vmul.f32 0.17677669, %v6575_v33 }
 0x7a5   :  { %v6693_v39 = vmul.f32 0.17677669, %v6577_v2 }
 0x7a6   :  { %v1835_v27 = vmax.f32 %v6675_v18, %v6677_v11 }
 0x7a7   :  { %v2092_v48 = vmax.f32 %v6693_v39, %v6690_v51 }
 0x7a8   :  { %2087 = vmax.xlane.f32.xlu0 %v2086_v30  ;;  %1836 = vmax.xlane.f32.xlu2 %v1835_v27 }
 0x7b0   :  { %2368 = vmax.xlane.f32.xlu0 %v2367_v35 }
 0x7b8   :  { %2093 = vmax.xlane.f32.xlu0 %v2092_v48 }
 0x7e3   :  { %v1816_v27 = vpop.xlane.xlu0 %1815 }
 0x7e4   :  { %v1838_v30 = vsub.f32 %v6611_v26, %v1816_v27  ;;  %v1839_v15 = vsub.f32 %v6613_v31, %v1816_v27 }
 0x7e6   :  { %v1854_v55 = vmul.f32 1.442695, %v1838_v30  ;;  %v1856_v34 = vmul.f32 1.442695, %v1839_v15 }
 0x7e8   :  { %4861 = vpow2.f32 %v1854_v55 }
 0x7e9   :  { %4863 = vpow2.f32 %v1856_v34  ;;  %v6708_v34 = vmul.f32 0.17677669, %v6569_v36 }
 0x7eb   :  { %v1819_v35 = vpop.xlane.xlu2 %1818 }
 0x7ec   :  { %v1840_v33 = vsub.f32 %v6619_v40, %v1819_v35  ;;  %v1841_v56 = vsub.f32 %v6621_v29, %v1819_v35  ;;  %v6729_v35 = vmul.f32 0.17677669, %v2298_v46 }
 0x7ee   :  { %v6701_v2 = vpop.eup %4861  ;;  %v1858_v62 = vmul.f32 1.442695, %v1840_v33  ;;  %v1860_v6 = vmul.f32 1.442695, %v1841_v56  ;;  %v6715_v56 = vmul.f32 0.17677669, %v6571_v13 }
 0x7ef   :  { %v6703_v44 = vpop.eup %4863 }
 0x7f0   :  { %4865 = vpow2.f32 %v1858_v62  ;;  %v1886_v48 = vadd.f32 %v6703_v44, %v6701_v2  ;;  %v2089_v36 = vmax.f32 %v6715_v56, %v6708_v34 }
 0x7f1   :  { %4867 = vpow2.f32 %v1860_v6 }
 0x7f2   :  { %1887 = vadd.xlane.f32.xlu2 %v1886_v48 }
 0x7f3   :  { %v1822_v26 = vpop.xlane.xlu1 %1821 }
 0x7f4   :  { %v1842_v31 = vsub.f32 %v6627_v63, %v1822_v26  ;;  %v1843_v40 = vsub.f32 %v6629_v37, %v1822_v26  ;;  %v6723_v37 = vmul.f32 0.17677669, %v2327_v5 }
 0x7f6   :  { %v6712_v29 = vpop.eup %4865  ;;  %v1862_v27 = vmul.f32 1.442695, %v1842_v31  ;;  %v1864_v62 = vmul.f32 1.442695, %v1843_v40  ;;  %v2364_v31 = vmax.f32 %v6729_v35, %v6723_v37 }
 0x7f7   :  { %v6717_v30 = vpop.eup %4867 }
 0x7f8   :  { %4869 = vpow2.f32 %v1862_v27  ;;  %v1889_v6 = vadd.f32 %v6717_v30, %v6712_v29 }
 0x7f9   :  { %4871 = vpow2.f32 %v1864_v62  ;;  %v6745_v62 = vmul.f32 0.17677669, %v6585_v52 }
 0x7fa   :  { %1890 = vadd.xlane.f32.xlu1 %v1889_v6  ;;  %2090 = vmax.xlane.f32.xlu2 %v2089_v36 }
 0x7fb   :  { %v1825_v63 = vpop.xlane.xlu0 %1824 }
 0x7fc   :  { %v1844_v13 = vsub.f32 %v6633_v9, %v1825_v63  ;;  %v1845_v15 = vsub.f32 %v6635_v49, %v1825_v63  ;;  %v6738_v49 = vmul.f32 0.17677669, %v6583_v3 }
 0x7fe   :  { %v6727_v55 = vpop.eup %4869  ;;  %v1866_v33 = vmul.f32 1.442695, %v1844_v13  ;;  %v1868_v48 = vmul.f32 1.442695, %v1845_v15  ;;  %v2095_v3 = vmax.f32 %v6745_v62, %v6738_v49  ;;  %v6754_v15 = vmul.f32 0.17677669, %v6593_v17 }
 0x7ff   :  { %v6731_v26 = vpop.eup %4871 }
 0x800   :  { %4873 = vpow2.f32 %v1866_v33  ;;  %v1892_v5 = vadd.f32 %v6731_v26, %v6727_v55 }
 0x801   :  { %4875 = vpow2.f32 %v1868_v48  ;;  %v6759_v48 = vmul.f32 0.17677669, %v6595_v16 }
 0x802   :  { %2365 = vmax.xlane.f32.xlu1 %v2364_v31  ;;  %1893 = vadd.xlane.f32.xlu2 %v1892_v5 }
 0x803   :  { %v1828_v9 = vpop.xlane.xlu2 %1827  ;;  %v2098_v17 = vmax.f32 %v6759_v48, %v6754_v15 }
 0x804   :  { %v1846_v46 = vsub.f32 %v6643_v45, %v1828_v9  ;;  %v1847_v40 = vsub.f32 %v6645_v59, %v1828_v9  ;;  %v2363_v45 = vpop.xlane.xlu0 %2362 }
 0x805   :  { %v2384_v31 = vsub.f32 %v6641_v32, %v2363_v45 }
 0x806   :  { %v6742_v27 = vpop.eup %4873  ;;  %v1870_v6 = vmul.f32 1.442695, %v1846_v46  ;;  %v1872_v63 = vmul.f32 1.442695, %v1847_v40  ;;  %v2385_v46 = vsub.f32 %v6639_v8, %v2363_v45 }
 0x807   :  { %v6747_v36 = vpop.eup %4875 }
 0x808   :  { %v1895_v13 = vadd.f32 %v6747_v36, %v6742_v27  ;;  %4877 = vpow2.f32 %v1870_v6 }
 0x809   :  { %4879 = vpow2.f32 %v1872_v63 }
 0x80a   :  { %1896 = vadd.xlane.f32.xlu1 %v1895_v13  ;;  %2096 = vmax.xlane.f32.xlu2 %v2095_v3  ;;  %v6774_v3 = vmul.f32 0.17677669, %v6599_v54 }
 0x80b   :  { %v1831_v59 = vpop.xlane.xlu1 %1830 }
 0x80c   :  { %v1848_v52 = vsub.f32 %v6651_v1, %v1831_v59  ;;  %v1849_v33 = vsub.f32 %v6653_v7, %v1831_v59  ;;  %v2402_v1 = vmul.f32 1.442695, %v2384_v31  ;;  %v2404_v7 = vmul.f32 1.442695, %v2385_v46 }
 0x80e   :  { %v1874_v5 = vmul.f32 1.442695, %v1848_v52  ;;  %v1876_v9 = vmul.f32 1.442695, %v1849_v33  ;;  %v6763_v40 = vpop.eup %4877 }
 0x80f   :  { %v6767_v6 = vpop.eup %4879 }
 0x810   :  { %4881 = vpow2.f32 %v1874_v5  ;;  %v1898_v16 = vadd.f32 %v6767_v6, %v6763_v40 }
 0x811   :  { %4883 = vpow2.f32 %v1876_v9  ;;  %v6783_v9 = vmul.f32 0.17677669, %v6601_v0 }
 0x812   :  { %2099 = vmax.xlane.f32.xlu2 %v2098_v17  ;;  %1899 = vadd.xlane.f32.xlu1 %v1898_v16  ;;  %4885 = vpow2.f32 %v2402_v1 }
 0x813   :  { %v2360_v32 = vpop.xlane.xlu1 %2359  ;;  %v1834_v63 = vpop.xlane.xlu0 %1833  ;;  %4887 = vpow2.f32 %v2404_v7 }
 0x814   :  { %v2382_v8 = vsub.f32 %v6659_v12, %v2360_v32  ;;  %v2383_v13 = vsub.f32 %v6657_v57, %v2360_v32  ;;  %v1850_v33 = vsub.f32 %v6661_v10, %v1834_v63  ;;  %v1851_v5 = vsub.f32 %v6663_v20, %v1834_v63 }
 0x815   :  { %v2101_v57 = vmax.f32 %v6783_v9, %v6774_v3 }
 0x816   :  { %v6776_v45 = vpop.eup %4881  ;;  %v2398_v59 = vmul.f32 1.442695, %v2382_v8  ;;  %v2400_v52 = vmul.f32 1.442695, %v2383_v13  ;;  %v1878_v54 = vmul.f32 1.442695, %v1850_v33 }
 0x817   :  { %v6779_v31 = vpop.eup %4883  ;;  %v1880_v46 = vmul.f32 1.442695, %v1851_v5 }
 0x818   :  { %4889 = vpow2.f32 %v2398_v59  ;;  %v1901_v12 = vadd.f32 %v6779_v31, %v6776_v45  ;;  %v6789_v1 = vpop.eup %4885 }
 0x819   :  { %4891 = vpow2.f32 %v2400_v52  ;;  %v6793_v16 = vpop.eup %4887 }
 0x81a   :  { %1902 = vadd.xlane.f32.xlu0 %v1901_v12  ;;  %2102 = vmax.xlane.f32.xlu1 %v2101_v57  ;;  %4893 = vpow2.f32 %v1878_v54 }
 0x81b   :  { %v2088_v10 = vpop.xlane.xlu0 %2087  ;;  %v1837_v17 = vpop.xlane.xlu2 %1836  ;;  %4895 = vpow2.f32 %v1880_v46 }
 0x81c   :  { %v1852_v20 = vsub.f32 %v6675_v18, %v1837_v17  ;;  %v1853_v0 = vsub.f32 %v6677_v11, %v1837_v17  ;;  %v2110_v32 = vsub.f32 %v6673_v25, %v2088_v10  ;;  %v2111_v13 = vsub.f32 %v6670_v28, %v2088_v10 }
 0x81d   :  { %v2433_v11 = vadd.f32 %v6793_v16, %v6789_v1  ;;  %v6810_v28 = vmul.f32 0.17677669, %v6617_v4  ;;  %v6817_v10 = vmul.f32 0.17677669, %v6623_v43 }
 0x81e   :  { %v6795_v7 = vpop.eup %4889  ;;  %v1882_v63 = vmul.f32 1.442695, %v1852_v20  ;;  %v1884_v59 = vmul.f32 1.442695, %v1853_v0  ;;  %v2126_v18 = vmul.f32 1.442695, %v2110_v32 }
 0x81f   :  { %v6798_v8 = vpop.eup %4891  ;;  %v2128_v33 = vmul.f32 1.442695, %v2111_v13  ;;  %v2107_v4 = vmax.f32 %v6817_v10, %v6810_v28  ;;  %v6835_v13 = vmul.f32 0.17677669, %v6609_v47 }
 0x820   :  { %v2430_v52 = vadd.f32 %v6798_v8, %v6795_v7  ;;  %4897 = vpow2.f32 %v1882_v63  ;;  %v6805_v25 = vpop.eup %4893  ;;  %v6832_v63 = vmul.f32 0.17677669, %v6607_v41 }
 0x821   :  { %4899 = vpow2.f32 %v1884_v59  ;;  %v6807_v12 = vpop.eup %4895 }
 0x822   :  { %2434 = vadd.xlane.f32.xlu0 %v2433_v11  ;;  %2431 = vadd.xlane.f32.xlu1 %v2430_v52  ;;  %4901 = vpow2.f32 %v2126_v18  ;;  %v1904_v17 = vadd.f32 %v6807_v12, %v6805_v25  ;;  %v2104_v52 = vmax.f32 %v6835_v13, %v6832_v63 }
 0x823   :  { %v2369_v5 = vpop.xlane.xlu0 %2368  ;;  %4903 = vpow2.f32 %v2128_v33 }
 0x824   :  { %v2388_v54 = vsub.f32 %v6685_v24, %v2369_v5  ;;  %v2389_v57 = vsub.f32 %v6683_v42, %v2369_v5 }
 0x826   :  { %v6814_v46 = vpop.eup %4897  ;;  %v2410_v0 = vmul.f32 1.442695, %v2388_v54  ;;  %v2412_v32 = vmul.f32 1.442695, %v2389_v57 }
 0x827   :  { %v6821_v20 = vpop.eup %4899 }
 0x828   :  { %v1907_v24 = vadd.f32 %v6821_v20, %v6814_v46  ;;  %v6827_v42 = vpop.eup %4901  ;;  %4905 = vpow2.f32 %v2410_v0 }
 0x829   :  { %v6829_v43 = vpop.eup %4903  ;;  %4907 = vpow2.f32 %v2412_v32 }
 0x82a   :  { %1905 = vadd.xlane.f32.xlu0 %v1904_v17  ;;  %2108 = vmax.xlane.f32.xlu1 %v2107_v4  ;;  %v2158_v59 = vadd.f32 %v6829_v43, %v6827_v42 }
 0x82b   :  { %1908 = vadd.xlane.f32.xlu2 %v1907_v24  ;;  %v2094_v5 = vpop.xlane.xlu0 %2093 }
 0x82c   :  { %v2114_v0 = vsub.f32 %v6693_v39, %v2094_v5  ;;  %v2115_v4 = vsub.f32 %v6690_v51, %v2094_v5 }
 0x82e   :  { %v6841_v11 = vpop.eup %4905 }
 0x82f   :  { %8333 = vst [vmem:[#allocation55_spill] sm:$0xff] %v6841_v11  ;;  %v6843_v18 = vpop.eup %4907 }
 0x830   :  { %v2439_v41 = vadd.f32 %v6843_v18, %v6841_v11  ;;  %v2136_v11 = vmul.f32 1.442695, %v2115_v4 }
 0x832   :  { %2159 = vadd.xlane.f32.xlu0 %v2158_v59 }
 0x833   :  { %2105 = vmax.xlane.f32.xlu2 %v2104_v52 }
 0x83a   :  { %2440 = vadd.xlane.f32.xlu0 %v2439_v41  ;;  %v2134_v41 = vmul.f32 1.442695, %v2114_v0 }
 0x865   :  { %v1888_v33 = vpop.xlane.xlu2 %1887 }
 0x866   :  { %4909 = vrcp.f32 %v1888_v33 }
 0x86c   :  { %v4910_v59 = vpop.eup %4909 }
 0x86d   :  { %v1891_v47 = vpop.xlane.xlu1 %1890  ;;  %v2091_v54 = vpop.xlane.xlu2 %2090  ;;  %v1918_v33 = vmul.f32 %v4910_v59, %v6701_v2 }
 0x86e   :  { %4911 = vrcp.f32 %v1891_v47  ;;  %v2112_v57 = vsub.f32 %v6715_v56, %v2091_v54  ;;  %v2113_v17 = vsub.f32 %v6708_v34, %v2091_v54  ;;  %v1919_v47 = vmul.f32 %v4910_v59, %v6703_v44 }
 0x870   :  { %v2130_v24 = vmul.f32 1.442695, %v2112_v57  ;;  %v2132_v32 = vmul.f32 1.442695, %v2113_v17 }
 0x872   :  { %4913 = vpow2.f32 %v2130_v24 }
 0x873   :  { %4915 = vpow2.f32 %v2132_v32 }
 0x874   :  { %v4912_v52 = vpop.eup %4911  ;;  %4917 = vpow2.f32 %v2134_v41 }
 0x875   :  { %v1920_v56 = vmul.f32 %v4912_v52, %v6712_v29  ;;  %v1921_v34 = vmul.f32 %v4912_v52, %v6717_v30  ;;  %v2366_v54 = vpop.xlane.xlu1 %2365  ;;  %v1894_v39 = vpop.xlane.xlu2 %1893  ;;  %4919 = vpow2.f32 %v2136_v11 }
 0x876   :  { %v2386_v51 = vsub.f32 %v6729_v35, %v2366_v54  ;;  %v2387_v5 = vsub.f32 %v6723_v37, %v2366_v54  ;;  %v2332_v54 = vpop.f32.mrf.mxu0 }
 0x877   :  { %v1934_v57 = vpack.c.bf16 %v1920_v56, %v1918_v33  ;;  %v1935_v17 = vpack.c.bf16 %v1921_v34, %v1919_v47 }
 0x878   :  { %v6857_v24 = vpop.eup %4913  ;;  %v2406_v0 = vmul.f32 1.442695, %v2386_v51  ;;  %v2408_v4 = vmul.f32 1.442695, %v2387_v5 }
 0x879   :  { %v6859_v2 = vpop.eup %4915  ;;  %1950 = vmatmul.bf16.vlgmr.msrb.gmra.mxu2 %v1934_v57  ;;  %1979 = vmatmul.bf16.vlgmr.msrb.gmra.mxu3 %v1935_v17 }
 0x87a   :  { %4921 = vpow2.f32 %v2406_v0  ;;  %4716 = vmatpush.bf16.msrb.mxu2 %v6244_v14  ;;  %4724 = vmatpush.bf16.msrb.mxu3 %v6288_v38  ;;  %v2161_v44 = vadd.f32 %v6859_v2, %v6857_v24  ;;  %v6865_v37 = vpop.eup %4917 }
 0x87b   :  { %4923 = vpow2.f32 %v2408_v4  ;;  %v6871_v38 = vpop.eup %4919 }
 0x87c   :  { %4925 = vrcp.f32 %v1894_v39  ;;  %2162 = vadd.xlane.f32.xlu2 %v2161_v44 }
 0x87d   :  { %v1897_v29 = vpop.xlane.xlu1 %1896  ;;  %v2097_v30 = vpop.xlane.xlu2 %2096 }
 0x87e   :  { %4927 = vrcp.f32 %v1897_v29  ;;  %4717 = vmatpush.bf16.msrb.mxu2 %v6280_v58  ;;  %4725 = vmatpush.bf16.msrb.mxu3 %v6236_v23  ;;  %v2116_v35 = vsub.f32 %v6745_v62, %v2097_v30  ;;  %v2117_v14 = vsub.f32 %v6738_v49, %v2097_v30  ;;  %v2164_v58 = vadd.f32 %v6871_v38, %v6865_v37  ;;  %v2334_v30 = vpop.f32.mrf.mxu0 }
 0x880   :  { %v6873_v11 = vpop.eup %4921  ;;  %v2138_v32 = vmul.f32 1.442695, %v2116_v35  ;;  %v2140_v59 = vmul.f32 1.442695, %v2117_v14 }
 0x881   :  { %v6875_v52 = vpop.eup %4923 }
 0x882   :  { %v4926_v41 = vpop.eup %4925  ;;  %4929 = vpow2.f32 %v2138_v32  ;;  %4718 = vmatpush.bf16.msrb.mxu2 %v6262_v50  ;;  %4726 = vmatpush.bf16.msrb.mxu3 %v6304_v61  ;;  %v2436_v23 = vadd.f32 %v6875_v52, %v6873_v11  ;;  %v8335_v32 = vld [vmem:[#allocation41_spill] sm:$0xff] }
 0x883   :  { %4931 = vpow2.f32 %v2140_v59  ;;  %v1922_v33 = vmul.f32 %v4926_v41, %v6727_v55  ;;  %v1923_v56 = vmul.f32 %v4926_v41, %v6731_v26  ;;  %v2303_v26 = vpop.f32.mrf.mxu1  ;;  %v8336_v59 = vld [vmem:[#allocation39_spill] sm:$0xff] }
 0x884   :  { %v4928_v49 = vpop.eup %4927  ;;  %2437 = vadd.xlane.f32.xlu1 %v2436_v23  ;;  %2165 = vadd.xlane.f32.xlu2 %v2164_v58 }
 0x885   :  { %v2100_v62 = vpop.xlane.xlu2 %2099  ;;  %v1924_v47 = vmul.f32 %v4928_v49, %v6742_v27  ;;  %v1925_v50 = vmul.f32 %v4928_v49, %v6747_v36  ;;  %v1900_v39 = vpop.xlane.xlu1 %1899  ;;  %v6899_v36 = vmul.f32 0.17677669, %v2332_v54 }
 0x886   :  { %4719 = vmatpush.bf16.msrb.mxu2 %v6250_v19  ;;  %4727 = vmatpush.bf16.msrb.mxu3 %v6278_v60  ;;  %v2118_v61 = vsub.f32 %v6759_v48, %v2100_v62  ;;  %v2119_v34 = vsub.f32 %v6754_v15, %v2100_v62  ;;  %4933 = vrcp.f32 %v1900_v39  ;;  %v8334_v15 = vld [vmem:[#allocation38_spill] sm:$0xff] }
 0x887   :  { %v1936_v51 = vpack.c.bf16 %v1924_v47, %v1922_v33  ;;  %v1937_v5 = vpack.c.bf16 %v1925_v50, %v1923_v56  ;;  %v6921_v47 = vmul.f32 0.17677669, %v2334_v30  ;;  %v8337_v56 = vld [vmem:[#allocation42_spill] sm:$0xff]  ;;  %v8338_v50 = vld [vmem:[#allocation40_spill] sm:$0xff] }
 0x888   :  { %v6891_v57 = vpop.eup %4929  ;;  %v2142_v55 = vmul.f32 1.442695, %v2118_v61  ;;  %v2144_v27 = vmul.f32 1.442695, %v2119_v34 }
 0x889   :  { %v6893_v17 = vpop.eup %4931  ;;  %1955 = vmatmul.bf16.gmra.mxu2 %v1936_v51  ;;  %1984 = vmatmul.bf16.gmra.mxu3 %v1937_v5 }
 0x88a   :  { %4935 = vpow2.f32 %v2142_v55  ;;  %4720 = vmatpush.bf16.msrb.mxu2 %v6299_v21  ;;  %4728 = vmatpush.bf16.msrb.mxu3 %v6316_v22  ;;  %v2167_v19 = vadd.f32 %v6893_v17, %v6891_v57  ;;  %v6905_v21 = vmul.f32 0.17677669, %v2303_v26 }
 0x88b   :  { %4937 = vpow2.f32 %v2144_v27  ;;  %v2305_v23 = vpop.f32.mrf.mxu1 }
 0x88c   :  { %2168 = vadd.xlane.f32.xlu1 %v2167_v19  ;;  %v4934_v48 = vpop.eup %4933  ;;  %v2370_v35 = vmax.f32 %v6905_v21, %v6899_v36  ;;  %v6925_v39 = vmul.f32 0.17677669, %v2305_v23 }
 0x88d   :  { %v1903_v60 = vpop.xlane.xlu0 %1902  ;;  %v2103_v0 = vpop.xlane.xlu1 %2102  ;;  %v1927_v62 = vmul.f32 %v4934_v48, %v6767_v6 }
 0x88e   :  { %4939 = vrcp.f32 %v1903_v60  ;;  %4721 = vmatpush.bf16.msrb.mxu2 %v6270_v53  ;;  %4729 = vmatpush.bf16.msrb.mxu3 %v8334_v15  ;;  %v2120_v22 = vsub.f32 %v6783_v9, %v2103_v0  ;;  %v2121_v44 = vsub.f32 %v6774_v3, %v2103_v0  ;;  %v1926_v3 = vmul.f32 %v4934_v48, %v6763_v40 }
 0x88f   :  { %v2373_v6 = vmax.f32 %v6925_v39, %v6921_v47 }
 0x890   :  { %v6903_v4 = vpop.eup %4935  ;;  %v2146_v14 = vmul.f32 1.442695, %v2120_v22  ;;  %v2148_v53 = vmul.f32 1.442695, %v2121_v44 }
 0x891   :  { %v6909_v29 = vpop.eup %4937 }
 0x892   :  { %4722 = vmatpush.bf16.msrb.mxu2 %v8335_v32  ;;  %4730 = vmatpush.bf16.msrb.mxu3 %v8336_v59  ;;  %v2170_v41 = vadd.f32 %v6909_v29, %v6903_v4  ;;  %4941 = vpow2.f32 %v2146_v14 }
 0x893   :  { %4943 = vpow2.f32 %v2148_v53  ;;  %v2308_v55 = vpop.f32.mrf.mxu1 }
 0x894   :  { %v4940_v58 = vpop.eup %4939  ;;  %2371 = vmax.xlane.f32.xlu1 %v2370_v35  ;;  %2171 = vadd.xlane.f32.xlu0 %v2170_v41  ;;  %v6941_v30 = vmul.f32 0.17677669, %v2308_v55 }
 0x895   :  { %v2435_v9 = vpop.xlane.xlu0 %2434  ;;  %v1928_v49 = vmul.f32 %v4940_v58, %v6776_v45  ;;  %v1929_v33 = vmul.f32 %v4940_v58, %v6779_v31  ;;  %v2432_v61 = vpop.xlane.xlu1 %2431 }
 0x896   :  { %4945 = vrcp.f32 %v2435_v9  ;;  %4723 = vmatpush.bf16.msrb.mxu2 %v8337_v56  ;;  %4731 = vmatpush.bf16.msrb.mxu3 %v8338_v50  ;;  %v2337_v31 = vpop.f32.mrf.mxu0 }
 0x897   :  { %v1938_v34 = vpack.c.bf16 %v1928_v49, %v1926_v3  ;;  %v1939_v54 = vpack.c.bf16 %v1929_v33, %v1927_v62  ;;  %4947 = vrcp.f32 %v2432_v61  ;;  %v6937_v15 = vmul.f32 0.17677669, %v2337_v31  ;;  %v4703_v31 = vld [vmem:[%s8218_s5 + $0x8] sm:$0xff] }
 0x898   :  { %v6927_v40 = vpop.eup %4941  ;;  %2630 = vmatpush.bf16.msra.mxu1 %v4703_v31 }
 0x899   :  { %1960 = vmatmul.bf16.gmra.mxu2 %v1938_v34  ;;  %1989 = vmatmul.bf16.gmra.mxu3 %v1939_v54  ;;  %v6931_v45 = vpop.eup %4943  ;;  %v2376_v53 = vmax.f32 %v6941_v30, %v6937_v15 }
 0x89a   :  { %v2173_v5 = vadd.f32 %v6931_v45, %v6927_v40 }
 0x89c   :  { %v4946_v51 = vpop.eup %4945  ;;  %2374 = vmax.xlane.f32.xlu0 %v2373_v6  ;;  %2174 = vadd.xlane.f32.xlu2 %v2173_v5 }
 0x89d   :  { %v2464_v27 = vmul.f32 %v4946_v51, %v6789_v1  ;;  %v2465_v26 = vmul.f32 %v4946_v51, %v6793_v16  ;;  %v1906_v19 = vpop.xlane.xlu0 %1905  ;;  %v4948_v60 = vpop.eup %4947  ;;  %v4702_v51 = vld [vmem:[%s8218_s5] sm:$0xff]  ;;  %s5173_s5 = smov 128  }
 0x89e   :  { %4949 = vrcp.f32 %v1906_v19  ;;  %v2462_v48 = vmul.f32 %v4948_v60, %v6795_v7  ;;  %v2463_v0 = vmul.f32 %v4948_v60, %v6798_v8  ;;  %v2109_v22 = vpop.xlane.xlu1 %2108  ;;  %v1909_v44 = vpop.xlane.xlu2 %1908  ;;  %2631 = vmatpush.bf16.msra.mxu1 %v4702_v51 }
 0x89f   :  { %v2124_v35 = vsub.f32 %v6817_v10, %v2109_v22  ;;  %v2125_v1 = vsub.f32 %v6810_v28, %v2109_v22  ;;  %4951 = vrcp.f32 %v1909_v44 }
 0x8a0   :  { %v2478_v16 = vpack.c.bf16 %v2464_v27, %v2462_v48  ;;  %v2479_v14 = vpack.c.bf16 %v2465_v26, %v2463_v0 }
 0x8a1   :  { %v2154_v32 = vmul.f32 1.442695, %v2124_v35  ;;  %v2156_v59 = vmul.f32 1.442695, %v2125_v1 }
 0x8a2   :  { %2494 = vmatmul.bf16.vlgmr.msrb.gmra.mxu1 %v2478_v16  ;;  %2523 = vmatmul.bf16.vlgmr.msrb.gmra.mxu0 %v2479_v14 }
 0x8a3   :  { %4953 = vpow2.f32 %v2154_v32 }
 0x8a4   :  { %v4950_v7 = vpop.eup %4949  ;;  %2377 = vmax.xlane.f32.xlu0 %v2376_v53  ;;  %4955 = vpow2.f32 %v2156_v59 }
 0x8a5   :  { %v1930_v8 = vmul.f32 %v4950_v7, %v6805_v25  ;;  %v1931_v10 = vmul.f32 %v4950_v7, %v6807_v12  ;;  %v4952_v41 = vpop.eup %4951  ;;  %v2160_v5 = vpop.xlane.xlu0 %2159 }
 0x8a6   :  { %v2106_v28 = vpop.xlane.xlu2 %2105  ;;  %v1932_v23 = vmul.f32 %v4952_v41, %v6814_v46  ;;  %v1933_v58 = vmul.f32 %v4952_v41, %v6821_v20 }
 0x8a7   :  { %v2122_v3 = vsub.f32 %v6835_v13, %v2106_v28  ;;  %v2123_v9 = vsub.f32 %v6832_v63, %v2106_v28  ;;  %v2339_v63 = vpop.f32.mrf.mxu0  ;;  %v2310_v13 = vpop.f32.mrf.mxu1 }
 0x8a8   :  { %v1940_v49 = vpack.c.bf16 %v1932_v23, %v1930_v8  ;;  %v1941_v62 = vpack.c.bf16 %v1933_v58, %v1931_v10  ;;  %v6965_v34 = vmul.f32 0.17677669, %v2339_v63  ;;  %v6967_v54 = vmul.f32 0.17677669, %v2310_v13 }
 0x8a9   :  { %v6953_v33 = vpop.eup %4953  ;;  %v2150_v56 = vmul.f32 1.442695, %v2122_v3  ;;  %v2152_v50 = vmul.f32 1.442695, %v2123_v9 }
 0x8aa   :  { %v6955_v61 = vpop.eup %4955  ;;  %1965 = vmatmul.bf16.gmra.mxu2 %v1940_v49  ;;  %1994 = vmatmul.bf16.gmra.mxu3 %v1941_v62  ;;  %v2379_v6 = vmax.f32 %v6967_v54, %v6965_v34 }
 0x8ab   :  { %4957 = vpow2.f32 %v2150_v56  ;;  %v2179_v25 = vadd.f32 %v6955_v61, %v6953_v33 }
 0x8ac   :  { %4959 = vpow2.f32 %v2152_v50 }
 0x8ad   :  { %2180 = vadd.xlane.f32.xlu1 %v2179_v25  ;;  %4961 = vrcp.f32 %v2160_v5  ;;  %v2441_v27 = vpop.xlane.xlu0 %2440  ;;  %v8340_v25 = vld [vmem:[#allocation45_spill] sm:$0xff] }
 0x8b1   :  { %v6959_v12 = vpop.eup %4957 }
 0x8b2   :  { %v6961_v46 = vpop.eup %4959 }
 0x8b3   :  { %v2176_v20 = vadd.f32 %v6961_v46, %v6959_v12  ;;  %v4962_v26 = vpop.eup %4961 }
 0x8b4   :  { %v2190_v60 = vmul.f32 %v4962_v26, %v6827_v42  ;;  %v2191_v48 = vmul.f32 %v4962_v26, %v6829_v43 }
 0x8b5   :  { %2177 = vadd.xlane.f32.xlu2 %v2176_v20  ;;  %v8341_v20 = vld [vmem:[#allocation44_spill] sm:$0xff] }
 0x8bd   :  { %2380 = vmax.xlane.f32.xlu2 %v2379_v6 }
 0x8ef   :  { %v2163_v55 = vpop.xlane.xlu2 %2162 }
 0x8f0   :  { %4963 = vrcp.f32 %v2163_v55 }
 0x8f1   :  { %4965 = vrcp.f32 %v2441_v27 }
 0x8f6   :  { %v4964_v19 = vpop.eup %4963 }
 0x8f7   :  { %v2192_v0 = vmul.f32 %v4964_v19, %v6857_v24  ;;  %v2193_v22 = vmul.f32 %v4964_v19, %v6859_v2  ;;  %v2438_v44 = vpop.xlane.xlu1 %2437  ;;  %v2166_v16 = vpop.xlane.xlu2 %2165  ;;  %v8339_v2 = vld [vmem:[#allocation55_spill] sm:$0xff] }
 0x8f8   :  { %4967 = vrcp.f32 %v2438_v44  ;;  %v4966_v14 = vpop.eup %4965 }
 0x8f9   :  { %v2206_v35 = vpack.c.bf16 %v2192_v0, %v2190_v60  ;;  %v2207_v1 = vpack.c.bf16 %v2193_v22, %v2191_v48  ;;  %4969 = vrcp.f32 %v2166_v16  ;;  %v6982_v32 = vmul.f32 %v4966_v14, %v6843_v18 }
 0x8fa   :  { %v2468_v59 = vmul.f32 %v4966_v14, %v8339_v2 }
 0x8fb   :  { %2222 = vmatmul.bf16.vlgmr.msra.gmra.mxu2 %v2206_v35  ;;  %2251 = vmatmul.bf16.vlgmr.msra.gmra.mxu3 %v2207_v1 }
 0x8fe   :  { %v4968_v53 = vpop.eup %4967 }
 0x8ff   :  { %v6985_v42 = vmul.f32 %v4968_v53, %v6875_v52  ;;  %v2169_v43 = vpop.xlane.xlu1 %2168  ;;  %v2466_v24 = vmul.f32 %v4968_v53, %v6873_v11  ;;  %v4970_v10 = vpop.eup %4969 }
 0x900   :  { %4971 = vrcp.f32 %v2169_v43  ;;  %v2194_v18 = vmul.f32 %v4970_v10, %v6865_v37  ;;  %v2195_v58 = vmul.f32 %v4970_v10, %v6871_v38  ;;  %v1711_v37 = vadd.f32 %v8341_v20, %v8340_v25  ;;  %v8347_v10 = vld [vmem:[#allocation51_spill] sm:$0xff] }
 0x901   :  { %v2481_v7 = vpack.c.bf16 %v6982_v32, %v6985_v42  ;;  %v2480_v8 = vpack.c.bf16 %v2468_v59, %v2466_v24 }
 0x903   :  { %2499 = vmatmul.bf16.gmra.mxu1 %v2480_v8  ;;  %v8346_v8 = vld [vmem:[#allocation50_spill] sm:$0xff] }
 0x906   :  { %v4972_v41 = vpop.eup %4971 }
 0x907   :  { %v2372_v28 = vpop.xlane.xlu1 %2371  ;;  %v2172_v23 = vpop.xlane.xlu0 %2171  ;;  %v2196_v52 = vmul.f32 %v4972_v41, %v6891_v57  ;;  %v2197_v11 = vmul.f32 %v4972_v41, %v6893_v17  ;;  %v1721_v41 = vadd.f32 %v8347_v10, %v8346_v8 }
 0x908   :  { %v2390_v3 = vsub.f32 %v6905_v21, %v2372_v28  ;;  %v2391_v9 = vsub.f32 %v6899_v36, %v2372_v28  ;;  %v8342_v21 = vld [vmem:[#allocation43_spill] sm:$0xff] }
 0x909   :  { %v2208_v49 = vpack.c.bf16 %v2196_v52, %v2194_v18  ;;  %v2209_v62 = vpack.c.bf16 %v2197_v11, %v2195_v58  ;;  %v2548_v63 = vpack.c.bf16 %v1711_v37, %v8342_v21  ;;  %v8348_v18 = vld [vmem:[#allocation49_spill] sm:$0xff]  ;;  %v1951_v58 = vpop.f32.mrf.mxu2  ;;  %v1980_v11 = vpop.f32.mrf.mxu3 }
 0x90a   :  { %v2414_v56 = vmul.f32 1.442695, %v2390_v3  ;;  %v2416_v50 = vmul.f32 1.442695, %v2391_v9  ;;  %v2550_v52 = vpack.c.bf16 %v1721_v41, %v8348_v18 }
 0x90b   :  { %2227 = vmatmul.bf16.gmra.mxu2 %v2208_v49  ;;  %2256 = vmatmul.bf16.gmra.mxu3 %v2209_v62 }
 0x90c   :  { %4973 = vpow2.f32 %v2414_v56 }
 0x90d   :  { %4975 = vpow2.f32 %v2416_v50 }
 0x90e   :  { %4977 = vrcp.f32 %v2172_v23 }
 0x90f   :  { %v2375_v57 = vpop.xlane.xlu0 %2374  ;;  %v2175_v36 = vpop.xlane.xlu2 %2174 }
 0x910   :  { %v2392_v38 = vsub.f32 %v6925_v39, %v2375_v57  ;;  %v2393_v17 = vsub.f32 %v6921_v47, %v2375_v57  ;;  %4979 = vrcp.f32 %v2175_v36 }
 0x912   :  { %v7002_v13 = vpop.eup %4973  ;;  %v2418_v6 = vmul.f32 1.442695, %v2392_v38  ;;  %v2420_v31 = vmul.f32 1.442695, %v2393_v17 }
 0x913   :  { %v7004_v51 = vpop.eup %4975  ;;  %4585 = vmatmul.msk.bf16.vlgmr.msra.gmra.mxu1 %vm348_vm1, %v2548_v63  ;;  %v8351_v63 = vld [vmem:[#allocation52_spill] sm:$0xff] }
 0x914   :  { %4981 = vpow2.f32 %v2418_v6  ;;  %v2442_v5 = vadd.f32 %v7004_v51, %v7002_v13  ;;  %v4978_v39 = vpop.eup %4977 }
 0x915   :  { %4983 = vpow2.f32 %v2420_v31  ;;  %v2198_v19 = vmul.f32 %v4978_v39, %v6903_v4  ;;  %v2199_v48 = vmul.f32 %v4978_v39, %v6909_v29  ;;  %v8344_v4 = vld [vmem:[#allocation48_spill] sm:$0xff]  ;;  %v8345_v29 = vld [vmem:[#allocation46_spill] sm:$0xff] }
 0x916   :  { %2443 = vadd.xlane.f32.xlu1 %v2442_v5  ;;  %v4980_v55 = vpop.eup %4979 }
 0x917   :  { %v2378_v47 = vpop.xlane.xlu0 %2377  ;;  %v2200_v60 = vmul.f32 %v4980_v55, %v6927_v40  ;;  %v2201_v0 = vmul.f32 %v4980_v55, %v6931_v45  ;;  %v1981_v55 = vadd.f32 %v1980_v11, %v1951_v58 }
 0x918   :  { %v2394_v27 = vsub.f32 %v6941_v30, %v2378_v47  ;;  %v2395_v26 = vsub.f32 %v6937_v15, %v2378_v47  ;;  %v8343_v30 = vld [vmem:[#allocation47_spill] sm:$0xff] }
 0x919   :  { %v2210_v16 = vpack.c.bf16 %v2200_v60, %v2198_v19  ;;  %v2211_v14 = vpack.c.bf16 %v2201_v0, %v2199_v48  ;;  %v1716_v53 = vadd.f32 %v8344_v4, %v8343_v30 }
 0x91a   :  { %v7015_v22 = vpop.eup %4981  ;;  %v2422_v44 = vmul.f32 1.442695, %v2394_v27  ;;  %v2424_v35 = vmul.f32 1.442695, %v2395_v26 }
 0x91b   :  { %v7017_v1 = vpop.eup %4983  ;;  %2232 = vmatmul.bf16.gmra.mxu2 %v2210_v16  ;;  %2261 = vmatmul.bf16.gmra.mxu3 %v2211_v14  ;;  %v2549_v40 = vpack.c.bf16 %v1716_v53, %v8345_v29 }
 0x91c   :  { %4985 = vpow2.f32 %v2422_v44  ;;  %v2445_v15 = vadd.f32 %v7017_v1, %v7015_v22 }
 0x91d   :  { %4987 = vpow2.f32 %v2424_v35 }
 0x91e   :  { %2446 = vadd.xlane.f32.xlu0 %v2445_v15 }
 0x91f   :  { %v7056_v42 = vpop.f32.mrf.mxu1 }
 0x920   :  { %v2181_v2 = vpop.xlane.xlu1 %2180 }
 0x921   :  { %4989 = vrcp.f32 %v2181_v2 }
 0x922   :  { %v7024_v45 = vpop.eup %4985 }
 0x923   :  { %v7026_v43 = vpop.eup %4987  ;;  %4586 = vmatmul.msk.bf16.gmra.mxu1 %vm348_vm1, %v2549_v40 }
 0x924   :  { %v2448_v24 = vadd.f32 %v7026_v43, %v7024_v45 }
 0x926   :  { %2449 = vadd.xlane.f32.xlu2 %v2448_v24 }
 0x927   :  { %v4990_v28 = vpop.eup %4989  ;;  %v7059_v53 = vpop.f32.mrf.mxu1 }
 0x928   :  { %v2178_v59 = vpop.xlane.xlu2 %2177  ;;  %v2204_v49 = vmul.f32 %v4990_v28, %v6953_v33  ;;  %v2205_v56 = vmul.f32 %v4990_v28, %v6955_v61  ;;  %v1982_v33 = vpop.f32.mrf.mxu3  ;;  %v8349_v61 = vld [vmem:[#allocation53_spill] sm:$0xff] }
 0x929   :  { %4991 = vrcp.f32 %v2178_v59 }
 0x92f   :  { %v4992_v23 = vpop.eup %4991 }
 0x930   :  { %v2381_v3 = vpop.xlane.xlu2 %2380  ;;  %v2202_v9 = vmul.f32 %v4992_v23, %v6959_v12  ;;  %v2203_v62 = vmul.f32 %v4992_v23, %v6961_v46  ;;  %v1953_v12 = vpop.f32.mrf.mxu2 }
 0x931   :  { %v2396_v50 = vsub.f32 %v6967_v54, %v2381_v3  ;;  %v2397_v25 = vsub.f32 %v6965_v34, %v2381_v3  ;;  %v8350_v54 = vld [vmem:[#allocation54_spill] sm:$0xff]  ;;  %v1985_v31 = vpop.f32.mrf.mxu3  ;;  %v1983_v5 = vadd.f32 %v1982_v33, %v1953_v12  ;;  %v7069_v3 = vld [vmem:[%s8216_s3 + $0x5] ss:$0 sm:$0xff] }
 0x932   :  { %v2212_v20 = vpack.c.bf16 %v2204_v49, %v2202_v9  ;;  %v2213_v37 = vpack.c.bf16 %v2205_v56, %v2203_v62  ;;  %v1726_v21 = vadd.f32 %v8350_v54, %v8349_v61  ;;  %v8352_v62 = vld [vmem:[#allocation5_spill] sm:$0xff] }
 0x933   :  { %4587 = vmatmul.msk.bf16.gmra.mxu1 %vm348_vm1, %v2550_v52  ;;  %v2426_v57 = vmul.f32 1.442695, %v2396_v50  ;;  %v2428_v38 = vmul.f32 1.442695, %v2397_v25  ;;  %v2552_v27 = vpack.c.bf16 %v1983_v5, %v1981_v55 }
 0x934   :  { %2237 = vmatmul.bf16.gmra.mxu2 %v2212_v20  ;;  %2266 = vmatmul.bf16.gmra.mxu3 %v2213_v37  ;;  %v2551_v36 = vpack.c.bf16 %v1726_v21, %v8351_v63  ;;  %v8353_v21 = vld [vmem:[#allocation6_spill] sm:$0xff] }
 0x935   :  { %4993 = vpow2.f32 %v2426_v57 }
 0x936   :  { %4995 = vpow2.f32 %v2428_v38 }
 0x938   :  { %v1956_v6 = vpop.f32.mrf.mxu2 }
 0x939   :  { %v1987_v47 = vpop.f32.mrf.mxu3  ;;  %v1986_v48 = vadd.f32 %v1985_v31, %v1956_v6 }
 0x93b   :  { %v7041_v17 = vpop.eup %4993 }
 0x93c   :  { %v7043_v46 = vpop.eup %4995 }
 0x93d   :  { %v2451_v34 = vadd.f32 %v7043_v46, %v7041_v17 }
 0x93f   :  { %2452 = vadd.xlane.f32.xlu1 %v2451_v34 }
 0x940   :  { %v1958_v39 = vpop.f32.mrf.mxu2 }
 0x941   :  { %v1990_v19 = vpop.f32.mrf.mxu3  ;;  %v1988_v60 = vadd.f32 %v1987_v47, %v1958_v39 }
 0x943   :  { %4588 = vmatmul.msk.bf16.gmra.mxu1 %vm348_vm1, %v2551_v36  ;;  %v2553_v0 = vpack.c.bf16 %v1988_v60, %v1986_v48 }
 0x944   :  { %2528 = vmatmul.bf16.vlgmr.msrb.gmra.mxu3 %v2481_v7 }
 0x948   :  { %v1961_v26 = vpop.f32.mrf.mxu2 }
 0x949   :  { %v1992_v35 = vpop.f32.mrf.mxu3  ;;  %v1991_v7 = vadd.f32 %v1990_v19, %v1961_v26 }
 0x950   :  { %v1963_v44 = vpop.f32.mrf.mxu2 }
 0x951   :  { %v1995_v14 = vpop.f32.mrf.mxu3  ;;  %v1993_v32 = vadd.f32 %v1992_v35, %v1963_v44  ;;  %v8355_v35 = vld [vmem:[#allocation8_spill] sm:$0xff] }
 0x953   :  { %4589 = vmatmul.msk.bf16.gmra.mxu1 %vm348_vm1, %v2552_v27  ;;  %v2554_v15 = vpack.c.bf16 %v1993_v32, %v1991_v7 }
 0x958   :  { %v1966_v16 = vpop.f32.mrf.mxu2 }
 0x959   :  { %v1997_v4 = vpop.f32.mrf.mxu3  ;;  %v1996_v2 = vadd.f32 %v1995_v14, %v1966_v16 }
 0x960   :  { %v1968_v30 = vpop.f32.mrf.mxu2 }
 0x961   :  { %v1998_v29 = vadd.f32 %v1997_v4, %v1968_v30 }
 0x963   :  { %4590 = vmatmul.msk.bf16.gmra.mxu1 %vm348_vm1, %v2553_v0  ;;  %v2555_v8 = vpack.c.bf16 %v1998_v29, %v1996_v2 }
 0x973   :  { %4591 = vmatmul.msk.bf16.gmra.mxu1 %vm348_vm1, %v2554_v15 }
 0x97e   :  { %v2223_v40 = vpop.f32.mrf.mxu2  ;;  %v2252_v24 = vpop.f32.mrf.mxu3 }
 0x97f   :  { %v2253_v11 = vadd.f32 %v2252_v24, %v2223_v40  ;;  %v8356_v40 = vld [vmem:[#allocation9_spill] sm:$0xff] }
 0x980   :  { %v7061_v59 = vpop.f32.mrf.mxu1 }
 0x983   :  { %4592 = vmatmul.msk.bf16.gmra.mxu1 %vm348_vm1, %v2555_v8 }
 0x986   :  { %v2225_v10 = vpop.f32.mrf.mxu2  ;;  %v2254_v41 = vpop.f32.mrf.mxu3 }
 0x987   :  { %v2255_v18 = vadd.f32 %v2254_v41, %v2225_v10 }
 0x988   :  { %v7064_v28 = vpop.f32.mrf.mxu1 }
 0x989   :  { %v2444_v23 = vpop.xlane.xlu1 %2443  ;;  %v2556_v49 = vpack.c.bf16 %v2255_v18, %v2253_v11  ;;  %v8357_v11 = vld [vmem:[#allocation10_spill] sm:$0xff] }
 0x98a   :  { %4997 = vrcp.f32 %v2444_v23 }
 0x98e   :  { %v2228_v52 = vpop.f32.mrf.mxu2  ;;  %v2257_v58 = vpop.f32.mrf.mxu3 }
 0x98f   :  { %v2258_v47 = vadd.f32 %v2257_v58, %v2228_v52 }
 0x990   :  { %v2633_v9 = vpop.f32.mrf.mxu1  ;;  %v4998_v20 = vpop.eup %4997 }
 0x991   :  { %v2713_v56 = vadd.f32 %v2633_v9, %v8352_v62  ;;  %v2447_v50 = vpop.xlane.xlu0 %2446  ;;  %v2470_v33 = vmul.f32 %v4998_v20, %v7002_v13  ;;  %v2471_v63 = vmul.f32 %v4998_v20, %v7004_v51  ;;  %v8354_v51 = vld [vmem:[#allocation7_spill] sm:$0xff] }
 0x992   :  { %4999 = vrcp.f32 %v2447_v50 }
 0x993   :  { %v7073_v25 = vadd.f32 %v7069_v3, %v2713_v56  ;;  %4593 = vmatmul.msk.bf16.gmra.mxu1 %vm348_vm1, %v2556_v49 }
 0x995   :  { %v2778_v37 = vsel %vm348_vm1, %v7073_v25, 0.0 }
 0x996   :  { %2779 = vadd.xlane.f32.xlu0 %v2778_v37  ;;  %v2230_v57 = vpop.f32.mrf.mxu2  ;;  %v2259_v38 = vpop.f32.mrf.mxu3 }
 0x997   :  { %v2260_v39 = vadd.f32 %v2259_v38, %v2230_v57 }
 0x998   :  { %v5000_v12 = vpop.eup %4999  ;;  %v2635_v61 = vpop.f32.mrf.mxu1 }
 0x999   :  { %v2472_v54 = vmul.f32 %v5000_v12, %v7015_v22  ;;  %v2714_v34 = vadd.f32 %v2635_v61, %v8353_v21  ;;  %v2473_v36 = vmul.f32 %v5000_v12, %v7017_v1  ;;  %v2557_v27 = vpack.c.bf16 %v2260_v39, %v2258_v47  ;;  %v2450_v15 = vpop.xlane.xlu2 %2449 }
 0x99a   :  { %5001 = vrcp.f32 %v2450_v15 }
 0x99b   :  { %v2482_v6 = vpack.c.bf16 %v2472_v54, %v2470_v33  ;;  %v7084_v31 = vadd.f32 %v7069_v3, %v2714_v34  ;;  %v2483_v5 = vpack.c.bf16 %v2473_v36, %v2471_v63  ;;  %v2524_v54 = vpop.f32.mrf.mxu0 }
 0x99d   :  { %2504 = vmatmul.bf16.vlgmr.msrb.gmra.mxu2 %v2482_v6  ;;  %2533 = vmatmul.bf16.gmra.mxu3 %v2483_v5  ;;  %v2781_v13 = vsel %vm348_vm1, %v7084_v31, 0.0  ;;  %v2525_v5 = vadd.f32 %v2524_v54, %v7056_v42 }
 0x99e   :  { %2782 = vadd.xlane.f32.xlu2 %v2781_v13  ;;  %v2233_v22 = vpop.f32.mrf.mxu2  ;;  %v2262_v55 = vpop.f32.mrf.mxu3 }
 0x99f   :  { %v2263_v30 = vadd.f32 %v2262_v55, %v2233_v22 }
 0x9a0   :  { %v2638_v26 = vpop.f32.mrf.mxu1  ;;  %v5002_v41 = vpop.eup %5001 }
 0x9a1   :  { %v2715_v19 = vadd.f32 %v2638_v26, %v8354_v51  ;;  %v2474_v49 = vmul.f32 %v5002_v41, %v7024_v45  ;;  %v2475_v56 = vmul.f32 %v5002_v41, %v7026_v43  ;;  %v8358_v43 = vld [vmem:[#allocation11_spill] sm:$0xff] }
 0x9a3   :  { %4594 = vmatmul.msk.bf16.gmra.mxu1 %vm348_vm1, %v2557_v27  ;;  %v7091_v1 = vadd.f32 %v7069_v3, %v2715_v19  ;;  %v2526_v36 = vpop.f32.mrf.mxu0  ;;  %v8359_v19 = vld [vmem:[#allocation12_spill] sm:$0xff] }
 0x9a4   :  { %v2527_v6 = vadd.f32 %v2526_v36, %v7059_v53 }
 0x9a5   :  { %v2784_v60 = vsel %vm348_vm1, %v7091_v1, 0.0 }
 0x9a6   :  { %2785 = vadd.xlane.f32.xlu1 %v2784_v60  ;;  %v2235_v0 = vpop.f32.mrf.mxu2  ;;  %v2264_v44 = vpop.f32.mrf.mxu3  ;;  %v2560_v13 = vpack.c.bf16 %v2527_v6, %v2525_v5 }
 0x9a7   :  { %v2265_v32 = vadd.f32 %v2264_v44, %v2235_v0  ;;  %v8360_v0 = vld [vmem:[#allocation13_spill] sm:$0xff] }
 0x9a8   :  { %v2640_v48 = vpop.f32.mrf.mxu1 }
 0x9a9   :  { %v2716_v16 = vadd.f32 %v2640_v48, %v8355_v35  ;;  %v2558_v4 = vpack.c.bf16 %v2265_v32, %v2263_v30  ;;  %v8361_v30 = vld [vmem:[#allocation14_spill] sm:$0xff] }
 0x9ab   :  { %v7097_v14 = vadd.f32 %v7069_v3, %v2716_v16 }
 0x9ad   :  { %v2787_v7 = vsel %vm348_vm1, %v7097_v14, 0.0 }
 0x9ae   :  { %2788 = vadd.xlane.f32.xlu0 %v2787_v7 }
 0x9b0   :  { %v2643_v29 = vpop.f32.mrf.mxu1 }
 0x9b1   :  { %v2717_v24 = vadd.f32 %v2643_v29, %v8356_v40 }
 0x9b2   :  { %v2453_v2 = vpop.xlane.xlu1 %2452 }
 0x9b3   :  { %4595 = vmatmul.msk.bf16.gmra.mxu1 %vm348_vm1, %v2558_v4  ;;  %v7104_v8 = vadd.f32 %v7069_v3, %v2717_v24  ;;  %5003 = vrcp.f32 %v2453_v2 }
 0x9b5   :  { %v2790_v10 = vsel %vm348_vm1, %v7104_v8, 0.0 }
 0x9b6   :  { %2791 = vadd.xlane.f32.xlu2 %v2790_v10 }
 0x9b7   :  { %v2238_v23 = vpop.f32.mrf.mxu2  ;;  %v2267_v18 = vpop.f32.mrf.mxu3 }
 0x9b8   :  { %v2645_v52 = vpop.f32.mrf.mxu1  ;;  %v2268_v45 = vadd.f32 %v2267_v18, %v2238_v23 }
 0x9b9   :  { %v5004_v58 = vpop.eup %5003  ;;  %v2718_v9 = vadd.f32 %v2645_v52, %v8357_v11  ;;  %v8362_v52 = vld [vmem:[#allocation15_spill] sm:$0xff] }
 0x9ba   :  { %v2476_v62 = vmul.f32 %v5004_v58, %v7041_v17  ;;  %v2477_v50 = vmul.f32 %v5004_v58, %v7043_v46 }
 0x9bb   :  { %v7114_v20 = vadd.f32 %v7069_v3, %v2718_v9 }
 0x9bc   :  { %v2484_v37 = vpack.c.bf16 %v2476_v62, %v2474_v49  ;;  %v2485_v57 = vpack.c.bf16 %v2477_v50, %v2475_v56 }
 0x9bd   :  { %v2793_v38 = vsel %vm348_vm1, %v7114_v20, 0.0 }
 0x9be   :  { %2509 = vmatmul.bf16.gmra.mxu2 %v2484_v37  ;;  %2538 = vmatmul.bf16.gmra.mxu3 %v2485_v57 }
 0x9bf   :  { %v2240_v12 = vpop.f32.mrf.mxu2  ;;  %v2269_v33 = vpop.f32.mrf.mxu3  ;;  %2794 = vadd.xlane.f32.xlu1 %v2793_v38 }
 0x9c0   :  { %v2270_v61 = vadd.f32 %v2269_v33, %v2240_v12  ;;  %v2648_v17 = vpop.f32.mrf.mxu1 }
 0x9c1   :  { %v2719_v21 = vadd.f32 %v2648_v17, %v8358_v43 }
 0x9c2   :  { %v2559_v46 = vpack.c.bf16 %v2270_v61, %v2268_v45  ;;  %v8363_v61 = vld [vmem:[#allocation16_spill] sm:$0xff] }
 0x9c3   :  { %v7120_v34 = vadd.f32 %v7069_v3, %v2719_v21 }
 0x9c4   :  { %4596 = vmatmul.msk.bf16.gmra.mxu1 %vm348_vm1, %v2559_v46 }
 0x9c5   :  { %v2796_v63 = vsel %vm348_vm1, %v7120_v34, 0.0 }
 0x9c7   :  { %2797 = vadd.xlane.f32.xlu1 %v2796_v63  ;;  %v2529_v39 = vpop.f32.mrf.mxu3 }
 0x9c8   :  { %v2530_v55 = vadd.f32 %v2529_v39, %v7061_v59  ;;  %v2650_v26 = vpop.f32.mrf.mxu1 }
 0x9c9   :  { %v2720_v44 = vadd.f32 %v2650_v26, %v8360_v0 }
 0x9cb   :  { %v7141_v16 = vadd.f32 %v7069_v3, %v2720_v44  ;;  %v8365_v44 = vld [vmem:[#allocation18_spill] sm:$0xff] }
 0x9cd   :  { %v2799_v40 = vsel %vm348_vm1, %v7141_v16, 0.0 }
 0x9cf   :  { %v2531_v47 = vpop.f32.mrf.mxu3 }
 0x9d0   :  { %v2532_v22 = vadd.f32 %v2531_v47, %v7064_v28  ;;  %v2653_v48 = vpop.f32.mrf.mxu1  ;;  %v8364_v47 = vld [vmem:[#allocation17_spill] sm:$0xff] }
 0x9d1   :  { %v2721_v4 = vadd.f32 %v2653_v48, %v8361_v30 }
 0x9d2   :  { %v2561_v27 = vpack.c.bf16 %v2532_v22, %v2530_v55 }
 0x9d3   :  { %v7154_v10 = vadd.f32 %v7069_v3, %v2721_v4 }
 0x9d4   :  { %4597 = vmatmul.msk.bf16.gmra.mxu1 %vm348_vm1, %v2560_v13 }
 0x9d5   :  { %v2802_v49 = vsel %vm348_vm1, %v7154_v10, 0.0 }
 0x9d8   :  { %v2655_v7 = vpop.f32.mrf.mxu1 }
 0x9d9   :  { %v2722_v58 = vadd.f32 %v2655_v7, %v8362_v52 }
 0x9db   :  { %v7167_v37 = vadd.f32 %v7069_v3, %v2722_v58 }
 0x9dd   :  { %v2805_v45 = vsel %vm348_vm1, %v7167_v37, 0.0 }
 0x9e0   :  { %v2658_v23 = vpop.f32.mrf.mxu1 }
 0x9e1   :  { %v2723_v17 = vadd.f32 %v2658_v23, %v8363_v61 }
 0x9e3   :  { %v7180_v5 = vadd.f32 %v7069_v3, %v2723_v17 }
 0x9e4   :  { %4598 = vmatmul.msk.bf16.gmra.mxu1 %vm348_vm1, %v2561_v27 }
 0x9e5   :  { %v2808_v27 = vsel %vm348_vm1, %v7180_v5, 0.0 }
 0x9e8   :  { %v2660_v54 = vpop.f32.mrf.mxu1 }
 0x9e9   :  { %v2724_v22 = vadd.f32 %v2660_v54, %v8364_v47 }
 0x9eb   :  { %v7194_v48 = vadd.f32 %v7069_v3, %v2724_v22 }
 0x9f0   :  { %v2663_v26 = vpop.f32.mrf.mxu1 }
 0x9f8   :  { %v2665_v4 = vpop.f32.mrf.mxu1 }
 0xa09   :  { %v2780_v51 = vpop.xlane.xlu0 %2779 }
 0xa0a   :  { %v2874_v60 = vmul.f32 %v2780_v51, %v8359_v19 }
 0xa0c   :  { %v7133_v53 = vsub.f32 %v7073_v25, %v2874_v60 }
 0xa0e   :  { %v2938_v42 = vmul.f32 %v7133_v53, %v7133_v53 }
 0xa10   :  { %v2970_v28 = vsel %vm348_vm1, %v2938_v42, 0.0 }
 0xa11   :  { %2971 = vadd.xlane.f32.xlu0 %v2970_v28  ;;  %v2783_v59 = vpop.xlane.xlu2 %2782  ;;  %v2725_v28 = vadd.f32 %v2663_v26, %v8365_v44 }
 0xa12   :  { %v2875_v35 = vmul.f32 %v2783_v59, %v8359_v19  ;;  %v2811_v59 = vsel %vm348_vm1, %v7194_v48, 0.0 }
 0xa13   :  { %v7207_v30 = vadd.f32 %v7069_v3, %v2725_v28 }
 0xa14   :  { %v7144_v32 = vsub.f32 %v7084_v31, %v2875_v35 }
 0xa16   :  { %v2939_v15 = vmul.f32 %v7144_v32, %v7144_v32 }
 0xa18   :  { %v2973_v29 = vsel %vm348_vm1, %v2939_v15, 0.0 }
 0xa19   :  { %2974 = vadd.xlane.f32.xlu2 %v2973_v29  ;;  %2800 = vadd.xlane.f32.xlu0 %v2799_v40  ;;  %v2786_v24 = vpop.xlane.xlu1 %2785 }
 0xa1a   :  { %v2876_v2 = vmul.f32 %v2786_v24, %v8359_v19  ;;  %v2814_v24 = vsel %vm348_vm1, %v7207_v30, 0.0 }
 0xa1c   :  { %v7157_v41 = vsub.f32 %v7091_v1, %v2876_v2  ;;  %v8366_v2 = vld [vmem:[#allocation19_spill] sm:$0xff] }
 0xa1d   :  { %v2726_v23 = vadd.f32 %v2665_v4, %v8366_v2 }
 0xa1e   :  { %v2940_v18 = vmul.f32 %v7157_v41, %v7157_v41 }
 0xa20   :  { %v2505_v11 = vpop.f32.mrf.mxu2  ;;  %v2534_v9 = vpop.f32.mrf.mxu3  ;;  %v2976_v62 = vsel %vm348_vm1, %v2940_v18, 0.0 }
 0xa21   :  { %2803 = vadd.xlane.f32.xlu0 %v2802_v49  ;;  %v2789_v56 = vpop.xlane.xlu0 %2788  ;;  %2977 = vadd.xlane.f32.xlu2 %v2976_v62  ;;  %v2535_v43 = vadd.f32 %v2534_v9, %v2505_v11  ;;  %v7219_v11 = vadd.f32 %v7069_v3, %v2726_v23  ;;  %v2668_v9 = vpop.f32.mrf.mxu1  ;;  %v8367_v49 = vld [vmem:[#allocation20_spill] sm:$0xff] }
 0xa22   :  { %v2877_v50 = vmul.f32 %v2789_v56, %v8359_v19  ;;  %v2727_v62 = vadd.f32 %v2668_v9, %v8367_v49 }
 0xa24   :  { %v7170_v57 = vsub.f32 %v7097_v14, %v2877_v50  ;;  %v7225_v61 = vadd.f32 %v7069_v3, %v2727_v62 }
 0xa26   :  { %v2941_v38 = vmul.f32 %v7170_v57, %v7170_v57  ;;  %8368 = vst [vmem:[#allocation38_spill] sm:$0xff] %v7225_v61  ;;  %v2820_v17 = vsel %vm348_vm1, %v7225_v61, 0.0 }
 0xa28   :  { %v2507_v12 = vpop.f32.mrf.mxu2  ;;  %v2536_v33 = vpop.f32.mrf.mxu3  ;;  %v2979_v46 = vsel %vm348_vm1, %v2941_v38, 0.0  ;;  %v2817_v38 = vsel %vm348_vm1, %v7219_v11, 0.0 }
 0xa29   :  { %v2537_v21 = vadd.f32 %v2536_v33, %v2507_v12  ;;  %v2792_v63 = vpop.xlane.xlu2 %2791  ;;  %2980 = vadd.xlane.f32.xlu1 %v2979_v46  ;;  %2806 = vadd.xlane.f32.xlu2 %v2805_v45 }
 0xa2a   :  { %v2878_v6 = vmul.f32 %v2792_v63, %v8359_v19  ;;  %v4704_v63 = vld [vmem:[%s8219_s6] sm:$0xff] }
 0xa2b   :  { %v2562_v36 = vpack.c.bf16 %v2537_v21, %v2535_v43  ;;  %v4705_v21 = vld [vmem:[%s8219_s6 + $0x8] sm:$0xff] }
 0xa2c   :  { %v7183_v39 = vsub.f32 %v7104_v8, %v2878_v6  ;;  %3635 = vmatpush.bf16.msra.mxu0 %v4705_v21  ;;  %v7265_v21 = vld [vmem:[%s8216_s3 + $0x2] ss:$0 sm:$0xff] }
 0xa2d   :  { %4599 = vmatmul.msk.bf16.gmra.mxu1 %vm348_vm1, %v2562_v36  ;;  %v2670_v36 = vpop.f32.mrf.mxu1 }
 0xa2e   :  { %v2942_v13 = vmul.f32 %v7183_v39, %v7183_v39 }
 0xa30   :  { %v2982_v55 = vsel %vm348_vm1, %v2942_v13, 0.0  ;;  %3636 = vmatpush.bf16.msra.mxu0 %v4704_v63 }
 0xa31   :  { %2983 = vadd.xlane.f32.xlu1 %v2982_v55  ;;  %2809 = vadd.xlane.f32.xlu2 %v2808_v27 }
 0xa32   :  { %v2795_v51 = vpop.xlane.xlu1 %2794 }
 0xa33   :  { %v2879_v60 = vmul.f32 %v2795_v51, %v8359_v19 }
 0xa35   :  { %v7197_v42 = vsub.f32 %v7114_v20, %v2879_v60 }
 0xa37   :  { %v2943_v0 = vmul.f32 %v7197_v42, %v7197_v42 }
 0xa39   :  { %v2985_v35 = vsel %vm348_vm1, %v2943_v0, 0.0  ;;  %2812 = vadd.xlane.f32.xlu1 %v2811_v59 }
 0xa3a   :  { %v2798_v7 = vpop.xlane.xlu1 %2797  ;;  %2986 = vadd.xlane.f32.xlu0 %v2985_v35 }
 0xa3b   :  { %v2880_v15 = vmul.f32 %v2798_v7, %v8359_v19 }
 0xa3d   :  { %v7210_v29 = vsub.f32 %v7120_v34, %v2880_v15  ;;  %v2673_v15 = vpop.f32.mrf.mxu1 }
 0xa3f   :  { %v2944_v40 = vmul.f32 %v7210_v29, %v7210_v29 }
 0xa41   :  { %v2510_v18 = vpop.f32.mrf.mxu2  ;;  %v2539_v52 = vpop.f32.mrf.mxu3  ;;  %v2988_v58 = vsel %vm348_vm1, %v2944_v40, 0.0  ;;  %2815 = vadd.xlane.f32.xlu1 %v2814_v24 }
 0xa42   :  { %2989 = vadd.xlane.f32.xlu0 %v2988_v58  ;;  %v2540_v12 = vadd.f32 %v2539_v52, %v2510_v18  ;;  %v8369_v58 = vld [vmem:[#allocation21_spill] sm:$0xff] }
 0xa43   :  { %v2728_v9 = vadd.f32 %v2670_v36, %v8369_v58 }
 0xa45   :  { %v2675_v36 = vpop.f32.mrf.mxu1 }
 0xa49   :  { %v2512_v56 = vpop.f32.mrf.mxu2  ;;  %v2541_v50 = vpop.f32.mrf.mxu3 }
 0xa4a   :  { %v2542_v33 = vadd.f32 %v2541_v50, %v2512_v56  ;;  %2818 = vadd.xlane.f32.xlu0 %v2817_v38 }
 0xa4c   :  { %v2563_v45 = vpack.c.bf16 %v2542_v33, %v2540_v12  ;;  %v7258_v12 = vadd.f32 %v7069_v3, %v2728_v9 }
 0xa4e   :  { %4600 = vmatmul.msk.bf16.gmra.mxu1 %vm348_vm1, %v2563_v45  ;;  %8370 = vst [vmem:[#allocation41_spill] sm:$0xff] %v7258_v12 }
 0xa52   :  { %2821 = vadd.xlane.f32.xlu0 %v2820_v17 }
 0xa84   :  { %v2972_v54 = vpop.xlane.xlu0 %2971 }
 0xa85   :  { %v3066_v43 = vmul.f32 %v2972_v54, %v8359_v19 }
 0xa87   :  { %v3098_v46 = vadd.f32 1e-06, %v3066_v43 }
 0xa89   :  { %5005 = vrsqrt.f32 %v3098_v46  ;;  %vm3136_vm10 = vweird.f32 %v3098_v46 }
 0xa8c   :  { %v2975_v6 = vpop.xlane.xlu2 %2974  ;;  %v2801_v13 = vpop.xlane.xlu0 %2800 }
 0xa8d   :  { %v3067_v47 = vmul.f32 %v2975_v6, %v8359_v19  ;;  %v2881_v22 = vmul.f32 %v2801_v13, %v8359_v19 }
 0xa8f   :  { %v5006_v55 = vpop.eup %5005  ;;  %v3099_v27 = vadd.f32 1e-06, %v3067_v47  ;;  %v7240_v26 = vsub.f32 %v7141_v16, %v2881_v22 }
 0xa90   :  { %v3131_v51 = vmul.f32 %v5006_v55, %v3098_v46  ;;  %vm3137_vm9 = vweird.f32 %v5006_v55 }
 0xa91   :  { %5007 = vrsqrt.f32 %v3099_v27  ;;  %v2945_v60 = vmul.f32 %v7240_v26, %v7240_v26  ;;  %vm3138_vm11 = vmor %vm3136_vm10, %vm3137_vm9  ;;  %vm3146_vm13 = vweird.f32 %v3099_v27 }
 0xa92   :  { %v3132_v0 = vmul.f32 %v5006_v55, %v3131_v51 }
 0xa93   :  { %v2991_v44 = vsel %vm348_vm1, %v2945_v60, 0.0  ;;  %v2823_v60 = vsel %vm348_vm1, %v7258_v12, 0.0 }
 0xa94   :  { %v3133_v28 = vmul.f32 0.5, %v3132_v0  ;;  %v2804_v59 = vpop.xlane.xlu0 %2803  ;;  %2992 = vadd.xlane.f32.xlu2 %v2991_v44  ;;  %v2978_v35 = vpop.xlane.xlu2 %2977 }
 0xa95   :  { %v2882_v7 = vmul.f32 %v2804_v59, %v8359_v19  ;;  %v3068_v40 = vmul.f32 %v2978_v35, %v8359_v19 }
 0xa96   :  { %v3134_v4 = vsub.f32 1.5, %v3133_v28 }
 0xa97   :  { %v5008_v24 = vpop.eup %5007  ;;  %v7248_v2 = vsub.f32 %v7154_v10, %v2882_v7  ;;  %v7250_v52 = vadd.f32 1e-06, %v3068_v40 }
 0xa98   :  { %v3135_v23 = vmul.f32 %v5006_v55, %v3134_v4  ;;  %v3141_v18 = vmul.f32 %v5008_v24, %v3099_v27  ;;  %vm3147_vm12 = vweird.f32 %v5008_v24  ;;  %v7280_v27 = vld [vmem:[%s8216_s3 + $0x3] ss:$0 sm:$0xff] }
 0xa99   :  { %v2946_v49 = vmul.f32 %v7248_v2, %v7248_v2  ;;  %5009 = vrsqrt.f32 %v7250_v52  ;;  %vm3148_vm14 = vmor %vm3146_vm13, %vm3147_vm12  ;;  %vm3156_vm2 = vweird.f32 %v7250_v52 }
 0xa9a   :  { %v3142_v62 = vmul.f32 %v5008_v24, %v3141_v18  ;;  %v3139_v50 = vsel %vm3138_vm11, %v5006_v55, %v3135_v23 }
 0xa9b   :  { %v2994_v56 = vsel %vm348_vm1, %v2946_v49, 0.0  ;;  %v3450_v46 = vmul.f32 %v3139_v50, %v7133_v53  ;;  %v8371_v53 = vld [vmem:[#allocation22_spill] sm:$0xff] }
 0xa9c   :  { %v3143_v38 = vmul.f32 0.5, %v3142_v62  ;;  %2995 = vadd.xlane.f32.xlu2 %v2994_v56  ;;  %v2981_v33 = vpop.xlane.xlu1 %2980  ;;  %v2807_v45 = vpop.xlane.xlu2 %2806  ;;  %v2729_v0 = vadd.f32 %v2673_v15, %v8371_v53 }
 0xa9d   :  { %v3069_v54 = vmul.f32 %v2981_v33, %v8359_v19  ;;  %v2883_v43 = vmul.f32 %v2807_v45, %v8359_v19  ;;  %v3483_v44 = vmul.f32 %v7265_v21, %v3450_v46  ;;  %v2678_v45 = vpop.f32.mrf.mxu1  ;;  %v8373_v46 = vld [vmem:[#allocation23_spill] sm:$0xff] }
 0xa9e   :  { %v3144_v17 = vsub.f32 1.5, %v3143_v38  ;;  %v7289_v18 = vadd.f32 %v7069_v3, %v2729_v0 }
 0xa9f   :  { %v5010_v63 = vpop.eup %5009  ;;  %v3101_v13 = vadd.f32 1e-06, %v3069_v54  ;;  %v7269_v47 = vsub.f32 %v7167_v37, %v2883_v43  ;;  %v3516_v58 = vadd.f32 %v7280_v27, %v3483_v44 }
 0xaa0   :  { %v3145_v6 = vmul.f32 %v5008_v24, %v3144_v17  ;;  %v3151_v22 = vmul.f32 %v5010_v63, %v7250_v52  ;;  %8372 = vst [vmem:[#allocation39_spill] sm:$0xff] %v7289_v18  ;;  %vm3157_vm15 = vweird.f32 %v5010_v63  ;;  %v2826_v43 = vsel %vm348_vm1, %v7289_v18, 0.0 }
 0xaa1   :  { %5011 = vrsqrt.f32 %v3101_v13  ;;  %v2947_v51 = vmul.f32 %v7269_v47, %v7269_v47  ;;  %vm3158_vm3 = vmor %vm3156_vm2, %vm3157_vm15  ;;  %vm3166_vm5 = vweird.f32 %v3101_v13 }
 0xaa2   :  { %v3149_v55 = vsel %vm3148_vm14, %v5008_v24, %v3145_v6  ;;  %v3152_v59 = vmul.f32 %v5010_v63, %v3151_v22  ;;  %v2730_v6 = vadd.f32 %v2675_v36, %v8373_v46 }
 0xaa3   :  { %v3451_v28 = vmul.f32 %v3149_v55, %v7144_v32  ;;  %v2997_v35 = vsel %vm348_vm1, %v2947_v51, 0.0 }
 0xaa4   :  { %2824 = vadd.xlane.f32.xlu2 %v2823_v60  ;;  %v3153_v4 = vmul.f32 0.5, %v3152_v59  ;;  %v2984_v40 = vpop.xlane.xlu1 %2983  ;;  %v2810_v24 = vpop.xlane.xlu2 %2809  ;;  %2998 = vadd.xlane.f32.xlu1 %v2997_v35  ;;  %v7310_v59 = vadd.f32 %v7069_v3, %v2730_v6 }
 0xaa5   :  { %v3484_v7 = vmul.f32 %v7265_v21, %v3451_v28  ;;  %v3070_v15 = vmul.f32 %v2984_v40, %v8359_v19  ;;  %v2884_v23 = vmul.f32 %v2810_v24, %v8359_v19  ;;  %v8375_v24 = vld [vmem:[#allocation24_spill] sm:$0xff] }
 0xaa6   :  { %v3154_v9 = vsub.f32 1.5, %v3153_v4  ;;  %8374 = vst [vmem:[#allocation42_spill] sm:$0xff] %v7310_v59 }
 0xaa7   :  { %v3517_v32 = vadd.f32 %v7280_v27, %v3484_v7  ;;  %v5012_v49 = vpop.eup %5011  ;;  %v7293_v62 = vadd.f32 1e-06, %v3070_v15  ;;  %v7296_v56 = vsub.f32 %v7180_v5, %v2884_v23  ;;  %v2731_v15 = vadd.f32 %v2678_v45, %v8375_v24 }
 0xaa8   :  { %v3155_v38 = vmul.f32 %v5010_v63, %v3154_v9  ;;  %v3161_v33 = vmul.f32 %v5012_v49, %v3101_v13  ;;  %vm3167_vm4 = vweird.f32 %v5012_v49  ;;  %v2829_v13 = vsel %vm348_vm1, %v7310_v59, 0.0 }
 0xaa9   :  { %v3552_v50 = vpack.c.bf16 %v3517_v32, %v3516_v58  ;;  %5013 = vrsqrt.f32 %v7293_v62  ;;  %v2948_v17 = vmul.f32 %v7296_v56, %v7296_v56  ;;  %vm3168_vm6 = vmor %vm3166_vm5, %vm3167_vm4  ;;  %v2680_v32 = vpop.f32.mrf.mxu1  ;;  %vm3176_vm7 = vweird.f32 %v7293_v62 }
 0xaaa   :  { %v3162_v54 = vmul.f32 %v5012_v49, %v3161_v33  ;;  %v3159_v55 = vsel %vm3158_vm3, %v5010_v63, %v3155_v38 }
 0xaab   :  { %4609 = vmatmul.msk.bf16.vlgmr.msra.gmra.mxu0 %vm348_vm1, %v3552_v50  ;;  %v3000_v22 = vsel %vm348_vm1, %v2948_v17, 0.0  ;;  %v3452_v36 = vmul.f32 %v3159_v55, %v7157_v41 }
 0xaac   :  { %2827 = vadd.xlane.f32.xlu2 %v2826_v43  ;;  %v3163_v51 = vmul.f32 0.5, %v3162_v54  ;;  %v2813_v60 = vpop.xlane.xlu1 %2812  ;;  %3001 = vadd.xlane.f32.xlu1 %v3000_v22  ;;  %v7330_v54 = vadd.f32 %v7069_v3, %v2731_v15 }
 0xaad   :  { %v2987_v53 = vpop.xlane.xlu0 %2986  ;;  %v2885_v0 = vmul.f32 %v2813_v60, %v8359_v19  ;;  %v3485_v50 = vmul.f32 %v7265_v21, %v3452_v36 }
 0xaae   :  { %v3164_v52 = vsub.f32 1.5, %v3163_v51  ;;  %v3071_v44 = vmul.f32 %v2987_v53, %v8359_v19  ;;  %8376 = vst [vmem:[#allocation40_spill] sm:$0xff] %v7330_v54 }
 0xaaf   :  { %v5014_v28 = vpop.eup %5013  ;;  %v7314_v35 = vsub.f32 %v7194_v48, %v2885_v0  ;;  %v3518_v46 = vadd.f32 %v7280_v27, %v3485_v50  ;;  %v2832_v0 = vsel %vm348_vm1, %v7330_v54, 0.0 }
 0xab0   :  { %v3165_v63 = vmul.f32 %v5012_v49, %v3164_v52  ;;  %v3171_v7 = vmul.f32 %v5014_v28, %v7293_v62  ;;  %v3103_v4 = vadd.f32 1e-06, %v3071_v44  ;;  %vm3177_vm0 = vweird.f32 %v5014_v28  ;;  %v8377_v52 = vld [vmem:[#allocation25_spill] sm:$0xff] }
 0xab1   :  { %v2949_v40 = vmul.f32 %v7314_v35, %v7314_v35  ;;  %v2732_v44 = vadd.f32 %v2680_v32, %v8377_v52  ;;  %vm3178_vm8 = vmor %vm3176_vm7, %vm3177_vm0  ;;  %v8381_v52 = vld [vmem:[#allocation27_spill] sm:$0xff] }
 0xab2   :  { %v3169_v23 = vsel %vm3168_vm6, %v5012_v49, %v3165_v63  ;;  %v3172_v58 = vmul.f32 %v5014_v28, %v3171_v7  ;;  %5015 = vrsqrt.f32 %v3103_v4  ;;  %v2683_v7 = vpop.f32.mrf.mxu1  ;;  %vm3186_vm10 = vweird.f32 %v3103_v4 }
 0xab3   :  { %v3453_v41 = vmul.f32 %v3169_v23, %v7170_v57  ;;  %v3003_v9 = vsel %vm348_vm1, %v2949_v40, 0.0 }
 0xab4   :  { %v3173_v38 = vmul.f32 0.5, %v3172_v58  ;;  %v2816_v33 = vpop.xlane.xlu1 %2815  ;;  %3004 = vadd.xlane.f32.xlu0 %v3003_v9  ;;  %2830 = vadd.xlane.f32.xlu1 %v2829_v13  ;;  %v7347_v58 = vadd.f32 %v7069_v3, %v2732_v44  ;;  %v8379_v13 = vld [vmem:[#allocation26_spill] sm:$0xff] }
 0xab5   :  { %v7325_v17 = vpop.xlane.xlu0 %2989  ;;  %v2886_v49 = vmul.f32 %v2816_v33, %v8359_v19  ;;  %v3486_v45 = vmul.f32 %v7265_v21, %v3453_v41  ;;  %v2733_v50 = vadd.f32 %v2683_v7, %v8379_v13 }
 0xab6   :  { %v3174_v57 = vsub.f32 1.5, %v3173_v38  ;;  %8378 = vst [vmem:[#allocation55_spill] sm:$0xff] %v7347_v58  ;;  %v2835_v33 = vsel %vm348_vm1, %v7347_v58, 0.0 }
 0xab7   :  { %v7333_v43 = vsub.f32 %v7207_v30, %v2886_v49  ;;  %v3519_v6 = vadd.f32 %v7280_v27, %v3486_v45 }
 0xab8   :  { %v5016_v22 = vpop.eup %5015  ;;  %v3175_v55 = vmul.f32 %v5014_v28, %v3174_v57 }
 0xab9   :  { %v3181_v51 = vmul.f32 %v5016_v22, %v3103_v4  ;;  %v3553_v60 = vpack.c.bf16 %v3519_v6, %v3518_v46  ;;  %v2950_v53 = vmul.f32 %v7333_v43, %v7333_v43  ;;  %vm3187_vm9 = vweird.f32 %v5016_v22 }
 0xaba   :  { %v3179_v40 = vsel %vm3178_vm8, %v5014_v28, %v3175_v55  ;;  %vm3188_vm11 = vmor %vm3186_vm10, %vm3187_vm9  ;;  %v7364_v6 = vadd.f32 %v7069_v3, %v2733_v50 }
 0xabb   :  { %v3182_v36 = vmul.f32 %v5016_v22, %v3181_v51  ;;  %4610 = vmatmul.msk.bf16.gmra.mxu0 %vm348_vm1, %v3553_v60  ;;  %v3006_v63 = vsel %vm348_vm1, %v2950_v53, 0.0  ;;  %v3454_v62 = vmul.f32 %v3179_v40, %v7183_v39  ;;  %v8382_v40 = vld [vmem:[#allocation28_spill] sm:$0xff] }
 0xabc   :  { %3007 = vadd.xlane.f32.xlu0 %v3006_v63  ;;  %2833 = vadd.xlane.f32.xlu1 %v2832_v0  ;;  %8380 = vst [vmem:[#allocation45_spill] sm:$0xff] %v7364_v6  ;;  %v2838_v0 = vsel %vm348_vm1, %v7364_v6, 0.0 }
 0xabd   :  { %v3183_v24 = vmul.f32 0.5, %v3182_v36  ;;  %v2819_v15 = vpop.xlane.xlu0 %2818  ;;  %v3487_v39 = vmul.f32 %v7265_v21, %v3454_v62  ;;  %v3072_v62 = vmul.f32 %v7325_v17, %v8359_v19 }
 0xabe   :  { %v2887_v23 = vmul.f32 %v2819_v15, %v8359_v19 }
 0xabf   :  { %v3184_v32 = vsub.f32 1.5, %v3183_v24 }
 0xac0   :  { %v7351_v41 = vsub.f32 %v7219_v11, %v2887_v23 }
 0xac1   :  { %v3185_v9 = vmul.f32 %v5016_v22, %v3184_v32 }
 0xac2   :  { %v2951_v28 = vmul.f32 %v7351_v41, %v7351_v41 }
 0xac3   :  { %v3189_v38 = vsel %vm3188_vm11, %v5016_v22, %v3185_v9  ;;  %v2685_v22 = vpop.f32.mrf.mxu1  ;;  %v3104_v9 = vadd.f32 1e-06, %v3072_v62 }
 0xac4   :  { %v3455_v49 = vmul.f32 %v3189_v38, %v7197_v42  ;;  %v3009_v45 = vsel %vm348_vm1, %v2951_v28, 0.0  ;;  %2836 = vadd.xlane.f32.xlu0 %v2835_v33  ;;  %v3520_v42 = vadd.f32 %v7280_v27, %v3487_v39  ;;  %v2734_v44 = vadd.f32 %v2685_v22, %v8381_v52  ;;  %v4713_v39 = vld [vmem:[%s8220_s7 + $0x38] sm:$0xff] }
 0xac5   :  { %v2822_v57 = vpop.xlane.xlu0 %2821  ;;  %3010 = vadd.xlane.f32.xlu2 %v3009_v45  ;;  %5017 = vrsqrt.f32 %v3104_v9  ;;  %4087 = vmatpush.bf16.msra.mxu2 %v4713_v39  ;;  %vm3196_vm13 = vweird.f32 %v3104_v9 }
 0xac6   :  { %v2888_v4 = vmul.f32 %v2822_v57, %v8359_v19  ;;  %v3488_v46 = vmul.f32 %v7265_v21, %v3455_v49  ;;  %v7379_v63 = vadd.f32 %v7069_v3, %v2734_v44 }
 0xac8   :  { %v7367_v55 = vsub.f32 %v7225_v61, %v2888_v4  ;;  %v3521_v51 = vadd.f32 %v7280_v27, %v3488_v46  ;;  %v2841_v15 = vsel %vm348_vm1, %v7379_v63, 0.0 }
 0xaca   :  { %v3554_v60 = vpack.c.bf16 %v3521_v51, %v3520_v42  ;;  %v2952_v53 = vmul.f32 %v7367_v55, %v7367_v55  ;;  %v4712_v42 = vld [vmem:[%s8220_s7 + $0x30] sm:$0xff] }
 0xacb   :  { %v2688_v7 = vpop.f32.mrf.mxu1  ;;  %v5018_v28 = vpop.eup %5017  ;;  %4088 = vmatpush.bf16.msra.mxu2 %v4712_v42 }
 0xacc   :  { %4611 = vmatmul.msk.bf16.gmra.mxu0 %vm348_vm1, %v3554_v60  ;;  %v3012_v36 = vsel %vm348_vm1, %v2952_v53, 0.0  ;;  %2839 = vadd.xlane.f32.xlu0 %v2838_v0  ;;  %v2735_v24 = vadd.f32 %v2688_v7, %v8382_v40  ;;  %v3191_v13 = vmul.f32 %v5018_v28, %v3104_v9  ;;  %vm3197_vm12 = vweird.f32 %v5018_v28  ;;  %v4711_v0 = vld [vmem:[%s8220_s7 + $0x28] sm:$0xff] }
 0xacd   :  { %3013 = vadd.xlane.f32.xlu2 %v3012_v36  ;;  %vm3198_vm14 = vmor %vm3196_vm13, %vm3197_vm12 }
 0xace   :  { %v7385_v23 = vadd.f32 %v7069_v3, %v2735_v24  ;;  %v3192_v50 = vmul.f32 %v5018_v28, %v3191_v13 }
 0xacf   :  { %4089 = vmatpush.bf16.msra.mxu2 %v4711_v0 }
 0xad0   :  { %v2844_v32 = vsel %vm348_vm1, %v7385_v23, 0.0  ;;  %v3193_v45 = vmul.f32 0.5, %v3192_v50 }
 0xad2   :  { %v3194_v57 = vsub.f32 1.5, %v3193_v45 }
 0xad3   :  { %v2690_v62 = vpop.f32.mrf.mxu1 }
 0xad4   :  { %v3195_v51 = vmul.f32 %v5018_v28, %v3194_v57 }
 0xad5   :  { %2842 = vadd.xlane.f32.xlu2 %v2841_v15 }
 0xad6   :  { %v3199_v52 = vsel %vm3198_vm14, %v5018_v28, %v3195_v51  ;;  %v4710_v28 = vld [vmem:[%s8220_s7 + $0x20] sm:$0xff] }
 0xad7   :  { %v3456_v9 = vmul.f32 %v3199_v52, %v7210_v29  ;;  %4090 = vmatpush.bf16.msra.mxu2 %v4710_v28 }
 0xadd   :  { %2845 = vadd.xlane.f32.xlu2 %v2844_v32 }
 0xb07   :  { %v2993_v38 = vpop.xlane.xlu2 %2992 }
 0xb08   :  { %v3073_v33 = vmul.f32 %v2993_v38, %v8359_v19 }
 0xb0a   :  { %v3105_v49 = vadd.f32 1e-06, %v3073_v33 }
 0xb0c   :  { %5019 = vrsqrt.f32 %v3105_v49  ;;  %vm3206_vm2 = vweird.f32 %v3105_v49 }
 0xb0f   :  { %v2996_v4 = vpop.xlane.xlu2 %2995 }
 0xb10   :  { %v3074_v46 = vmul.f32 %v2996_v4, %v8359_v19 }
 0xb12   :  { %v5020_v17 = vpop.eup %5019  ;;  %v7396_v22 = vadd.f32 1e-06, %v3074_v46  ;;  %v4709_v46 = vld [vmem:[%s8220_s7 + $0x18] sm:$0xff] }
 0xb13   :  { %v3201_v60 = vmul.f32 %v5020_v17, %v3105_v49  ;;  %vm3207_vm15 = vweird.f32 %v5020_v17  ;;  %v3489_v49 = vmul.f32 %v7265_v21, %v3456_v9  ;;  %4091 = vmatpush.bf16.msra.mxu2 %v4709_v46 }
 0xb14   :  { %5021 = vrsqrt.f32 %v7396_v22  ;;  %vm3208_vm3 = vmor %vm3206_vm2, %vm3207_vm15  ;;  %vm3216_vm5 = vweird.f32 %v7396_v22 }
 0xb15   :  { %v3202_v53 = vmul.f32 %v5020_v17, %v3201_v60 }
 0xb17   :  { %v3203_v44 = vmul.f32 0.5, %v3202_v53  ;;  %v2825_v36 = vpop.xlane.xlu2 %2824  ;;  %v2999_v7 = vpop.xlane.xlu1 %2998 }
 0xb18   :  { %v2889_v40 = vmul.f32 %v2825_v36, %v8359_v19  ;;  %v3075_v15 = vmul.f32 %v2999_v7, %v8359_v19  ;;  %v4708_v7 = vld [vmem:[%s8220_s7 + $0x10] sm:$0xff] }
 0xb19   :  { %v3204_v24 = vsub.f32 1.5, %v3203_v44  ;;  %v3522_v44 = vadd.f32 %v7280_v27, %v3489_v49  ;;  %4092 = vmatpush.bf16.msra.mxu2 %v4708_v7  ;;  %v4707_v49 = vld [vmem:[%s8220_s7 + $0x8] sm:$0xff] }
 0xb1a   :  { %v7407_v32 = vpop.eup %5021  ;;  %v7411_v13 = vsub.f32 %v7258_v12, %v2889_v40  ;;  %v7418_v33 = vadd.f32 1e-06, %v3075_v15  ;;  %v2693_v15 = vpop.f32.mrf.mxu1 }
 0xb1b   :  { %v3205_v50 = vmul.f32 %v5020_v17, %v3204_v24  ;;  %v3211_v38 = vmul.f32 %v7407_v32, %v7396_v22  ;;  %vm3217_vm4 = vweird.f32 %v7407_v32 }
 0xb1c   :  { %v2953_v45 = vmul.f32 %v7411_v13, %v7411_v13  ;;  %5023 = vrsqrt.f32 %v7418_v33  ;;  %vm3218_vm6 = vmor %vm3216_vm5, %vm3217_vm4  ;;  %vm3226_vm7 = vweird.f32 %v7418_v33 }
 0xb1d   :  { %v3209_v29 = vsel %vm3208_vm3, %v5020_v17, %v3205_v50  ;;  %v3212_v39 = vmul.f32 %v7407_v32, %v3211_v38  ;;  %4093 = vmatpush.bf16.msra.mxu2 %v4707_v49 }
 0xb1e   :  { %v3457_v57 = vmul.f32 %v3209_v29, %v7240_v26  ;;  %v3015_v4 = vsel %vm348_vm1, %v2953_v45, 0.0  ;;  %v8383_v45 = vld [vmem:[#allocation29_spill] sm:$0xff] }
 0xb1f   :  { %v3213_v42 = vmul.f32 0.5, %v3212_v39  ;;  %v2828_v51 = vpop.xlane.xlu2 %2827  ;;  %3016 = vadd.xlane.f32.xlu1 %v3015_v4  ;;  %v3002_v60 = vpop.xlane.xlu1 %3001  ;;  %v2736_v29 = vadd.f32 %v2690_v62, %v8383_v45  ;;  %v7456_v4 = vld [vmem:[%s8216_s3 + $0x6] ss:$0 sm:$0xff]  ;;  %v8384_v45 = vld [vmem:[#allocation30_spill] sm:$0xff] }
 0xb20   :  { %v2890_v17 = vmul.f32 %v2828_v51, %v8359_v19  ;;  %v3490_v53 = vmul.f32 %v7265_v21, %v3457_v57  ;;  %v3076_v26 = vmul.f32 %v3002_v60, %v8359_v19 }
 0xb21   :  { %v3214_v0 = vsub.f32 1.5, %v3213_v42  ;;  %v7465_v51 = vadd.f32 %v7069_v3, %v2736_v29  ;;  %v4706_v3 = vld [vmem:[%s8220_s7] sm:$0xff]  ;;  %v2737_v29 = vadd.f32 %v2693_v15, %v8384_v45  ;;  %s5174_s7 = smov 8  }
 0xb22   :  { %v7434_v52 = vsub.f32 %v7289_v18, %v2890_v17  ;;  %v3523_v36 = vadd.f32 %v7280_v27, %v3490_v53  ;;  %v5024_v40 = vpop.eup %5023  ;;  %v7442_v24 = vadd.f32 1e-06, %v3076_v26  ;;  %4094 = vmatpush.bf16.msra.mxu2 %v4706_v3 }
 0xb23   :  { %v3215_v9 = vmul.f32 %v7407_v32, %v3214_v0  ;;  %v3221_v28 = vmul.f32 %v5024_v40, %v7418_v33  ;;  %vm3227_vm0 = vweird.f32 %v5024_v40 }
 0xb24   :  { %v3555_v50 = vpack.c.bf16 %v3523_v36, %v3522_v44  ;;  %v2954_v38 = vmul.f32 %v7434_v52, %v7434_v52  ;;  %5025 = vrsqrt.f32 %v7442_v24  ;;  %vm3228_vm8 = vmor %vm3226_vm7, %vm3227_vm0  ;;  %vm3236_vm10 = vweird.f32 %v7442_v24 }
 0xb25   :  { %v3222_v39 = vmul.f32 %v5024_v40, %v3221_v28  ;;  %v3219_v22 = vsel %vm3218_vm6, %v7407_v32, %v3215_v9 }
 0xb26   :  { %4612 = vmatmul.msk.bf16.gmra.mxu0 %vm348_vm1, %v3555_v50  ;;  %v3018_v57 = vsel %vm348_vm1, %v2954_v38, 0.0  ;;  %v3458_v32 = vmul.f32 %v3219_v22, %v7248_v2  ;;  %v2847_v38 = vsel %vm348_vm1, %v7465_v51, 0.0 }
 0xb27   :  { %3019 = vadd.xlane.f32.xlu1 %v3018_v57  ;;  %v3223_v62 = vmul.f32 0.5, %v3222_v39  ;;  %v3005_v46 = vpop.xlane.xlu0 %3004  ;;  %v2831_v42 = vpop.xlane.xlu1 %2830 }
 0xb28   :  { %v3077_v60 = vmul.f32 %v3005_v46, %v8359_v19  ;;  %v2891_v17 = vmul.f32 %v2831_v42, %v8359_v19  ;;  %v3638_v53 = vpop.f32.mrf.mxu0  ;;  %v2695_v39 = vpop.f32.mrf.mxu1  ;;  %v3491_v46 = vmul.f32 %v7265_v21, %v3458_v32 }
 0xb29   :  { %v3224_v0 = vsub.f32 1.5, %v3223_v62  ;;  %v7470_v26 = vadd.f32 %v7456_v4, %v3638_v53 }
 0xb2a   :  { %v7472_v44 = vpop.eup %5025  ;;  %v7475_v36 = vadd.f32 1e-06, %v3077_v60  ;;  %v7478_v7 = vsub.f32 %v7310_v59, %v2891_v17 }
 0xb2b   :  { %v3225_v9 = vmul.f32 %v5024_v40, %v3224_v0  ;;  %v3231_v28 = vmul.f32 %v7472_v44, %v7442_v24  ;;  %v3718_v50 = vmul.f32 %v7470_v26, %v7470_v26  ;;  %vm3237_vm9 = vweird.f32 %v7472_v44 }
 0xb2c   :  { %5027 = vrsqrt.f32 %v7475_v36  ;;  %v2955_v2 = vmul.f32 %v7478_v7, %v7478_v7  ;;  %vm7533_vm11 = vmor %vm3236_vm10, %vm3237_vm9  ;;  %vm3246_vm13 = vweird.f32 %v7475_v36 }
 0xb2d   :  { %v3229_v33 = vsel %vm3228_vm8, %v5024_v40, %v3225_v9  ;;  %v3232_v57 = vmul.f32 %v7472_v44, %v3231_v28  ;;  %v3750_v49 = vmul.f32 %v3718_v50, %v7470_v26 }
 0xb2e   :  { %v3459_v22 = vmul.f32 %v3229_v33, %v7269_v47  ;;  %v3021_v62 = vsel %vm348_vm1, %v2955_v2, 0.0  ;;  %v7505_v47 = vld [vmem:[%s8216_s3 + $0x5] ss:$0 sm:$0xff]  ;;  %v3524_v33 = vadd.f32 %v7280_v27, %v3491_v46 }
 0xb2f   :  { %2848 = vadd.xlane.f32.xlu1 %v2847_v38  ;;  %v3233_v42 = vmul.f32 0.5, %v3232_v57  ;;  %v3782_v60 = vmul.f32 0.044715, %v3750_v49  ;;  %v3008_v17 = vpop.xlane.xlu0 %3007  ;;  %v2834_v53 = vpop.xlane.xlu1 %2833  ;;  %3022 = vadd.xlane.f32.xlu0 %v3021_v62  ;;  %v7508_v9 = vadd.f32 %v7505_v47, %v2737_v29 }
 0xb30   :  { %v3078_v15 = vmul.f32 %v3008_v17, %v8359_v19  ;;  %v2892_v40 = vmul.f32 %v2834_v53, %v8359_v19  ;;  %v3640_v0 = vpop.f32.mrf.mxu0  ;;  %v3492_v3 = vmul.f32 %v7265_v21, %v3459_v22  ;;  %v8385_v53 = vld [vmem:[#allocation31_spill] sm:$0xff] }
 0xb31   :  { %v3234_v32 = vsub.f32 1.5, %v3233_v42  ;;  %v3814_v28 = vadd.f32 %v3782_v60, %v7470_v26  ;;  %v7512_v50 = vadd.f32 %v7456_v4, %v3640_v0  ;;  %v2850_v17 = vsel %vm348_vm1, %v7508_v9, 0.0 }
 0xb32   :  { %v5028_v2 = vpop.eup %5027  ;;  %v7514_v38 = vadd.f32 1e-06, %v3078_v15  ;;  %v7517_v45 = vsub.f32 %v7330_v54, %v2892_v40  ;;  %v3525_v57 = vadd.f32 %v7280_v27, %v3492_v3  ;;  %v2738_v15 = vadd.f32 %v2695_v39, %v8385_v53  ;;  %v2698_v3 = vpop.f32.mrf.mxu1 }
 0xb33   :  { %v3235_v49 = vmul.f32 %v7472_v44, %v3234_v32  ;;  %v3241_v29 = vmul.f32 %v5028_v2, %v7475_v36  ;;  %v3846_v22 = vmul.f32 0.7978846, %v3814_v28  ;;  %v3719_v62 = vmul.f32 %v7512_v50, %v7512_v50 }
 0xb34   :  { %5029 = vrsqrt.f32 %v7514_v38  ;;  %v3556_v42 = vpack.c.bf16 %v3525_v57, %v3524_v33  ;;  %v2956_v46 = vmul.f32 %v7517_v45, %v7517_v45  ;;  %vm3247_vm12 = vweird.f32 %v5028_v2 }
 0xb35   :  { %v3242_v60 = vmul.f32 %v5028_v2, %v3241_v29  ;;  %v3751_v0 = vmul.f32 %v3719_v62, %v7512_v50  ;;  %v3239_v24 = vsel %vm7533_vm11, %v7472_v44, %v3235_v49  ;;  %5031 = vtanh.f32 %v3846_v22  ;;  %vm3248_vm14 = vmor %vm3246_vm13, %vm3247_vm12 }
 0xb36   :  { %4613 = vmatmul.msk.bf16.gmra.mxu0 %vm348_vm1, %v3556_v42  ;;  %v3024_v33 = vsel %vm348_vm1, %v2956_v46, 0.0  ;;  %v7551_v44 = vadd.f32 %v7505_v47, %v2738_v15  ;;  %v3460_v49 = vmul.f32 %v3239_v24, %v7296_v56  ;;  %vm3256_vm2 = vweird.f32 %v7514_v38 }
 0xb37   :  { %2851 = vadd.xlane.f32.xlu1 %v2850_v17  ;;  %v3243_v32 = vmul.f32 0.5, %v3242_v60  ;;  %v2837_v28 = vpop.xlane.xlu0 %2836  ;;  %v3783_v39 = vmul.f32 0.044715, %v3751_v0  ;;  %3025 = vadd.xlane.f32.xlu0 %v3024_v33 }
 0xb38   :  { %v3011_v57 = vpop.xlane.xlu2 %3010  ;;  %v2893_v29 = vmul.f32 %v2837_v28, %v8359_v19  ;;  %v3643_v53 = vpop.f32.mrf.mxu0 }
 0xb39   :  { %v3244_v62 = vsub.f32 1.5, %v3243_v32  ;;  %v3079_v42 = vmul.f32 %v3011_v57, %v8359_v19  ;;  %v7546_v17 = vadd.f32 %v7456_v4, %v3643_v53  ;;  %v3815_v22 = vadd.f32 %v3783_v39, %v7512_v50  ;;  %v8388_v53 = vld [vmem:[#allocation32_spill] sm:$0xff] }
 0xb3a   :  { %v7548_v40 = vpop.eup %5029  ;;  %v7556_v60 = vsub.f32 %v7347_v58, %v2893_v29  ;;  %v3493_v29 = vmul.f32 %v7265_v21, %v3460_v49 }
 0xb3b   :  { %v3245_v46 = vmul.f32 %v5028_v2, %v3244_v62  ;;  %v3251_v0 = vmul.f32 %v7548_v40, %v7514_v38  ;;  %v7561_v32 = vadd.f32 1e-06, %v3079_v42  ;;  %v3847_v28 = vmul.f32 0.7978846, %v3815_v22  ;;  %v5032_v39 = vpop.eup %5031 }
 0xb3c   :  { %v3720_v15 = vmul.f32 %v7546_v17, %v7546_v17  ;;  %v2957_v56 = vmul.f32 %v7556_v60, %v7556_v60  ;;  %v2739_v62 = vadd.f32 %v2698_v3, %v8388_v53  ;;  %v3910_v49 = vadd.f32 1.0, %v5032_v39 }
 0xb3d   :  { %v3249_v24 = vsel %vm3248_vm14, %v5028_v2, %v3245_v46  ;;  %v3252_v33 = vmul.f32 %v7548_v40, %v3251_v0  ;;  %5033 = vrsqrt.f32 %v7561_v32  ;;  %v2853_v2 = vsel %vm348_vm1, %v7551_v44, 0.0 }
 0xb3e   :  { %v3461_v36 = vmul.f32 %v3249_v24, %v7314_v35  ;;  %5035 = vtanh.f32 %v3847_v28  ;;  %v3752_v57 = vmul.f32 %v3720_v15, %v7546_v17  ;;  %v3027_v58 = vsel %vm348_vm1, %v2957_v56, 0.0  ;;  %v2700_v24 = vpop.f32.mrf.mxu1 }
 0xb3f   :  { %v3253_v42 = vmul.f32 0.5, %v3252_v33  ;;  %v2840_v22 = vpop.xlane.xlu0 %2839  ;;  %3028 = vadd.xlane.f32.xlu2 %v3027_v58  ;;  %2854 = vadd.xlane.f32.xlu0 %v2853_v2  ;;  %v3526_v33 = vadd.f32 %v7280_v27, %v3493_v29  ;;  %vm3257_vm15 = vweird.f32 %v7548_v40  ;;  %vm3266_vm5 = vweird.f32 %v7561_v32 }
 0xb40   :  { %v3784_v46 = vmul.f32 0.044715, %v3752_v57  ;;  %v7576_v0 = vpop.xlane.xlu2 %3013  ;;  %v2894_v54 = vmul.f32 %v2840_v22, %v8359_v19  ;;  %v3645_v35 = vpop.f32.mrf.mxu0  ;;  %v3494_v28 = vmul.f32 %v7265_v21, %v3461_v36  ;;  %v7587_v22 = vadd.f32 %v7505_v47, %v2739_v62  ;;  %vm7600_vm3 = vmor %vm3256_vm2, %vm3257_vm15 }
 0xb41   :  { %v3254_v15 = vsub.f32 1.5, %v3253_v42  ;;  %v7581_v3 = vadd.f32 %v7456_v4, %v3645_v35  ;;  %v3942_v35 = vmul.f32 0.5, %v3910_v49 }
 0xb42   :  { %v3816_v56 = vadd.f32 %v3784_v46, %v7546_v17  ;;  %v3527_v57 = vadd.f32 %v7280_v27, %v3494_v28  ;;  %v7591_v58 = vsub.f32 %v7364_v6, %v2894_v54  ;;  %v2856_v49 = vsel %vm348_vm1, %v7587_v22, 0.0 }
 0xb43   :  { %v5034_v53 = vpop.eup %5033  ;;  %v3721_v39 = vmul.f32 %v7581_v3, %v7581_v3  ;;  %v3255_v42 = vmul.f32 %v7548_v40, %v3254_v15 }
 0xb44   :  { %v5036_v36 = vpop.eup %5035  ;;  %v3261_v2 = vmul.f32 %v5034_v53, %v7561_v32  ;;  %v3848_v29 = vmul.f32 0.7978846, %v3816_v56  ;;  %v3557_v46 = vpack.c.bf16 %v3527_v57, %v3526_v33  ;;  %v2958_v15 = vmul.f32 %v7591_v58, %v7591_v58  ;;  %v8391_v56 = vld [vmem:[#allocation33_spill] sm:$0xff] }
 0xb45   :  { %v3911_v28 = vadd.f32 1.0, %v5036_v36  ;;  %v3753_v59 = vmul.f32 %v3721_v39, %v7581_v3  ;;  %v2740_v33 = vadd.f32 %v2700_v24, %v8391_v56  ;;  %v3259_v38 = vsel %vm7600_vm3, %v7548_v40, %v3255_v42  ;;  %v8393_v56 = vld [vmem:[#allocation34_spill] sm:$0xff] }
 0xb46   :  { %v3262_v62 = vmul.f32 %v5034_v53, %v3261_v2  ;;  %4614 = vmatmul.msk.bf16.gmra.mxu0 %vm348_vm1, %v3557_v46  ;;  %5037 = vtanh.f32 %v3848_v29  ;;  %v3974_v2 = vmul.f32 %v3942_v35, %v7470_v26  ;;  %v2703_v12 = vpop.f32.mrf.mxu1  ;;  %vm3267_vm4 = vweird.f32 %v5034_v53 }
 0xb47   :  { %v3943_v6 = vmul.f32 0.5, %v3911_v28  ;;  %v3785_v39 = vmul.f32 0.044715, %v3753_v59  ;;  %2857 = vadd.xlane.f32.xlu0 %v2856_v49  ;;  %v3030_v28 = vsel %vm348_vm1, %v2958_v15, 0.0  ;;  %v3462_v59 = vmul.f32 %v3259_v38, %v7333_v43  ;;  %vm3268_vm6 = vmor %vm3266_vm5, %vm3267_vm4 }
 0xb48   :  { %v3263_v57 = vmul.f32 0.5, %v3262_v62  ;;  %v2843_v36 = vpop.xlane.xlu2 %2842  ;;  %3031 = vadd.xlane.f32.xlu2 %v3030_v28  ;;  %v7626_v62 = vadd.f32 %v7505_v47, %v2740_v33  ;;  %v2741_v33 = vadd.f32 %v2703_v12, %v8393_v56 }
 0xb49   :  { %v3975_v29 = vmul.f32 %v3943_v6, %v7512_v50  ;;  %v2895_v46 = vmul.f32 %v2843_v36, %v8359_v19  ;;  %v3648_v18 = vpop.f32.mrf.mxu0  ;;  %v3817_v24 = vadd.f32 %v3785_v39, %v7581_v3  ;;  %v3495_v49 = vmul.f32 %v7265_v21, %v3462_v59 }
 0xb4a   :  { %v3264_v61 = vsub.f32 1.5, %v3263_v57  ;;  %v7618_v40 = vadd.f32 %v7456_v4, %v3648_v18  ;;  %8392 = vst [vmem:[#allocation44_spill] sm:$0xff] %v7626_v62 }
 0xb4b   :  { %v4022_v42 = vpack.c.bf16 %v3975_v29, %v3974_v2  ;;  %v7622_v26 = vsub.f32 %v7379_v63, %v2895_v46  ;;  %v3849_v50 = vmul.f32 0.7978846, %v3817_v24  ;;  %v3528_v12 = vadd.f32 %v7280_v27, %v3495_v49 }
 0xb4c   :  { %v3265_v6 = vmul.f32 %v5034_v53, %v3264_v61  ;;  %v5038_v35 = vpop.eup %5037  ;;  %v3722_v54 = vmul.f32 %v7618_v40, %v7618_v40 }
 0xb4d   :  { %4095 = vmatmul.bf16.vlgmr.msra.gmra.mxu2 %v4022_v42  ;;  %v2959_v18 = vmul.f32 %v7622_v26, %v7622_v26  ;;  %5039 = vtanh.f32 %v3849_v50  ;;  %v3912_v57 = vadd.f32 1.0, %v5038_v35  ;;  %v7649_v42 = vadd.f32 %v7505_v47, %v2741_v33 }
 0xb4e   :  { %v3269_v43 = vsel %vm3268_vm6, %v5034_v53, %v3265_v6  ;;  %v3754_v61 = vmul.f32 %v3722_v54, %v7618_v40  ;;  %v2859_v53 = vsel %vm348_vm1, %v7626_v62, 0.0  ;;  %v2705_v6 = vpop.f32.mrf.mxu1 }
 0xb4f   :  { %v3463_v15 = vmul.f32 %v3269_v43, %v7351_v41  ;;  %v3033_v32 = vsel %vm348_vm1, %v2959_v18, 0.0  ;;  %v3944_v35 = vmul.f32 0.5, %v3912_v57  ;;  %v2862_v33 = vsel %vm348_vm1, %v7649_v42, 0.0 }
 0xb50   :  { %v2846_v38 = vpop.xlane.xlu2 %2845  ;;  %3034 = vadd.xlane.f32.xlu1 %v3033_v32  ;;  %v3786_v39 = vmul.f32 0.044715, %v3754_v61  ;;  %2860 = vadd.xlane.f32.xlu2 %v2859_v53  ;;  %v8394_v61 = vld [vmem:[#allocation35_spill] sm:$0xff] }
 0xb51   :  { %v2896_v36 = vmul.f32 %v2846_v38, %v8359_v19  ;;  %v3650_v2 = vpop.f32.mrf.mxu0  ;;  %v3496_v41 = vmul.f32 %v7265_v21, %v3463_v15  ;;  %v2742_v32 = vadd.f32 %v2705_v6, %v8394_v61  ;;  %v3976_v38 = vmul.f32 %v3944_v35, %v7546_v17 }
 0xb52   :  { %v3651_v29 = vadd.f32 %v7456_v4, %v3650_v2  ;;  %v3818_v46 = vadd.f32 %v3786_v39, %v7618_v40  ;;  %v3080_v61 = vmul.f32 %v7576_v0, %v8359_v19 }
 0xb53   :  { %v7644_v28 = vsub.f32 %v7385_v23, %v2896_v36  ;;  %v3529_v24 = vadd.f32 %v7280_v27, %v3496_v41  ;;  %v5040_v59 = vpop.eup %5039  ;;  %v7661_v36 = vadd.f32 %v7505_v47, %v2742_v32 }
 0xb54   :  { %v3723_v50 = vmul.f32 %v3651_v29, %v3651_v29  ;;  %v3850_v21 = vmul.f32 0.7978846, %v3818_v46  ;;  %v3913_v43 = vadd.f32 1.0, %v5040_v59  ;;  %v3112_v32 = vadd.f32 1e-06, %v3080_v61 }
 0xb55   :  { %v3558_v54 = vpack.c.bf16 %v3529_v24, %v3528_v12  ;;  %v2960_v18 = vmul.f32 %v7644_v28, %v7644_v28  ;;  %v8395_v12 = vld [vmem:[#allocation36_spill] sm:$0xff]  ;;  %v2865_v59 = vsel %vm348_vm1, %v7661_v36, 0.0 }
 0xb56   :  { %v3755_v15 = vmul.f32 %v3723_v50, %v3651_v29  ;;  %v3945_v49 = vmul.f32 0.5, %v3913_v43  ;;  %5041 = vtanh.f32 %v3850_v21  ;;  %v2708_v2 = vpop.f32.mrf.mxu1  ;;  %vm3276_vm7 = vweird.f32 %v3112_v32 }
 0xb57   :  { %4615 = vmatmul.msk.bf16.gmra.mxu0 %vm348_vm1, %v3558_v54  ;;  %v3036_v27 = vsel %vm348_vm1, %v2960_v18, 0.0  ;;  %v2743_v24 = vadd.f32 %v2708_v2, %v8395_v12 }
 0xb58   :  { %v3787_v56 = vmul.f32 0.044715, %v3755_v15  ;;  %3037 = vadd.xlane.f32.xlu1 %v3036_v27  ;;  %v3977_v57 = vmul.f32 %v3945_v49, %v7581_v3  ;;  %2863 = vadd.xlane.f32.xlu2 %v2862_v33 }
 0xb59   :  { %v7667_v3 = vadd.f32 %v7505_v47, %v2743_v24 }
 0xb5a   :  { %v3819_v39 = vadd.f32 %v3787_v56, %v3651_v29  ;;  %v4023_v53 = vpack.c.bf16 %v3977_v57, %v3976_v38 }
 0xb5b   :  { %v2868_v21 = vsel %vm348_vm1, %v7667_v3, 0.0 }
 0xb5c   :  { %v3851_v41 = vmul.f32 0.7978846, %v3819_v39  ;;  %v5042_v46 = vpop.eup %5041 }
 0xb5d   :  { %4100 = vmatmul.bf16.gmra.mxu2 %v4023_v53  ;;  %v3914_v17 = vadd.f32 1.0, %v5042_v46 }
 0xb5e   :  { %5043 = vtanh.f32 %v3851_v41 }
 0xb5f   :  { %v3946_v35 = vmul.f32 0.5, %v3914_v17  ;;  %5045 = vrsqrt.f32 %v3112_v32 }
 0xb60   :  { %2866 = vadd.xlane.f32.xlu1 %v2865_v59 }
 0xb61   :  { %v3978_v18 = vmul.f32 %v3946_v35, %v7618_v40 }
 0xb64   :  { %v5044_v6 = vpop.eup %5043 }
 0xb65   :  { %v3915_v50 = vadd.f32 1.0, %v5044_v6  ;;  %v5046_v27 = vpop.eup %5045 }
 0xb66   :  { %v3271_v49 = vmul.f32 %v5046_v27, %v3112_v32  ;;  %vm3277_vm0 = vweird.f32 %v5046_v27 }
 0xb67   :  { %v3947_v54 = vmul.f32 0.5, %v3915_v50  ;;  %vm3278_vm8 = vmor %vm3276_vm7, %vm3277_vm0 }
 0xb68   :  { %2869 = vadd.xlane.f32.xlu1 %v2868_v21  ;;  %v3272_v56 = vmul.f32 %v5046_v27, %v3271_v49 }
 0xb69   :  { %v3979_v43 = vmul.f32 %v3947_v54, %v3651_v29 }
 0xb6a   :  { %v3273_v39 = vmul.f32 0.5, %v3272_v56 }
 0xb6b   :  { %v4024_v15 = vpack.c.bf16 %v3979_v43, %v3978_v18 }
 0xb6c   :  { %v3274_v53 = vsub.f32 1.5, %v3273_v39 }
 0xb6d   :  { %4105 = vmatmul.bf16.gmra.mxu2 %v4024_v15 }
 0xb6e   :  { %v3275_v46 = vmul.f32 %v5046_v27, %v3274_v53 }
 0xb70   :  { %v3279_v24 = vsel %vm3278_vm8, %v5046_v27, %v3275_v46  ;;  %v7702_v46 = vld [vmem:[%s8216_s3 + $0x2] ss:$0 sm:$0xff] }
 0xb71   :  { %v3464_v15 = vmul.f32 %v3279_v24, %v7367_v55 }
 0xb92   :  { %v3017_v33 = vpop.xlane.xlu1 %3016 }
 0xb93   :  { %v3081_v38 = vmul.f32 %v3017_v33, %v8359_v19 }
 0xb95   :  { %v3113_v57 = vadd.f32 1e-06, %v3081_v38 }
 0xb97   :  { %5047 = vrsqrt.f32 %v3113_v57  ;;  %vm3286_vm10 = vweird.f32 %v3113_v57 }
 0xb9a   :  { %v3020_v2 = vpop.xlane.xlu1 %3019 }
 0xb9b   :  { %v3082_v40 = vmul.f32 %v3020_v2, %v8359_v19 }
 0xb9d   :  { %v5048_v29 = vpop.eup %5047  ;;  %v7676_v41 = vadd.f32 1e-06, %v3082_v40 }
 0xb9e   :  { %v3281_v0 = vmul.f32 %v5048_v29, %v3113_v57  ;;  %vm3287_vm9 = vweird.f32 %v5048_v29 }
 0xb9f   :  { %5049 = vrsqrt.f32 %v7676_v41  ;;  %vm3288_vm11 = vmor %vm3286_vm10, %vm3287_vm9  ;;  %vm3296_vm13 = vweird.f32 %v7676_v41 }
 0xba0   :  { %v3282_v12 = vmul.f32 %v5048_v29, %v3281_v0  ;;  %v3497_v0 = vmul.f32 %v7702_v46, %v3464_v15 }
 0xba2   :  { %v3283_v59 = vmul.f32 0.5, %v3282_v12  ;;  %v2849_v17 = vpop.xlane.xlu1 %2848  ;;  %v3023_v6 = vpop.xlane.xlu0 %3022 }
 0xba3   :  { %v2897_v50 = vmul.f32 %v2849_v17, %v8359_v19  ;;  %v3653_v35 = vpop.f32.mrf.mxu0  ;;  %v3083_v54 = vmul.f32 %v3023_v6, %v8359_v19 }
 0xba4   :  { %v3284_v21 = vsub.f32 1.5, %v3283_v59  ;;  %v7682_v18 = vadd.f32 %v7456_v4, %v3653_v35 }
 0xba5   :  { %v5050_v43 = vpop.eup %5049  ;;  %v7686_v61 = vsub.f32 %v7465_v51, %v2897_v50  ;;  %v7689_v49 = vadd.f32 1e-06, %v3083_v54  ;;  %v7718_v54 = vld [vmem:[%s8216_s3 + $0x3] ss:$0 sm:$0xff] }
 0xba6   :  { %v3285_v32 = vmul.f32 %v5048_v29, %v3284_v21  ;;  %v3291_v27 = vmul.f32 %v5050_v43, %v7676_v41  ;;  %v3724_v56 = vmul.f32 %v7682_v18, %v7682_v18  ;;  %vm3297_vm12 = vweird.f32 %v5050_v43 }
 0xba7   :  { %v2961_v33 = vmul.f32 %v7686_v61, %v7686_v61  ;;  %5051 = vrsqrt.f32 %v7689_v49  ;;  %vm3298_vm14 = vmor %vm3296_vm13, %vm3297_vm12  ;;  %vm3306_vm2 = vweird.f32 %v7689_v49 }
 0xba8   :  { %v3289_v38 = vsel %vm3288_vm11, %v5048_v29, %v3285_v32  ;;  %v3292_v39 = vmul.f32 %v5050_v43, %v3291_v27  ;;  %v3756_v53 = vmul.f32 %v3724_v56, %v7682_v18  ;;  %v2710_v27 = vpop.f32.mrf.mxu1 }
 0xba9   :  { %v3465_v55 = vmul.f32 %v3289_v38, %v7411_v13  ;;  %v3039_v57 = vsel %vm348_vm1, %v2961_v33, 0.0  ;;  %v3530_v38 = vadd.f32 %v7718_v54, %v3497_v0 }
 0xbaa   :  { %v3293_v2 = vmul.f32 0.5, %v3292_v39  ;;  %v2852_v40 = vpop.xlane.xlu1 %2851  ;;  %3040 = vadd.xlane.f32.xlu0 %v3039_v57  ;;  %v3788_v29 = vmul.f32 0.044715, %v3756_v53  ;;  %v3026_v17 = vpop.xlane.xlu0 %3025 }
 0xbab   :  { %v2898_v12 = vmul.f32 %v2852_v40, %v8359_v19  ;;  %v3655_v24 = vpop.f32.mrf.mxu0  ;;  %v3498_v13 = vmul.f32 %v7702_v46, %v3465_v55  ;;  %v3084_v35 = vmul.f32 %v3026_v17, %v8359_v19 }
 0xbac   :  { %v3294_v59 = vsub.f32 1.5, %v3293_v2  ;;  %v7708_v6 = vadd.f32 %v7456_v4, %v3655_v24  ;;  %v3820_v50 = vadd.f32 %v3788_v29, %v7682_v18  ;;  %v8396_v29 = vld [vmem:[#allocation37_spill] sm:$0xff] }
 0xbad   :  { %v7713_v21 = vsub.f32 %v7508_v9, %v2898_v12  ;;  %v3531_v15 = vadd.f32 %v7718_v54, %v3498_v13  ;;  %v5052_v32 = vpop.eup %5051  ;;  %v7725_v53 = vadd.f32 1e-06, %v3084_v35  ;;  %v2744_v12 = vadd.f32 %v2710_v27, %v8396_v29 }
 0xbae   :  { %v3295_v56 = vmul.f32 %v5050_v43, %v3294_v59  ;;  %v3725_v33 = vmul.f32 %v7708_v6, %v7708_v6  ;;  %v3301_v39 = vmul.f32 %v5052_v32, %v7689_v49  ;;  %v3852_v55 = vmul.f32 0.7978846, %v3820_v50 }
 0xbaf   :  { %v3559_v2 = vpack.c.bf16 %v3531_v15, %v3530_v38  ;;  %v2962_v40 = vmul.f32 %v7713_v21, %v7713_v21  ;;  %5053 = vrsqrt.f32 %v7725_v53  ;;  %vm3307_vm15 = vweird.f32 %v5052_v32 }
 0xbb0   :  { %v3757_v57 = vmul.f32 %v3725_v33, %v7708_v6  ;;  %v3302_v24 = vmul.f32 %v5052_v32, %v3301_v39  ;;  %v3299_v13 = vsel %vm3298_vm14, %v5050_v43, %v3295_v56  ;;  %5055 = vtanh.f32 %v3852_v55  ;;  %vm3308_vm3 = vmor %vm3306_vm2, %vm3307_vm15 }
 0xbb1   :  { %4616 = vmatmul.msk.bf16.gmra.mxu0 %vm348_vm1, %v3559_v2  ;;  %v3042_v59 = vsel %vm348_vm1, %v2962_v40, 0.0  ;;  %v3466_v15 = vmul.f32 %v3299_v13, %v7434_v52  ;;  %v7740_v38 = vadd.f32 %v7505_v47, %v2744_v12  ;;  %vm3316_vm5 = vweird.f32 %v7725_v53 }
 0xbb2   :  { %v3789_v0 = vmul.f32 0.044715, %v3757_v57  ;;  %v3303_v17 = vmul.f32 0.5, %v3302_v24  ;;  %3043 = vadd.xlane.f32.xlu0 %v3042_v59  ;;  %v3029_v50 = vpop.xlane.xlu2 %3028  ;;  %v2855_v35 = vpop.xlane.xlu0 %2854 }
 0xbb3   :  { %v3085_v43 = vmul.f32 %v3029_v50, %v8359_v19  ;;  %v2899_v56 = vmul.f32 %v2855_v35, %v8359_v19  ;;  %v3658_v33 = vpop.f32.mrf.mxu0  ;;  %v3499_v49 = vmul.f32 %v7702_v46, %v3466_v15 }
 0xbb4   :  { %v3821_v41 = vadd.f32 %v3789_v0, %v7708_v6  ;;  %v3304_v27 = vsub.f32 1.5, %v3303_v17  ;;  %v7743_v55 = vadd.f32 %v7456_v4, %v3658_v33  ;;  %v2871_v17 = vsel %vm348_vm1, %v7740_v38, 0.0 }
 0xbb5   :  { %v7746_v2 = vadd.f32 1e-06, %v3085_v43  ;;  %v7749_v52 = vsub.f32 %v7551_v44, %v2899_v56  ;;  %v7751_v40 = vpop.eup %5053  ;;  %v3532_v33 = vadd.f32 %v7718_v54, %v3499_v49 }
 0xbb6   :  { %v3853_v39 = vmul.f32 0.7978846, %v3821_v41  ;;  %v3305_v57 = vmul.f32 %v5052_v32, %v3304_v27  ;;  %v3726_v47 = vmul.f32 %v7743_v55, %v7743_v55  ;;  %v5056_v29 = vpop.eup %5055  ;;  %v3311_v24 = vmul.f32 %v7751_v40, %v7725_v53  ;;  %v4714_v53 = vld [vmem:[%s8221_s8] sm:$0xff] }
 0xbb7   :  { %v2963_v59 = vmul.f32 %v7749_v52, %v7749_v52  ;;  %v3916_v15 = vadd.f32 1.0, %v5056_v29  ;;  %vm3317_vm4 = vweird.f32 %v7751_v40  ;;  %vm3326_vm7 = vweird.f32 %v7746_v2 }
 0xbb8   :  { %5057 = vtanh.f32 %v3853_v39  ;;  %v3309_v12 = vsel %vm3308_vm3, %v5052_v32, %v3305_v57  ;;  %v3758_v0 = vmul.f32 %v3726_v47, %v7743_v55  ;;  %v3312_v41 = vmul.f32 %v7751_v40, %v3311_v24  ;;  %vm7799_vm6 = vmor %vm3316_vm5, %vm3317_vm4 }
 0xbb9   :  { %5059 = vrsqrt.f32 %v7746_v2  ;;  %v3467_v13 = vmul.f32 %v3309_v12, %v7478_v7  ;;  %v3045_v35 = vsel %vm348_vm1, %v2963_v59, 0.0 }
 0xbba   :  { %2872 = vadd.xlane.f32.xlu0 %v2871_v17  ;;  %v3790_v32 = vmul.f32 0.044715, %v3758_v0  ;;  %v2858_v50 = vpop.xlane.xlu0 %2857  ;;  %v3313_v43 = vmul.f32 0.5, %v3312_v41  ;;  %3046 = vadd.xlane.f32.xlu2 %v3045_v35  ;;  %v4715_v35 = vld [vmem:[%s8221_s8 + $0x8] sm:$0xff] }
 0xbbb   :  { %v3500_v27 = vmul.f32 %v7702_v46, %v3467_v13  ;;  %v2900_v7 = vmul.f32 %v2858_v50, %v8359_v19  ;;  %v3660_v56 = vpop.f32.mrf.mxu0  ;;  %v3032_v47 = vpop.xlane.xlu2 %3031  ;;  %v3948_v50 = vmul.f32 0.5, %v3916_v15  ;;  %4296 = vmatpush.bf16.msra.mxu3 %v4715_v35 }
 0xbbc   :  { %v3822_v57 = vadd.f32 %v3790_v32, %v7743_v55  ;;  %v7774_v12 = vadd.f32 %v7456_v4, %v3660_v56  ;;  %v3314_v29 = vsub.f32 1.5, %v3313_v43  ;;  %v3086_v0 = vmul.f32 %v3032_v47, %v8359_v19 }
 0xbbd   :  { %v3533_v24 = vadd.f32 %v7718_v54, %v3500_v27  ;;  %v7779_v59 = vsub.f32 %v7587_v22, %v2900_v7 }
 0xbbe   :  { %v5058_v39 = vpop.eup %5057  ;;  %v3854_v41 = vmul.f32 0.7978846, %v3822_v57  ;;  %v3727_v32 = vmul.f32 %v7774_v12, %v7774_v12  ;;  %v3315_v27 = vmul.f32 %v7751_v40, %v3314_v29  ;;  %v7788_v43 = vadd.f32 1e-06, %v3086_v0 }
 0xbbf   :  { %v5060_v13 = vpop.eup %5059  ;;  %v3917_v17 = vadd.f32 1.0, %v5058_v39  ;;  %v3560_v56 = vpack.c.bf16 %v3533_v24, %v3532_v33  ;;  %v2964_v7 = vmul.f32 %v7779_v59, %v7779_v59  ;;  %4297 = vmatpush.bf16.msra.mxu3 %v4714_v53 }
 0xbc0   :  { %v3321_v49 = vmul.f32 %v5060_v13, %v7746_v2  ;;  %v3759_v47 = vmul.f32 %v3727_v32, %v7774_v12  ;;  %5061 = vrsqrt.f32 %v7788_v43  ;;  %v3319_v32 = vsel %vm7799_vm6, %v7751_v40, %v3315_v27 }
 0xbc1   :  { %v3949_v57 = vmul.f32 0.5, %v3917_v17  ;;  %4617 = vmatmul.msk.bf16.gmra.mxu0 %vm348_vm1, %v3560_v56  ;;  %v3048_v15 = vsel %vm348_vm1, %v2964_v7, 0.0  ;;  %v3980_v17 = vmul.f32 %v3948_v50, %v7682_v18  ;;  %vm3327_vm0 = vweird.f32 %v5060_v13 }
 0xbc2   :  { %v3322_v39 = vmul.f32 %v5060_v13, %v3321_v49  ;;  %v3791_v29 = vmul.f32 0.044715, %v3759_v47  ;;  %5063 = vtanh.f32 %v3854_v41  ;;  %3049 = vadd.xlane.f32.xlu2 %v3048_v15  ;;  %v3468_v33 = vmul.f32 %v3319_v32, %v7517_v45  ;;  %vm3328_vm8 = vmor %vm3326_vm7, %vm3327_vm0 }
 0xbc3   :  { %v3035_v0 = vpop.xlane.xlu1 %3034  ;;  %v3981_v49 = vmul.f32 %v3949_v57, %v7708_v6  ;;  %v3663_v56 = vpop.f32.mrf.mxu0  ;;  %vm3336_vm10 = vweird.f32 %v7788_v43 }
 0xbc4   :  { %v3323_v24 = vmul.f32 0.5, %v3322_v39  ;;  %v3087_v35 = vmul.f32 %v3035_v0, %v8359_v19  ;;  %v3823_v39 = vadd.f32 %v3791_v29, %v7774_v12  ;;  %v2861_v18 = vpop.xlane.xlu2 %2860  ;;  %v7814_v6 = vadd.f32 %v7456_v4, %v3663_v56 }
 0xbc5   :  { %v4025_v50 = vpack.c.bf16 %v3981_v49, %v3980_v17  ;;  %v2901_v57 = vmul.f32 %v2861_v18, %v8359_v19 }
 0xbc6   :  { %v3324_v7 = vsub.f32 1.5, %v3323_v24  ;;  %v7816_v47 = vadd.f32 1e-06, %v3087_v35  ;;  %v3855_v41 = vmul.f32 0.7978846, %v3823_v39  ;;  %v3728_v27 = vmul.f32 %v7814_v6, %v7814_v6  ;;  %v7822_v15 = vpop.eup %5061 }
 0xbc7   :  { %4110 = vmatmul.bf16.gmra.mxu2 %v4025_v50  ;;  %v7828_v24 = vsub.f32 %v7626_v62, %v2901_v57  ;;  %v3331_v2 = vmul.f32 %v7822_v15, %v7788_v43  ;;  %vm3337_vm9 = vweird.f32 %v7822_v15 }
 0xbc8   :  { %v3325_v40 = vmul.f32 %v5060_v13, %v3324_v7  ;;  %5065 = vrsqrt.f32 %v7816_v47  ;;  %v5064_v0 = vpop.eup %5063  ;;  %v3760_v49 = vmul.f32 %v3728_v27, %v7814_v6  ;;  %v3501_v7 = vmul.f32 %v7702_v46, %v3468_v33  ;;  %vm7859_vm11 = vmor %vm3336_vm10, %vm3337_vm9 }
 0xbc9   :  { %5067 = vtanh.f32 %v3855_v41  ;;  %v2965_v45 = vmul.f32 %v7828_v24, %v7828_v24  ;;  %v3332_v53 = vmul.f32 %v7822_v15, %v3331_v2  ;;  %v3918_v57 = vadd.f32 1.0, %v5064_v0 }
 0xbca   :  { %v3329_v29 = vsel %vm3328_vm8, %v5060_v13, %v3325_v40  ;;  %v3792_v35 = vmul.f32 0.044715, %v3760_v49  ;;  %vm3346_vm13 = vweird.f32 %v7816_v47 }
 0xbcb   :  { %v3469_v17 = vmul.f32 %v3329_v29, %v7556_v60  ;;  %v7837_v32 = vpop.xlane.xlu1 %3037  ;;  %v3051_v56 = vsel %vm348_vm1, %v2965_v45, 0.0  ;;  %v3665_v13 = vpop.f32.mrf.mxu0  ;;  %v3333_v18 = vmul.f32 0.5, %v3332_v53 }
 0xbcc   :  { %v2864_v50 = vpop.xlane.xlu2 %2863  ;;  %3052 = vadd.xlane.f32.xlu1 %v3051_v56  ;;  %v7843_v60 = vadd.f32 %v7456_v4, %v3665_v13  ;;  %v3824_v41 = vadd.f32 %v3792_v35, %v7814_v6  ;;  %v3534_v35 = vadd.f32 %v7718_v54, %v3501_v7 }
 0xbcd   :  { %v3502_v39 = vmul.f32 %v7702_v46, %v3469_v17  ;;  %v2902_v27 = vmul.f32 %v2864_v50, %v8359_v19  ;;  %v3334_v49 = vsub.f32 1.5, %v3333_v18  ;;  %v3950_v18 = vmul.f32 0.5, %v3918_v57  ;;  %v7871_v57 = vld [vmem:[%s8216_s3 + $0x7] ss:$0 sm:$0xff] }
 0xbce   :  { %v5066_v40 = vpop.eup %5065  ;;  %v3729_v17 = vmul.f32 %v7843_v60, %v7843_v60  ;;  %v3856_v45 = vmul.f32 0.7978846, %v3824_v41 }
 0xbcf   :  { %v3535_v29 = vadd.f32 %v7718_v54, %v3502_v39  ;;  %v5068_v2 = vpop.eup %5067  ;;  %v3341_v33 = vmul.f32 %v5066_v40, %v7816_v47  ;;  %v7854_v0 = vsub.f32 %v7649_v42, %v2902_v27  ;;  %v3335_v56 = vmul.f32 %v7822_v15, %v3334_v49 }
 0xbd0   :  { %v4096_v53 = vpop.f32.mrf.mxu2  ;;  %v3761_v39 = vmul.f32 %v3729_v17, %v7843_v60  ;;  %5069 = vtanh.f32 %v3856_v45  ;;  %v3919_v41 = vadd.f32 1.0, %v5068_v2  ;;  %vm3347_vm12 = vweird.f32 %v5066_v40 }
 0xbd1   :  { %v3342_v13 = vmul.f32 %v5066_v40, %v3341_v33  ;;  %v3561_v62 = vpack.c.bf16 %v3535_v29, %v3534_v35  ;;  %v2966_v43 = vmul.f32 %v7854_v0, %v7854_v0  ;;  %v3339_v7 = vsel %vm7859_vm11, %v7822_v15, %v3335_v56  ;;  %vm3348_vm14 = vmor %vm3346_vm13, %vm3347_vm12 }
 0xbd2   :  { %v3793_v49 = vmul.f32 0.044715, %v3761_v39  ;;  %v3951_v2 = vmul.f32 0.5, %v3919_v41 }
 0xbd3   :  { %v3343_v27 = vmul.f32 0.5, %v3342_v13  ;;  %v2867_v33 = vpop.xlane.xlu1 %2866  ;;  %4618 = vmatmul.msk.bf16.gmra.mxu0 %vm348_vm1, %v3561_v62  ;;  %v3054_v17 = vsel %vm348_vm1, %v2966_v43, 0.0  ;;  %v3470_v13 = vmul.f32 %v3339_v7, %v7591_v58  ;;  %v3982_v62 = vmul.f32 %v3950_v18, %v7743_v55 }
 0xbd4   :  { %v2903_v29 = vmul.f32 %v2867_v33, %v8359_v19  ;;  %v3668_v45 = vpop.f32.mrf.mxu0  ;;  %v3825_v15 = vadd.f32 %v3793_v49, %v7843_v60  ;;  %3055 = vadd.xlane.f32.xlu0 %v3054_v17  ;;  %v3983_v50 = vmul.f32 %v3951_v2, %v7774_v12 }
 0xbd5   :  { %v3344_v35 = vsub.f32 1.5, %v3343_v27  ;;  %v7878_v56 = vadd.f32 %v7456_v4, %v3668_v45  ;;  %v4097_v27 = vadd.f32 %v7871_v57, %v4096_v53  ;;  %v3503_v18 = vmul.f32 %v7702_v46, %v3470_v13 }
 0xbd6   :  { %v7882_v39 = vsub.f32 %v7661_v36, %v2903_v29  ;;  %v3857_v41 = vmul.f32 0.7978846, %v3825_v15  ;;  %v5070_v49 = vpop.eup %5069  ;;  %v4026_v58 = vpack.c.bf16 %v3983_v50, %v3982_v62 }
 0xbd7   :  { %v3345_v43 = vmul.f32 %v5066_v40, %v3344_v35  ;;  %v3730_v4 = vmul.f32 %v7878_v56, %v7878_v56  ;;  %v4176_v17 = vadd.f32 %v4097_v27, %v7073_v25  ;;  %v3920_v35 = vadd.f32 1.0, %v5070_v49 }
 0xbd8   :  { %v4098_v33 = vpop.f32.mrf.mxu2  ;;  %v2967_v7 = vmul.f32 %v7882_v39, %v7882_v39  ;;  %5071 = vtanh.f32 %v3857_v41  ;;  %4115 = vmatmul.bf16.gmra.mxu2 %v4026_v58  ;;  %v3536_v41 = vadd.f32 %v7718_v54, %v3503_v18 }
 0xbd9   :  { %v3349_v29 = vsel %vm3348_vm14, %v5066_v40, %v3345_v43  ;;  %v4099_v55 = vadd.f32 %v7871_v57, %v4098_v33  ;;  %v3762_v47 = vmul.f32 %v3730_v4, %v7878_v56  ;;  %v7904_v43 = vld [vmem:[%s8216_s3 + $0x6] ss:$0 sm:$0xff]  ;;  %v3952_v33 = vmul.f32 0.5, %v3920_v35 }
 0xbda   :  { %v3471_v12 = vmul.f32 %v3349_v29, %v7622_v26  ;;  %v3057_v53 = vsel %vm348_vm1, %v2967_v7, 0.0 }
 0xbdb   :  { %v4177_v45 = vadd.f32 %v4099_v55, %v7084_v31  ;;  %3058 = vadd.xlane.f32.xlu2 %v3057_v53  ;;  %v2870_v2 = vpop.xlane.xlu1 %2869  ;;  %v3794_v40 = vmul.f32 0.044715, %v3762_v47 }
 0xbdc   :  { %v2904_v15 = vmul.f32 %v2870_v2, %v8359_v19  ;;  %v3670_v62 = vpop.f32.mrf.mxu0  ;;  %v3504_v26 = vmul.f32 %v7702_v46, %v3471_v12 }
 0xbdd   :  { %v4212_v50 = vpack.c.bf16 %v4177_v45, %v4176_v17  ;;  %v3671_v13 = vadd.f32 %v7904_v43, %v3670_v62  ;;  %v3826_v25 = vadd.f32 %v3794_v40, %v7878_v56  ;;  %v3984_v45 = vmul.f32 %v3952_v33, %v7814_v6 }
 0xbde   :  { %v7909_v31 = vsub.f32 %v7667_v3, %v2904_v15  ;;  %v3537_v27 = vadd.f32 %v7718_v54, %v3504_v26  ;;  %v5072_v49 = vpop.eup %5071 }
 0xbdf   :  { %v3731_v4 = vmul.f32 %v3671_v13, %v3671_v13  ;;  %4665 = vmatmul.msk.bf16.vlgmr.msra.gmra.mxu3 %vm348_vm1, %v4212_v50  ;;  %v3858_v58 = vmul.f32 0.7978846, %v3826_v25  ;;  %v3921_v12 = vadd.f32 1.0, %v5072_v49 }
 0xbe0   :  { %v4101_v7 = vpop.f32.mrf.mxu2  ;;  %v3562_v29 = vpack.c.bf16 %v3537_v27, %v3536_v41  ;;  %v2968_v55 = vmul.f32 %v7909_v31, %v7909_v31 }
 0xbe1   :  { %v3763_v47 = vmul.f32 %v3731_v4, %v3671_v13  ;;  %v3953_v17 = vmul.f32 0.5, %v3921_v12  ;;  %5073 = vtanh.f32 %v3858_v58  ;;  %v4102_v62 = vadd.f32 %v7871_v57, %v4101_v7 }
 0xbe2   :  { %v3060_v53 = vsel %vm348_vm1, %v2968_v55, 0.0 }
 0xbe3   :  { %v3795_v18 = vmul.f32 0.044715, %v3763_v47  ;;  %3061 = vadd.xlane.f32.xlu1 %v3060_v53  ;;  %4619 = vmatmul.msk.bf16.gmra.mxu0 %vm348_vm1, %v3562_v29  ;;  %v3985_v2 = vmul.f32 %v3953_v17, %v7843_v60  ;;  %v4178_v41 = vadd.f32 %v4102_v62, %v7091_v1 }
 0xbe5   :  { %v3827_v35 = vadd.f32 %v3795_v18, %v3671_v13  ;;  %v4027_v40 = vpack.c.bf16 %v3985_v2, %v3984_v45  ;;  %v3088_v45 = vmul.f32 %v7837_v32, %v8359_v19 }
 0xbe7   :  { %v3859_v15 = vmul.f32 0.7978846, %v3827_v35  ;;  %v5074_v50 = vpop.eup %5073  ;;  %v3120_v2 = vadd.f32 1e-06, %v3088_v45 }
 0xbe8   :  { %v4103_v26 = vpop.f32.mrf.mxu2  ;;  %4120 = vmatmul.bf16.gmra.mxu2 %v4027_v40  ;;  %v3922_v49 = vadd.f32 1.0, %v5074_v50 }
 0xbe9   :  { %5075 = vtanh.f32 %v3859_v15  ;;  %v4104_v25 = vadd.f32 %v7871_v57, %v4103_v26  ;;  %vm3356_vm2 = vweird.f32 %v3120_v2 }
 0xbea   :  { %v3954_v58 = vmul.f32 0.5, %v3922_v49  ;;  %5077 = vrsqrt.f32 %v3120_v2 }
 0xbeb   :  { %v4179_v27 = vadd.f32 %v4104_v25, %v7097_v14 }
 0xbec   :  { %v3986_v7 = vmul.f32 %v3954_v58, %v7878_v56 }
 0xbed   :  { %v4213_v4 = vpack.c.bf16 %v4179_v27, %v4178_v41 }
 0xbef   :  { %v5076_v6 = vpop.eup %5075  ;;  %4666 = vmatmul.msk.bf16.gmra.mxu3 %vm348_vm1, %v4213_v4 }
 0xbf0   :  { %v4106_v60 = vpop.f32.mrf.mxu2  ;;  %v3923_v33 = vadd.f32 1.0, %v5076_v6  ;;  %v5078_v56 = vpop.eup %5077 }
 0xbf1   :  { %v4107_v47 = vadd.f32 %v7871_v57, %v4106_v60  ;;  %vm3357_vm15 = vweird.f32 %v5078_v56 }
 0xbf2   :  { %v3955_v29 = vmul.f32 0.5, %v3923_v33  ;;  %vm3358_vm3 = vmor %vm3356_vm2, %vm3357_vm15 }
 0xbf3   :  { %v4180_v14 = vadd.f32 %v4107_v47, %v7104_v8 }
 0xbf4   :  { %v3987_v55 = vmul.f32 %v3955_v29, %v3671_v13  ;;  %v3351_v13 = vmul.f32 %v5078_v56, %v3120_v2 }
 0xbf6   :  { %v4028_v12 = vpack.c.bf16 %v3987_v55, %v3986_v7  ;;  %v3352_v35 = vmul.f32 %v5078_v56, %v3351_v13 }
 0xbf8   :  { %v4108_v53 = vpop.f32.mrf.mxu2  ;;  %4125 = vmatmul.bf16.gmra.mxu2 %v4028_v12  ;;  %v3353_v26 = vmul.f32 0.5, %v3352_v35 }
 0xbf9   :  { %v4109_v1 = vadd.f32 %v7871_v57, %v4108_v53 }
 0xbfa   :  { %v3354_v8 = vsub.f32 1.5, %v3353_v26 }
 0xbfb   :  { %v4181_v17 = vadd.f32 %v4109_v1, %v7114_v20 }
 0xbfc   :  { %v3355_v41 = vmul.f32 %v5078_v56, %v3354_v8 }
 0xbfd   :  { %v4214_v18 = vpack.c.bf16 %v4181_v17, %v4180_v14 }
 0xbfe   :  { %v3359_v4 = vsel %vm3358_vm3, %v5078_v56, %v3355_v41 }
 0xbff   :  { %4667 = vmatmul.msk.bf16.gmra.mxu3 %vm348_vm1, %v4214_v18  ;;  %v3472_v7 = vmul.f32 %v3359_v4, %v7644_v28 }
 0xc1d   :  { %v3041_v40 = vpop.xlane.xlu0 %3040 }
 0xc1e   :  { %v3089_v15 = vmul.f32 %v3041_v40, %v8359_v19  ;;  %v3505_v40 = vmul.f32 %v7702_v46, %v3472_v7 }
 0xc20   :  { %v3121_v62 = vadd.f32 1e-06, %v3089_v15 }
 0xc22   :  { %5079 = vrsqrt.f32 %v3121_v62  ;;  %vm3366_vm5 = vweird.f32 %v3121_v62 }
 0xc25   :  { %v3044_v50 = vpop.xlane.xlu0 %3043 }
 0xc26   :  { %v3090_v20 = vmul.f32 %v3044_v50, %v8359_v19 }
 0xc28   :  { %v5080_v25 = vpop.eup %5079  ;;  %v3122_v32 = vadd.f32 1e-06, %v3090_v20 }
 0xc29   :  { %v3361_v27 = vmul.f32 %v5080_v25, %v3121_v62  ;;  %vm3367_vm4 = vweird.f32 %v5080_v25 }
 0xc2a   :  { %5081 = vrsqrt.f32 %v3122_v32  ;;  %vm3368_vm6 = vmor %vm3366_vm5, %vm3367_vm4  ;;  %vm3376_vm7 = vweird.f32 %v3122_v32 }
 0xc2b   :  { %v3362_v49 = vmul.f32 %v5080_v25, %v3361_v27 }
 0xc2d   :  { %v3363_v6 = vmul.f32 0.5, %v3362_v49  ;;  %v2873_v60 = vpop.xlane.xlu0 %2872  ;;  %v3047_v55 = vpop.xlane.xlu2 %3046 }
 0xc2e   :  { %v2905_v58 = vmul.f32 %v2873_v60, %v8359_v19  ;;  %v3673_v29 = vpop.f32.mrf.mxu0  ;;  %v3091_v1 = vmul.f32 %v3047_v55, %v8359_v19 }
 0xc2f   :  { %v3364_v33 = vsub.f32 1.5, %v3363_v6  ;;  %v7938_v12 = vadd.f32 %v7904_v43, %v3673_v29 }
 0xc30   :  { %v5082_v47 = vpop.eup %5081  ;;  %v7942_v14 = vsub.f32 %v7740_v38, %v2905_v58  ;;  %v3123_v2 = vadd.f32 1e-06, %v3091_v1 }
 0xc31   :  { %v3365_v53 = vmul.f32 %v5080_v25, %v3364_v33  ;;  %v3371_v17 = vmul.f32 %v5082_v47, %v3122_v32  ;;  %v3732_v18 = vmul.f32 %v7938_v12, %v7938_v12  ;;  %vm3377_vm0 = vweird.f32 %v5082_v47 }
 0xc32   :  { %v2969_v28 = vmul.f32 %v7942_v14, %v7942_v14  ;;  %5083 = vrsqrt.f32 %v3123_v2  ;;  %vm3378_vm8 = vmor %vm3376_vm7, %vm3377_vm0  ;;  %vm3386_vm10 = vweird.f32 %v3123_v2 }
 0xc33   :  { %v3369_v45 = vsel %vm3368_vm6, %v5080_v25, %v3365_v53  ;;  %v3372_v13 = vmul.f32 %v5082_v47, %v3371_v17  ;;  %v3764_v35 = vmul.f32 %v3732_v18, %v7938_v12 }
 0xc34   :  { %v3473_v56 = vmul.f32 %v3369_v45, %v7686_v61  ;;  %v3063_v15 = vsel %vm348_vm1, %v2969_v28, 0.0  ;;  %v3538_v61 = vadd.f32 %v7718_v54, %v3505_v40 }
 0xc35   :  { %v3373_v62 = vmul.f32 0.5, %v3372_v13  ;;  %v3796_v26 = vmul.f32 0.044715, %v3764_v35  ;;  %3064 = vadd.xlane.f32.xlu0 %v3063_v15  ;;  %v3050_v20 = vpop.xlane.xlu2 %3049 }
 0xc36   :  { %v3506_v8 = vmul.f32 %v7702_v46, %v3473_v56  ;;  %v3675_v50 = vpop.f32.mrf.mxu0  ;;  %v3092_v4 = vmul.f32 %v3050_v20, %v8359_v19 }
 0xc37   :  { %v7954_v25 = vadd.f32 %v7904_v43, %v3675_v50  ;;  %v3374_v27 = vsub.f32 1.5, %v3373_v62  ;;  %v3828_v49 = vadd.f32 %v3796_v26, %v7938_v12 }
 0xc38   :  { %v3539_v41 = vadd.f32 %v7718_v54, %v3506_v8  ;;  %v5084_v33 = vpop.eup %5083  ;;  %v7962_v58 = vadd.f32 1e-06, %v3092_v4 }
 0xc39   :  { %v3733_v6 = vmul.f32 %v7954_v25, %v7954_v25  ;;  %v3381_v29 = vmul.f32 %v5084_v33, %v3123_v2  ;;  %v3375_v7 = vmul.f32 %v5082_v47, %v3374_v27  ;;  %v3860_v55 = vmul.f32 0.7978846, %v3828_v49 }
 0xc3a   :  { %v3563_v60 = vpack.c.bf16 %v3539_v41, %v3538_v61  ;;  %5085 = vrsqrt.f32 %v7962_v58  ;;  %vm3387_vm9 = vweird.f32 %v5084_v33  ;;  %vm3396_vm13 = vweird.f32 %v7962_v58 }
 0xc3b   :  { %v3765_v53 = vmul.f32 %v3733_v6, %v7954_v25  ;;  %v3382_v1 = vmul.f32 %v5084_v33, %v3381_v29  ;;  %v3379_v28 = vsel %vm3378_vm8, %v5082_v47, %v3375_v7  ;;  %5087 = vtanh.f32 %v3860_v55  ;;  %vm3388_vm11 = vmor %vm3386_vm10, %vm3387_vm9 }
 0xc3c   :  { %4620 = vmatmul.msk.bf16.gmra.mxu0 %vm348_vm1, %v3563_v60  ;;  %v3474_v47 = vmul.f32 %v3379_v28, %v7713_v21 }
 0xc3d   :  { %v3797_v17 = vmul.f32 0.044715, %v3765_v53  ;;  %v3383_v18 = vmul.f32 0.5, %v3382_v1 }
 0xc3e   :  { %v3678_v45 = vpop.f32.mrf.mxu0  ;;  %v3507_v60 = vmul.f32 %v7702_v46, %v3474_v47 }
 0xc3f   :  { %v3829_v56 = vadd.f32 %v3797_v17, %v7954_v25  ;;  %v3053_v13 = vpop.xlane.xlu1 %3052  ;;  %v7969_v35 = vadd.f32 %v7904_v43, %v3678_v45  ;;  %v3384_v40 = vsub.f32 1.5, %v3383_v18 }
 0xc40   :  { %v3093_v15 = vmul.f32 %v3053_v13, %v8359_v19  ;;  %v7972_v62 = vpop.eup %5085 }
 0xc41   :  { %v3861_v32 = vmul.f32 0.7978846, %v3829_v56  ;;  %v3734_v26 = vmul.f32 %v7969_v35, %v7969_v35  ;;  %v3385_v8 = vmul.f32 %v5084_v33, %v3384_v40  ;;  %v3391_v50 = vmul.f32 %v7972_v62, %v7962_v58  ;;  %v5088_v2 = vpop.eup %5087 }
 0xc42   :  { %v7979_v20 = vadd.f32 1e-06, %v3093_v15  ;;  %v3924_v17 = vadd.f32 1.0, %v5088_v2  ;;  %vm3397_vm12 = vweird.f32 %v7972_v62  ;;  %v3540_v40 = vadd.f32 %v7718_v54, %v3507_v60 }
 0xc43   :  { %5089 = vtanh.f32 %v3861_v32  ;;  %v3766_v61 = vmul.f32 %v3734_v26, %v7969_v35  ;;  %v3389_v41 = vsel %vm3388_vm11, %v5084_v33, %v3385_v8  ;;  %v3392_v27 = vmul.f32 %v7972_v62, %v3391_v50  ;;  %vm8006_vm14 = vmor %vm3396_vm13, %vm3397_vm12 }
 0xc44   :  { %5091 = vrsqrt.f32 %v7979_v20  ;;  %v3475_v49 = vmul.f32 %v3389_v41, %v7749_v52  ;;  %v3956_v50 = vmul.f32 0.5, %v3924_v17  ;;  %vm3406_vm2 = vweird.f32 %v7979_v20 }
 0xc45   :  { %v3798_v4 = vmul.f32 0.044715, %v3766_v61  ;;  %v3393_v21 = vmul.f32 0.5, %v3392_v27 }
 0xc46   :  { %v3680_v6 = vpop.f32.mrf.mxu0  ;;  %v3508_v33 = vmul.f32 %v7702_v46, %v3475_v49 }
 0xc47   :  { %v3830_v29 = vadd.f32 %v3798_v4, %v7969_v35  ;;  %v3056_v7 = vpop.xlane.xlu0 %3055  ;;  %v7988_v55 = vadd.f32 %v7904_v43, %v3680_v6  ;;  %v3394_v53 = vsub.f32 1.5, %v3393_v21 }
 0xc48   :  { %v3094_v1 = vmul.f32 %v3056_v7, %v8359_v19  ;;  %v3541_v28 = vadd.f32 %v7718_v54, %v3508_v33 }
 0xc49   :  { %v5090_v18 = vpop.eup %5089  ;;  %v3735_v52 = vmul.f32 %v7988_v55, %v7988_v55  ;;  %v3395_v32 = vmul.f32 %v7972_v62, %v3394_v53  ;;  %v3862_v47 = vmul.f32 0.7978846, %v3830_v29  ;;  %v3988_v53 = vmul.f32 %v3956_v50, %v7938_v12 }
 0xc4a   :  { %v4111_v45 = vpop.f32.mrf.mxu2  ;;  %v5092_v56 = vpop.eup %5091  ;;  %v7996_v13 = vadd.f32 1e-06, %v3094_v1  ;;  %v3925_v15 = vadd.f32 1.0, %v5090_v18  ;;  %v3564_v27 = vpack.c.bf16 %v3541_v28, %v3540_v40 }
 0xc4b   :  { %v3401_v26 = vmul.f32 %v5092_v56, %v7979_v20  ;;  %v3767_v8 = vmul.f32 %v3735_v52, %v7988_v55  ;;  %v3399_v6 = vsel %vm8006_vm14, %v7972_v62, %v3395_v32  ;;  %v4112_v29 = vadd.f32 %v7871_v57, %v4111_v45 }
 0xc4c   :  { %5093 = vrsqrt.f32 %v7996_v13  ;;  %v3957_v21 = vmul.f32 0.5, %v3925_v15  ;;  %4621 = vmatmul.msk.bf16.gmra.mxu0 %vm348_vm1, %v3564_v27  ;;  %vm3407_vm15 = vweird.f32 %v5092_v56  ;;  %v3476_v40 = vmul.f32 %v3399_v6, %v7779_v59 }
 0xc4d   :  { %v3402_v61 = vmul.f32 %v5092_v56, %v3401_v26  ;;  %v3799_v41 = vmul.f32 0.044715, %v3767_v8  ;;  %5095 = vtanh.f32 %v3862_v47  ;;  %vm3408_vm3 = vmor %vm3406_vm2, %vm3407_vm15  ;;  %vm3416_vm5 = vweird.f32 %v7996_v13 }
 0xc4e   :  { %v3059_v2 = vpop.xlane.xlu2 %3058  ;;  %v3989_v1 = vmul.f32 %v3957_v21, %v7954_v25  ;;  %v4182_v25 = vadd.f32 %v4112_v29, %v7120_v34  ;;  %v3509_v27 = vmul.f32 %v7702_v46, %v3476_v40 }
 0xc4f   :  { %v3095_v4 = vmul.f32 %v3059_v2, %v8359_v19  ;;  %v3403_v60 = vmul.f32 0.5, %v3402_v61  ;;  %v3831_v58 = vadd.f32 %v3799_v41, %v7988_v55 }
 0xc50   :  { %v3683_v33 = vpop.f32.mrf.mxu0  ;;  %v4029_v15 = vpack.c.bf16 %v3989_v1, %v3988_v53  ;;  %v3542_v29 = vadd.f32 %v7718_v54, %v3509_v27 }
 0xc51   :  { %v8017_v7 = vadd.f32 1e-06, %v3095_v4  ;;  %v3404_v17 = vsub.f32 1.5, %v3403_v60  ;;  %v3863_v18 = vmul.f32 0.7978846, %v3831_v58  ;;  %v8022_v62 = vadd.f32 %v7904_v43, %v3683_v33 }
 0xc52   :  { %v4113_v52 = vpop.f32.mrf.mxu2  ;;  %v5094_v28 = vpop.eup %5093  ;;  %4130 = vmatmul.bf16.gmra.mxu2 %v4029_v15 }
 0xc53   :  { %5097 = vrsqrt.f32 %v8017_v7  ;;  %v4114_v45 = vadd.f32 %v7871_v57, %v4113_v52  ;;  %v3405_v32 = vmul.f32 %v5092_v56, %v3404_v17  ;;  %v3411_v12 = vmul.f32 %v5094_v28, %v7996_v13  ;;  %v5096_v59 = vpop.eup %5095 }
 0xc54   :  { %5099 = vtanh.f32 %v3863_v18  ;;  %v3736_v26 = vmul.f32 %v8022_v62, %v8022_v62  ;;  %vm3417_vm4 = vweird.f32 %v5094_v28  ;;  %vm3426_vm7 = vweird.f32 %v8017_v7 }
 0xc55   :  { %v4183_v47 = vadd.f32 %v4114_v45, %v7141_v16  ;;  %v3409_v8 = vsel %vm3408_vm3, %v5092_v56, %v3405_v32  ;;  %v3412_v50 = vmul.f32 %v5094_v28, %v3411_v12  ;;  %v3926_v16 = vadd.f32 1.0, %v5096_v59  ;;  %vm3418_vm6 = vmor %vm3416_vm5, %vm3417_vm4 }
 0xc56   :  { %v3477_v61 = vmul.f32 %v3409_v8, %v7828_v24  ;;  %v3768_v41 = vmul.f32 %v3736_v26, %v8022_v62  ;;  %v8052_v26 = vld [vmem:[%s8216_s3 + $0x9] ss:$0 sm:$0xff] }
 0xc57   :  { %v4215_v20 = vpack.c.bf16 %v4183_v47, %v4182_v25  ;;  %v3413_v2 = vmul.f32 0.5, %v3412_v50  ;;  %v3958_v15 = vmul.f32 0.5, %v3926_v16 }
 0xc58   :  { %v3800_v4 = vmul.f32 0.044715, %v3768_v41  ;;  %v3685_v34 = vpop.f32.mrf.mxu0  ;;  %v3510_v21 = vmul.f32 %v7702_v46, %v3477_v61 }
 0xc59   :  { %v5098_v49 = vpop.eup %5097  ;;  %4668 = vmatmul.msk.bf16.gmra.mxu3 %vm348_vm1, %v4215_v20  ;;  %v3414_v60 = vsub.f32 1.5, %v3413_v2  ;;  %v8040_v24 = vadd.f32 %v7904_v43, %v3685_v34  ;;  %v3990_v50 = vmul.f32 %v3958_v15, %v7969_v35 }
 0xc5a   :  { %v5100_v6 = vpop.eup %5099  ;;  %v3421_v56 = vmul.f32 %v5098_v49, %v8017_v7  ;;  %v3832_v58 = vadd.f32 %v3800_v4, %v8022_v62  ;;  %v3543_v33 = vadd.f32 %v7718_v54, %v3510_v21  ;;  %vm3427_vm0 = vweird.f32 %v5098_v49 }
 0xc5b   :  { %v3415_v53 = vmul.f32 %v5094_v28, %v3414_v60  ;;  %v3737_v17 = vmul.f32 %v8040_v24, %v8040_v24  ;;  %v3927_v18 = vadd.f32 1.0, %v5100_v6  ;;  %v4116_v40 = vpop.f32.mrf.mxu2  ;;  %vm3428_vm8 = vmor %vm3426_vm7, %vm3427_vm0 }
 0xc5c   :  { %v3422_v1 = vmul.f32 %v5098_v49, %v3421_v56  ;;  %v3864_v52 = vmul.f32 0.7978846, %v3832_v58  ;;  %v3565_v45 = vpack.c.bf16 %v3543_v33, %v3542_v29  ;;  %v4117_v35 = vadd.f32 %v7871_v57, %v4116_v40 }
 0xc5d   :  { %v3769_v12 = vmul.f32 %v3737_v17, %v8040_v24  ;;  %v3419_v25 = vsel %vm3418_vm6, %v5094_v28, %v3415_v53  ;;  %v3959_v47 = vmul.f32 0.5, %v3927_v18 }
 0xc5e   :  { %v3423_v32 = vmul.f32 0.5, %v3422_v1  ;;  %5101 = vtanh.f32 %v3864_v52  ;;  %4622 = vmatmul.msk.bf16.gmra.mxu0 %vm348_vm1, %v3565_v45  ;;  %v3478_v41 = vmul.f32 %v3419_v25, %v7854_v0  ;;  %v4184_v29 = vadd.f32 %v4117_v35, %v7154_v10 }
 0xc5f   :  { %v3801_v8 = vmul.f32 0.044715, %v3769_v12  ;;  %v3991_v61 = vmul.f32 %v3959_v47, %v7988_v55 }
 0xc60   :  { %v3424_v59 = vsub.f32 1.5, %v3423_v32  ;;  %v3688_v13 = vpop.f32.mrf.mxu0  ;;  %v3511_v56 = vmul.f32 %v7702_v46, %v3478_v41 }
 0xc61   :  { %v3833_v20 = vadd.f32 %v3801_v8, %v8040_v24  ;;  %v8061_v2 = vadd.f32 %v7904_v43, %v3688_v13  ;;  %v4030_v34 = vpack.c.bf16 %v3991_v61, %v3990_v50 }
 0xc62   :  { %v3425_v28 = vmul.f32 %v5098_v49, %v3424_v59  ;;  %v4299_v27 = vpop.f32.mrf.mxu3  ;;  %v3544_v45 = vadd.f32 %v7718_v54, %v3511_v56 }
 0xc63   :  { %v4300_v4 = vadd.f32 %v8052_v26, %v4299_v27  ;;  %v3865_v16 = vmul.f32 0.7978846, %v3833_v20  ;;  %v3738_v0 = vmul.f32 %v8061_v2, %v8061_v2  ;;  %v4118_v7 = vpop.f32.mrf.mxu2  ;;  %4135 = vmatmul.bf16.gmra.mxu2 %v4030_v34 }
 0xc64   :  { %v3429_v21 = vsel %vm3428_vm8, %v5098_v49, %v3425_v28  ;;  %v5102_v6 = vpop.eup %5101  ;;  %v4119_v60 = vadd.f32 %v7871_v57, %v4118_v7 }
 0xc65   :  { %v3479_v55 = vmul.f32 %v3429_v21, %v7882_v39  ;;  %4379 = vst [vmem:[#allocation2] sm:$0xff] %v4300_v4  ;;  %5103 = vtanh.f32 %v3865_v16  ;;  %v3770_v58 = vmul.f32 %v3738_v0, %v8061_v2  ;;  %v3928_v17 = vadd.f32 1.0, %v5102_v6 }
 0xc66   :  { %v4185_v39 = vadd.f32 %v4119_v60, %v7167_v37 }
 0xc67   :  { %v3512_v49 = vmul.f32 %v7702_v46, %v3479_v55  ;;  %v3802_v33 = vmul.f32 0.044715, %v3770_v58  ;;  %v3960_v59 = vmul.f32 0.5, %v3928_v17 }
 0xc68   :  { %v3690_v53 = vpop.f32.mrf.mxu0  ;;  %v4216_v18 = vpack.c.bf16 %v4185_v39, %v4184_v29 }
 0xc69   :  { %v3545_v1 = vadd.f32 %v7718_v54, %v3512_v49  ;;  %v3691_v52 = vadd.f32 %v7904_v43, %v3690_v53  ;;  %v3834_v15 = vadd.f32 %v3802_v33, %v8061_v2  ;;  %v3992_v54 = vmul.f32 %v3960_v59, %v8022_v62 }
 0xc6a   :  { %v4301_v40 = vpop.f32.mrf.mxu3  ;;  %4669 = vmatmul.msk.bf16.gmra.mxu3 %vm348_vm1, %v4216_v18 }
 0xc6b   :  { %v4302_v32 = vadd.f32 %v8052_v26, %v4301_v40  ;;  %v5104_v46 = vpop.eup %5103  ;;  %v3739_v12 = vmul.f32 %v3691_v52, %v3691_v52  ;;  %v3566_v10 = vpack.c.bf16 %v3545_v1, %v3544_v45  ;;  %v3866_v37 = vmul.f32 0.7978846, %v3834_v15  ;;  %v4121_v25 = vpop.f32.mrf.mxu2 }
 0xc6c   :  { %v3929_v47 = vadd.f32 1.0, %v5104_v46  ;;  %v4122_v34 = vadd.f32 %v7871_v57, %v4121_v25 }
 0xc6d   :  { %4380 = vst [vmem:[#allocation2 + $0x8] sm:$0xff] %v4302_v32  ;;  %v3771_v8 = vmul.f32 %v3739_v12, %v3691_v52  ;;  %5105 = vtanh.f32 %v3866_v37 }
 0xc6e   :  { %v3961_v13 = vmul.f32 0.5, %v3929_v47  ;;  %4623 = vmatmul.msk.bf16.gmra.mxu0 %vm348_vm1, %v3566_v10  ;;  %v4186_v55 = vadd.f32 %v4122_v34, %v7180_v5 }
 0xc6f   :  { %v3803_v50 = vmul.f32 0.044715, %v3771_v8 }
 0xc70   :  { %v3993_v61 = vmul.f32 %v3961_v13, %v8040_v24 }
 0xc71   :  { %v3835_v41 = vadd.f32 %v3803_v50, %v3691_v52 }
 0xc72   :  { %v4304_v28 = vpop.f32.mrf.mxu3  ;;  %v4031_v27 = vpack.c.bf16 %v3993_v61, %v3992_v54 }
 0xc73   :  { %v4305_v20 = vadd.f32 %v8052_v26, %v4304_v28  ;;  %v3867_v4 = vmul.f32 0.7978846, %v3835_v41  ;;  %v4123_v21 = vpop.f32.mrf.mxu2  ;;  %v5106_v16 = vpop.eup %5105 }
 0xc74   :  { %4140 = vmatmul.bf16.gmra.mxu2 %v4031_v27  ;;  %v4124_v35 = vadd.f32 %v7871_v57, %v4123_v21  ;;  %v3930_v24 = vadd.f32 1.0, %v5106_v16 }
 0xc75   :  { %4381 = vst [vmem:[#allocation2 + $0x10] sm:$0xff] %v4305_v20  ;;  %5107 = vtanh.f32 %v3867_v4 }
 0xc76   :  { %v4187_v62 = vadd.f32 %v4124_v35, %v7194_v48  ;;  %v3962_v49 = vmul.f32 0.5, %v3930_v24  ;;  %v5139_v24 = vld [vmem:[%s8216_s3 + $0x2] ss:$0 sm:$0xff] }
 0xc78   :  { %v4217_v0 = vpack.c.bf16 %v4187_v62, %v4186_v55  ;;  %v3994_v39 = vmul.f32 %v3962_v49, %v8061_v2  ;;  %v5140_v49 = vld [vmem:[%s8216_s3 + $0x3] ss:$0 sm:$0xff] }
 0xc7a   :  { %v4306_v7 = vpop.f32.mrf.mxu3  ;;  %4670 = vmatmul.msk.bf16.gmra.mxu3 %vm348_vm1, %v4217_v0 }
 0xc7b   :  { %v4307_v6 = vadd.f32 %v8052_v26, %v4306_v7  ;;  %v5108_v60 = vpop.eup %5107  ;;  %v4126_v56 = vpop.f32.mrf.mxu2 }
 0xc7c   :  { %v3931_v58 = vadd.f32 1.0, %v5108_v60  ;;  %v4127_v1 = vadd.f32 %v7871_v57, %v4126_v56 }
 0xc7d   :  { %4382 = vst [vmem:[#allocation2 + $0x18] sm:$0xff] %v4307_v6 }
 0xc7e   :  { %v3963_v29 = vmul.f32 0.5, %v3931_v58  ;;  %v4188_v40 = vadd.f32 %v4127_v1, %v7207_v30 }
 0xc80   :  { %v3995_v33 = vmul.f32 %v3963_v29, %v3691_v52  ;;  %v3062_v52 = vpop.xlane.xlu1 %3061 }
 0xc81   :  { %v3096_v46 = vmul.f32 %v3062_v52, %v8359_v19 }
 0xc82   :  { %v4309_v53 = vpop.f32.mrf.mxu3  ;;  %v4032_v48 = vpack.c.bf16 %v3995_v33, %v3994_v39 }
 0xc83   :  { %v4310_v5 = vadd.f32 %v8052_v26, %v4309_v53  ;;  %v4128_v17 = vpop.f32.mrf.mxu2  ;;  %v3128_v12 = vadd.f32 1e-06, %v3096_v46 }
 0xc84   :  { %4145 = vmatmul.bf16.gmra.mxu2 %v4032_v48  ;;  %v4129_v18 = vadd.f32 %v7871_v57, %v4128_v17 }
 0xc85   :  { %4383 = vst [vmem:[#allocation2 + $0x20] sm:$0xff] %v4310_v5  ;;  %5109 = vrsqrt.f32 %v3128_v12  ;;  %vm3436_vm10 = vweird.f32 %v3128_v12 }
 0xc86   :  { %v4189_v45 = vadd.f32 %v4129_v18, %v7219_v11 }
 0xc88   :  { %v4218_v15 = vpack.c.bf16 %v4189_v45, %v4188_v40 }
 0xc8a   :  { %v4311_v32 = vpop.f32.mrf.mxu3  ;;  %4671 = vmatmul.msk.bf16.gmra.mxu3 %vm348_vm1, %v4218_v15 }
 0xc8b   :  { %v4312_v2 = vadd.f32 %v8052_v26, %v4311_v32  ;;  %v5110_v10 = vpop.eup %5109 }
 0xc8c   :  { %v3431_v37 = vmul.f32 %v5110_v10, %v3128_v12  ;;  %vm3437_vm9 = vweird.f32 %v5110_v10 }
 0xc8d   :  { %4384 = vst [vmem:[#allocation2 + $0x28] sm:$0xff] %v4312_v2  ;;  %vm3438_vm11 = vmor %vm3436_vm10, %vm3437_vm9 }
 0xc8e   :  { %v3432_v25 = vmul.f32 %v5110_v10, %v3431_v37 }
 0xc90   :  { %v3433_v11 = vmul.f32 0.5, %v3432_v25 }
 0xc92   :  { %v3434_v8 = vsub.f32 1.5, %v3433_v11 }
 0xc94   :  { %v3435_v50 = vmul.f32 %v5110_v10, %v3434_v8 }
 0xc96   :  { %v3439_v41 = vsel %vm3438_vm11, %v5110_v10, %v3435_v50 }
 0xca8   :  { %v3065_v47 = vpop.xlane.xlu0 %3064 }
 0xca9   :  { %v3097_v30 = vmul.f32 %v3065_v47, %v8359_v19  ;;  %v3480_v19 = vmul.f32 %v3439_v41, %v7909_v31 }
 0xcab   :  { %v3129_v59 = vadd.f32 1e-06, %v3097_v30  ;;  %v3513_v0 = vmul.f32 %v5139_v24, %v3480_v19 }
 0xcad   :  { %5111 = vrsqrt.f32 %v3129_v59  ;;  %vm3446_vm13 = vweird.f32 %v3129_v59  ;;  %v3546_v29 = vadd.f32 %v5140_v49, %v3513_v0  ;;  %v8404_v0 = vld [vmem:[#allocation41_spill] sm:$0xff] }
 0xcb3   :  { %v5112_v13 = vpop.eup %5111 }
 0xcb4   :  { %v3441_v54 = vmul.f32 %v5112_v13, %v3129_v59  ;;  %vm3447_vm12 = vweird.f32 %v5112_v13 }
 0xcb5   :  { %vm3448_vm14 = vmor %vm3446_vm13, %vm3447_vm12 }
 0xcb6   :  { %v3442_v61 = vmul.f32 %v5112_v13, %v3441_v54 }
 0xcb8   :  { %v3443_v28 = vmul.f32 0.5, %v3442_v61 }
 0xcb9   :  { %v3693_v20 = vpop.f32.mrf.mxu0 }
 0xcba   :  { %v3694_v27 = vadd.f32 %v7904_v43, %v3693_v20  ;;  %v3444_v4 = vsub.f32 1.5, %v3443_v28 }
 0xcbc   :  { %v3740_v34 = vmul.f32 %v3694_v27, %v3694_v27  ;;  %v3445_v21 = vmul.f32 %v5112_v13, %v3444_v4 }
 0xcbe   :  { %v3772_v16 = vmul.f32 %v3740_v34, %v3694_v27  ;;  %v3449_v35 = vsel %vm3448_vm14, %v5112_v13, %v3445_v21 }
 0xcbf   :  { %v3481_v55 = vmul.f32 %v3449_v35, %v7942_v14 }
 0xcc0   :  { %v3804_v62 = vmul.f32 0.044715, %v3772_v16 }
 0xcc1   :  { %v3695_v7 = vpop.f32.mrf.mxu0  ;;  %v3514_v56 = vmul.f32 %v5139_v24, %v3481_v55 }
 0xcc2   :  { %v3836_v6 = vadd.f32 %v3804_v62, %v3694_v27  ;;  %v3696_v60 = vadd.f32 %v7904_v43, %v3695_v7  ;;  %v8403_v62 = vld [vmem:[#allocation38_spill] sm:$0xff] }
 0xcc3   :  { %v3547_v39 = vadd.f32 %v5140_v49, %v3514_v56 }
 0xcc4   :  { %v3868_v31 = vmul.f32 0.7978846, %v3836_v6  ;;  %v3741_v58 = vmul.f32 %v3696_v60, %v3696_v60 }
 0xcc5   :  { %v3567_v33 = vpack.c.bf16 %v3547_v39, %v3546_v29 }
 0xcc6   :  { %v3773_v14 = vmul.f32 %v3741_v58, %v3696_v60  ;;  %5113 = vtanh.f32 %v3868_v31 }
 0xcc7   :  { %4624 = vmatmul.msk.bf16.gmra.mxu0 %vm348_vm1, %v3567_v33 }
 0xcc8   :  { %v3805_v53 = vmul.f32 0.044715, %v3773_v14 }
 0xcc9   :  { %v3698_v17 = vpop.f32.mrf.mxu0 }
 0xcca   :  { %v3837_v5 = vadd.f32 %v3805_v53, %v3696_v60  ;;  %v3699_v18 = vadd.f32 %v7904_v43, %v3698_v17 }
 0xccc   :  { %v3869_v48 = vmul.f32 0.7978846, %v3837_v5  ;;  %v5114_v1 = vpop.eup %5113  ;;  %v3742_v40 = vmul.f32 %v3699_v18, %v3699_v18 }
 0xccd   :  { %v3932_v45 = vadd.f32 1.0, %v5114_v1 }
 0xcce   :  { %5115 = vtanh.f32 %v3869_v48  ;;  %v3774_v15 = vmul.f32 %v3742_v40, %v3699_v18 }
 0xccf   :  { %v3964_v46 = vmul.f32 0.5, %v3932_v45 }
 0xcd0   :  { %v3806_v2 = vmul.f32 0.044715, %v3774_v15 }
 0xcd1   :  { %v3700_v12 = vpop.f32.mrf.mxu0  ;;  %v3996_v11 = vmul.f32 %v3964_v46, %v3694_v27  ;;  %v8134_v46 = vld [vmem:[%s8216_s3 + $0x7] ss:$0 sm:$0xff] }
 0xcd2   :  { %v3838_v10 = vadd.f32 %v3806_v2, %v3699_v18  ;;  %v3701_v37 = vadd.f32 %v7904_v43, %v3700_v12 }
 0xcd4   :  { %v5116_v32 = vpop.eup %5115  ;;  %v3870_v47 = vmul.f32 0.7978846, %v3838_v10  ;;  %v3743_v30 = vmul.f32 %v3701_v37, %v3701_v37 }
 0xcd5   :  { %v3933_v52 = vadd.f32 1.0, %v5116_v32  ;;  %v4131_v59 = vpop.f32.mrf.mxu2 }
 0xcd6   :  { %v3775_v13 = vmul.f32 %v3743_v30, %v3701_v37  ;;  %5117 = vtanh.f32 %v3870_v47  ;;  %v4132_v19 = vadd.f32 %v7871_v57, %v4131_v59 }
 0xcd7   :  { %v3965_v25 = vmul.f32 0.5, %v3933_v52 }
 0xcd8   :  { %v3807_v54 = vmul.f32 0.044715, %v3775_v13  ;;  %v4190_v24 = vadd.f32 %v4132_v19, %v8403_v62  ;;  %v8405_v13 = vld [vmem:[#allocation39_spill] sm:$0xff] }
 0xcd9   :  { %v3997_v8 = vmul.f32 %v3965_v25, %v3696_v60 }
 0xcda   :  { %v3839_v20 = vadd.f32 %v3807_v54, %v3701_v37  ;;  %v8406_v54 = vld [vmem:[#allocation42_spill] sm:$0xff] }
 0xcdb   :  { %v4033_v50 = vpack.c.bf16 %v3997_v8, %v3996_v11  ;;  %v3703_v41 = vpop.f32.mrf.mxu0 }
 0xcdc   :  { %v4314_v61 = vpop.f32.mrf.mxu3  ;;  %v8115_v4 = vadd.f32 %v7904_v43, %v3703_v41  ;;  %v3871_v34 = vmul.f32 0.7978846, %v3839_v20  ;;  %v5118_v35 = vpop.eup %5117 }
 0xcdd   :  { %4150 = vmatmul.bf16.gmra.mxu2 %v4033_v50  ;;  %v4315_v28 = vadd.f32 %v8052_v26, %v4314_v61  ;;  %v4133_v21 = vpop.f32.mrf.mxu2  ;;  %v3934_v49 = vadd.f32 1.0, %v5118_v35 }
 0xcde   :  { %v3744_v27 = vmul.f32 %v8115_v4, %v8115_v4  ;;  %v4134_v16 = vadd.f32 %v7871_v57, %v4133_v21  ;;  %5119 = vtanh.f32 %v3871_v34 }
 0xcdf   :  { %4385 = vst [vmem:[#allocation2 + $0x30] sm:$0xff] %v4315_v28  ;;  %v3966_v48 = vmul.f32 0.5, %v3934_v49 }
 0xce0   :  { %v3776_v55 = vmul.f32 %v3744_v27, %v8115_v4  ;;  %v4191_v7 = vadd.f32 %v4134_v16, %v8404_v0 }
 0xce1   :  { %v3998_v15 = vmul.f32 %v3966_v48, %v3699_v18 }
 0xce2   :  { %v3808_v6 = vmul.f32 0.044715, %v3776_v55  ;;  %v4219_v56 = vpack.c.bf16 %v4191_v7, %v4190_v24 }
 0xce3   :  { %v3705_v31 = vpop.f32.mrf.mxu0 }
 0xce4   :  { %v4316_v60 = vpop.f32.mrf.mxu3  ;;  %v3840_v29 = vadd.f32 %v3808_v6, %v8115_v4  ;;  %v3706_v39 = vadd.f32 %v7904_v43, %v3705_v31  ;;  %4672 = vmatmul.msk.bf16.gmra.mxu3 %vm348_vm1, %v4219_v56  ;;  %v5120_v57 = vpop.eup %5119 }
 0xce5   :  { %v4317_v58 = vadd.f32 %v8052_v26, %v4316_v60  ;;  %v3935_v5 = vadd.f32 1.0, %v5120_v57 }
 0xce6   :  { %v3872_v14 = vmul.f32 0.7978846, %v3840_v29  ;;  %v3745_v33 = vmul.f32 %v3706_v39, %v3706_v39  ;;  %v4136_v53 = vpop.f32.mrf.mxu2 }
 0xce7   :  { %4386 = vst [vmem:[#allocation2 + $0x38] sm:$0xff] %v4317_v58  ;;  %v3967_v17 = vmul.f32 0.5, %v3935_v5  ;;  %v4137_v12 = vadd.f32 %v8134_v46, %v4136_v53 }
 0xce8   :  { %v3777_v1 = vmul.f32 %v3745_v33, %v3706_v39  ;;  %5121 = vtanh.f32 %v3872_v14 }
 0xce9   :  { %v3999_v32 = vmul.f32 %v3967_v17, %v3701_v37  ;;  %v4192_v50 = vadd.f32 %v4137_v12, %v8405_v13 }
 0xcea   :  { %v3809_v40 = vmul.f32 0.044715, %v3777_v1  ;;  %v8407_v1 = vld [vmem:[#allocation40_spill] sm:$0xff] }
 0xceb   :  { %v3708_v45 = vpop.f32.mrf.mxu0  ;;  %v4034_v25 = vpack.c.bf16 %v3999_v32, %v3998_v15 }
 0xcec   :  { %v3841_v2 = vadd.f32 %v3809_v40, %v3706_v39  ;;  %v8129_v52 = vadd.f32 %v7904_v43, %v3708_v45  ;;  %v8408_v40 = vld [vmem:[#allocation55_spill] sm:$0xff] }
 0xced   :  { %v4319_v10 = vpop.f32.mrf.mxu3  ;;  %4155 = vmatmul.bf16.gmra.mxu2 %v4034_v25 }
 0xcee   :  { %v3873_v47 = vmul.f32 0.7978846, %v3841_v2  ;;  %v3746_v30 = vmul.f32 %v8129_v52, %v8129_v52  ;;  %v4320_v18 = vadd.f32 %v8052_v26, %v4319_v10  ;;  %v4138_v37 = vpop.f32.mrf.mxu2  ;;  %v5122_v11 = vpop.eup %5121 }
 0xcef   :  { %v4139_v59 = vadd.f32 %v8134_v46, %v4138_v37  ;;  %v3936_v19 = vadd.f32 1.0, %v5122_v11 }
 0xcf0   :  { %5123 = vtanh.f32 %v3873_v47  ;;  %v3778_v8 = vmul.f32 %v3746_v30, %v8129_v52  ;;  %4387 = vst [vmem:[#allocation2 + $0x40] sm:$0xff] %v4320_v18 }
 0xcf1   :  { %v4193_v61 = vadd.f32 %v4139_v59, %v8406_v54  ;;  %v3968_v7 = vmul.f32 0.5, %v3936_v19  ;;  %v8409_v54 = vld [vmem:[#allocation45_spill] sm:$0xff] }
 0xcf2   :  { %v3810_v41 = vmul.f32 0.044715, %v3778_v8 }
 0xcf3   :  { %v4220_v28 = vpack.c.bf16 %v4193_v61, %v4192_v50  ;;  %v3710_v20 = vpop.f32.mrf.mxu0  ;;  %v4000_v31 = vmul.f32 %v3968_v7, %v8115_v4 }
 0xcf4   :  { %v3842_v34 = vadd.f32 %v3810_v41, %v8129_v52  ;;  %v3711_v27 = vadd.f32 %v7904_v43, %v3710_v20 }
 0xcf5   :  { %v4321_v21 = vpop.f32.mrf.mxu3  ;;  %4673 = vmatmul.msk.bf16.gmra.mxu3 %vm348_vm1, %v4220_v28 }
 0xcf6   :  { %v5124_v16 = vpop.eup %5123  ;;  %v3874_v35 = vmul.f32 0.7978846, %v3842_v34  ;;  %v3747_v55 = vmul.f32 %v3711_v27, %v3711_v27  ;;  %v4322_v62 = vadd.f32 %v8052_v26, %v4321_v21  ;;  %v5142_v34 = vld [vmem:[%s8216_s3 + $0x6] ss:$0 sm:$0xff]  ;;  %s5172_s3 = smov [#allocation2]  }
 0xcf7   :  { %v4141_v24 = vpop.f32.mrf.mxu2  ;;  %v3937_v0 = vadd.f32 1.0, %v5124_v16  ;;  %s4415_s11 = sshll.u32 %s5172_s3, 4  ;;  %s4416_s11 = int_to_ptr.vmem [resolvable:$true] %s4415_s11 }
 0xcf8   :  { %v3779_v6 = vmul.f32 %v3747_v55, %v3711_v27  ;;  %4388 = vst [vmem:[#allocation2 + $0x48] sm:$0xff] %v4322_v62  ;;  %5125 = vtanh.f32 %v3874_v35  ;;  %v4142_v49 = vadd.f32 %v8134_v46, %v4141_v24 }
 0xcf9   :  { %v3969_v60 = vmul.f32 0.5, %v3937_v0 }
 0xcfa   :  { %v3811_v56 = vmul.f32 0.044715, %v3779_v6  ;;  %v4194_v17 = vadd.f32 %v4142_v49, %v8407_v1 }
 0xcfb   :  { %v4001_v58 = vmul.f32 %v3969_v60, %v3706_v39 }
 0xcfc   :  { %v3843_v43 = vadd.f32 %v3811_v56, %v3711_v27 }
 0xcfd   :  { %v4324_v29 = vpop.f32.mrf.mxu3  ;;  %v4035_v57 = vpack.c.bf16 %v4001_v58, %v4000_v31 }
 0xcfe   :  { %v3875_v14 = vmul.f32 0.7978846, %v3843_v43  ;;  %v4325_v33 = vadd.f32 %v8052_v26, %v4324_v29  ;;  %v5126_v48 = vpop.eup %5125 }
 0xcff   :  { %v4143_v53 = vpop.f32.mrf.mxu2  ;;  %4160 = vmatmul.bf16.gmra.mxu2 %v4035_v57  ;;  %v3938_v45 = vadd.f32 1.0, %v5126_v48 }
 0xd00   :  { %v4144_v5 = vadd.f32 %v8134_v46, %v4143_v53  ;;  %5127 = vtanh.f32 %v3875_v14  ;;  %4389 = vst [vmem:[#allocation2 + $0x50] sm:$0xff] %v4325_v33 }
 0xd01   :  { %v3970_v25 = vmul.f32 0.5, %v3938_v45 }
 0xd02   :  { %v4195_v4 = vadd.f32 %v4144_v5, %v8408_v40 }
 0xd03   :  { %v4002_v30 = vmul.f32 %v3970_v25, %v8129_v52 }
 0xd04   :  { %v4221_v39 = vpack.c.bf16 %v4195_v4, %v4194_v17 }
 0xd05   :  { %v4326_v15 = vpop.f32.mrf.mxu3 }
 0xd06   :  { %4674 = vmatmul.msk.bf16.gmra.mxu3 %vm348_vm1, %v4221_v39  ;;  %v5128_v32 = vpop.eup %5127  ;;  %v4327_v2 = vadd.f32 %v8052_v26, %v4326_v15 }
 0xd07   :  { %v4146_v12 = vpop.f32.mrf.mxu2  ;;  %v3939_v10 = vadd.f32 1.0, %v5128_v32 }
 0xd08   :  { %4390 = vst [vmem:[#allocation2 + $0x58] sm:$0xff] %v4327_v2  ;;  %v4147_v37 = vadd.f32 %v8134_v46, %v4146_v12 }
 0xd09   :  { %v3971_v47 = vmul.f32 0.5, %v3939_v10 }
 0xd0a   :  { %v4196_v61 = vadd.f32 %v4147_v37, %v8409_v54 }
 0xd0b   :  { %v4003_v18 = vmul.f32 %v3971_v47, %v3711_v27 }
 0xd0d   :  { %v4329_v59 = vpop.f32.mrf.mxu3  ;;  %v4036_v11 = vpack.c.bf16 %v4003_v18, %v4002_v30 }
 0xd0e   :  { %v4330_v8 = vadd.f32 %v8052_v26, %v4329_v59 }
 0xd0f   :  { %v4148_v13 = vpop.f32.mrf.mxu2  ;;  %4165 = vmatmul.bf16.gmra.mxu2 %v4036_v11 }
 0xd10   :  { %v4149_v50 = vadd.f32 %v8134_v46, %v4148_v13  ;;  %4391 = vst [vmem:[#allocation2 + $0x60] sm:$0xff] %v4330_v8 }
 0xd12   :  { %v4197_v41 = vadd.f32 %v4149_v50, %v7379_v63 }
 0xd14   :  { %v4222_v28 = vpack.c.bf16 %v4197_v41, %v4196_v61 }
 0xd15   :  { %v4331_v20 = vpop.f32.mrf.mxu3 }
 0xd16   :  { %4675 = vmatmul.msk.bf16.gmra.mxu3 %vm348_vm1, %v4222_v28  ;;  %v4332_v52 = vadd.f32 %v8052_v26, %v4331_v20 }
 0xd18   :  { %4392 = vst [vmem:[#allocation2 + $0x68] sm:$0xff] %v4332_v52 }
 0xd44   :  { %v3713_v19 = vpop.f32.mrf.mxu0 }
 0xd45   :  { %v3714_v27 = vadd.f32 %v5142_v34, %v3713_v19 }
 0xd47   :  { %v3748_v21 = vmul.f32 %v3714_v27, %v3714_v27 }
 0xd49   :  { %v3780_v16 = vmul.f32 %v3748_v21, %v3714_v27 }
 0xd4b   :  { %v3812_v35 = vmul.f32 0.044715, %v3780_v16 }
 0xd4c   :  { %v3715_v55 = vpop.f32.mrf.mxu0 }
 0xd4d   :  { %v3844_v62 = vadd.f32 %v3812_v35, %v3714_v27  ;;  %v3716_v24 = vadd.f32 %v5142_v34, %v3715_v55 }
 0xd4f   :  { %v3876_v63 = vmul.f32 0.7978846, %v3844_v62  ;;  %v3749_v0 = vmul.f32 %v3716_v24, %v3716_v24 }
 0xd51   :  { %v3781_v7 = vmul.f32 %v3749_v0, %v3716_v24  ;;  %5129 = vtanh.f32 %v3876_v63 }
 0xd53   :  { %v3813_v6 = vmul.f32 0.044715, %v3781_v7 }
 0xd55   :  { %v3845_v60 = vadd.f32 %v3813_v6, %v3716_v24 }
 0xd57   :  { %v3877_v56 = vmul.f32 0.7978846, %v3845_v60  ;;  %v5130_v31 = vpop.eup %5129 }
 0xd58   :  { %v3940_v58 = vadd.f32 1.0, %v5130_v31 }
 0xd59   :  { %5131 = vtanh.f32 %v3877_v56 }
 0xd5a   :  { %v3972_v57 = vmul.f32 0.5, %v3940_v58 }
 0xd5c   :  { %v4004_v33 = vmul.f32 %v3972_v57, %v3714_v27 }
 0xd5f   :  { %v5132_v43 = vpop.eup %5131 }
 0xd60   :  { %v4151_v49 = vpop.f32.mrf.mxu2  ;;  %v3941_v29 = vadd.f32 1.0, %v5132_v43 }
 0xd61   :  { %v4152_v5 = vadd.f32 %v8134_v46, %v4151_v49 }
 0xd62   :  { %v3973_v14 = vmul.f32 0.5, %v3941_v29 }
 0xd63   :  { %v4198_v40 = vadd.f32 %v4152_v5, %v7385_v23 }
 0xd64   :  { %v4005_v53 = vmul.f32 %v3973_v14, %v3716_v24 }
 0xd66   :  { %v4037_v48 = vpack.c.bf16 %v4005_v53, %v4004_v33 }
 0xd67   :  { %v4334_v4 = vpop.f32.mrf.mxu3 }
 0xd68   :  { %v4153_v1 = vpop.f32.mrf.mxu2  ;;  %4170 = vmatmul.bf16.gmra.mxu2 %v4037_v48  ;;  %v4335_v45 = vadd.f32 %v8052_v26, %v4334_v4 }
 0xd69   :  { %v4154_v17 = vadd.f32 %v8134_v46, %v4153_v1 }
 0xd6a   :  { %4393 = vst [vmem:[#allocation2 + $0x70] sm:$0xff] %v4335_v45 }
 0xd6b   :  { %v4199_v39 = vadd.f32 %v4154_v17, %v7465_v51 }
 0xd6d   :  { %v4223_v15 = vpack.c.bf16 %v4199_v39, %v4198_v40 }
 0xd6f   :  { %4676 = vmatmul.msk.bf16.gmra.mxu3 %vm348_vm1, %v4223_v15  ;;  %v4336_v32 = vpop.f32.mrf.mxu3 }
 0xd70   :  { %v4337_v2 = vadd.f32 %v8052_v26, %v4336_v32  ;;  %v4156_v12 = vpop.f32.mrf.mxu2 }
 0xd71   :  { %v4157_v25 = vadd.f32 %v8134_v46, %v4156_v12 }
 0xd72   :  { %4394 = vst [vmem:[#allocation2 + $0x78] sm:$0xff] %v4337_v2 }
 0xd73   :  { %v4200_v30 = vadd.f32 %v4157_v25, %v7508_v9 }
 0xd78   :  { %v4339_v10 = vpop.f32.mrf.mxu3  ;;  %v4158_v23 = vpop.f32.mrf.mxu2 }
 0xd79   :  { %v4340_v47 = vadd.f32 %v8052_v26, %v4339_v10  ;;  %v4159_v51 = vadd.f32 %v8134_v46, %v4158_v23 }
 0xd7b   :  { %4395 = vst [vmem:[#allocation2 + $0x80] sm:$0xff] %v4340_v47  ;;  %v4201_v18 = vadd.f32 %v4159_v51, %v7551_v44  ;;  %v8410_v44 = vld [vmem:[#allocation44_spill] sm:$0xff] }
 0xd7d   :  { %v4224_v37 = vpack.c.bf16 %v4201_v18, %v4200_v30 }
 0xd7f   :  { %4677 = vmatmul.msk.bf16.gmra.mxu3 %vm348_vm1, %v4224_v37 }
 0xd80   :  { %v4341_v59 = vpop.f32.mrf.mxu3 }
 0xd81   :  { %v4342_v11 = vadd.f32 %v8052_v26, %v4341_v59 }
 0xd82   :  { %v4161_v8 = vpop.f32.mrf.mxu2 }
 0xd83   :  { %4396 = vst [vmem:[#allocation2 + $0x88] sm:$0xff] %v4342_v11  ;;  %v4162_v50 = vadd.f32 %v8134_v46, %v4161_v8 }
 0xd85   :  { %v4202_v9 = vadd.f32 %v4162_v50, %v7587_v22 }
 0xd89   :  { %v4344_v13 = vpop.f32.mrf.mxu3 }
 0xd8a   :  { %v4345_v54 = vadd.f32 %v8052_v26, %v4344_v13  ;;  %v4163_v61 = vpop.f32.mrf.mxu2 }
 0xd8b   :  { %v4164_v41 = vadd.f32 %v8134_v46, %v4163_v61 }
 0xd8c   :  { %4397 = vst [vmem:[#allocation2 + $0x90] sm:$0xff] %v4345_v54 }
 0xd8d   :  { %v4203_v28 = vadd.f32 %v4164_v41, %v8410_v44 }
 0xd8f   :  { %v4225_v20 = vpack.c.bf16 %v4203_v28, %v4202_v9 }
 0xd91   :  { %v4346_v52 = vpop.f32.mrf.mxu3  ;;  %4678 = vmatmul.msk.bf16.gmra.mxu3 %vm348_vm1, %v4225_v20 }
 0xd92   :  { %v4347_v19 = vadd.f32 %v8052_v26, %v4346_v52  ;;  %v4166_v34 = vpop.f32.mrf.mxu2 }
 0xd93   :  { %v4167_v21 = vadd.f32 %v8134_v46, %v4166_v34 }
 0xd94   :  { %4398 = vst [vmem:[#allocation2 + $0x98] sm:$0xff] %v4347_v19 }
 0xd95   :  { %v4204_v22 = vadd.f32 %v4167_v21, %v7649_v42 }
 0xd99   :  { %v4349_v27 = vpop.f32.mrf.mxu3 }
 0xd9a   :  { %v4350_v16 = vadd.f32 %v8052_v26, %v4349_v27  ;;  %v4168_v35 = vpop.f32.mrf.mxu2 }
 0xd9b   :  { %v4169_v55 = vadd.f32 %v8134_v46, %v4168_v35 }
 0xd9c   :  { %4399 = vst [vmem:[#allocation2 + $0xa0] sm:$0xff] %v4350_v16 }
 0xd9d   :  { %v4205_v62 = vadd.f32 %v4169_v55, %v7661_v36 }
 0xd9f   :  { %v4226_v24 = vpack.c.bf16 %v4205_v62, %v4204_v22 }
 0xda1   :  { %v4351_v63 = vpop.f32.mrf.mxu3  ;;  %4679 = vmatmul.msk.bf16.gmra.mxu3 %vm348_vm1, %v4226_v24 }
 0xda2   :  { %v4352_v0 = vadd.f32 %v8052_v26, %v4351_v63 }
 0xda4   :  { %4400 = vst [vmem:[#allocation2 + $0xa8] sm:$0xff] %v4352_v0 }
 0xdeb   :  { %v4171_v7 = vpop.f32.mrf.mxu2 }
 0xdec   :  { %v4172_v60 = vadd.f32 %v8134_v46, %v4171_v7 }
 0xdee   :  { %v4206_v42 = vadd.f32 %v4172_v60, %v7667_v3 }
 0xdf2   :  { %v4354_v6 = vpop.f32.mrf.mxu3 }
 0xdf3   :  { %v4355_v56 = vadd.f32 %v8052_v26, %v4354_v6  ;;  %v4173_v31 = vpop.f32.mrf.mxu2 }
 0xdf4   :  { %v4174_v58 = vadd.f32 %v8134_v46, %v4173_v31 }
 0xdf5   :  { %4401 = vst [vmem:[#allocation2 + $0xb0] sm:$0xff] %v4355_v56 }
 0xdf6   :  { %v4207_v36 = vadd.f32 %v4174_v58, %v7740_v38 }
 0xdf8   :  { %v4227_v43 = vpack.c.bf16 %v4207_v36, %v4206_v42 }
 0xdfa   :  { %v4356_v49 = vpop.f32.mrf.mxu3  ;;  %4680 = vmatmul.msk.bf16.gmra.mxu3 %vm348_vm1, %v4227_v43 }
 0xdfb   :  { %v4357_v29 = vadd.f32 %v8052_v26, %v4356_v49 }
 0xdfd   :  { %4402 = vst [vmem:[#allocation2 + $0xb8] sm:$0xff] %v4357_v29 }
 0xe02   :  { %v4359_v57 = vpop.f32.mrf.mxu3 }
 0xe03   :  { %v4360_v14 = vadd.f32 %v8052_v26, %v4359_v57 }
 0xe05   :  { %4403 = vst [vmem:[#allocation2 + $0xc0] sm:$0xff] %v4360_v14 }
 0xe0a   :  { %v4361_v33 = vpop.f32.mrf.mxu3 }
 0xe0b   :  { %v4362_v53 = vadd.f32 %v8052_v26, %v4361_v33 }
 0xe0d   :  { %4404 = vst [vmem:[#allocation2 + $0xc8] sm:$0xff] %v4362_v53 }
 0xe14   :  { %v4364_v46 = vpop.f32.mrf.mxu3 }
 0xe15   :  { %v4365_v3 = vadd.f32 %v8052_v26, %v4364_v46 }
 0xe17   :  { %4405 = vst [vmem:[#allocation2 + $0xd0] sm:$0xff] %v4365_v3 }
 0xe1c   :  { %v4366_v38 = vpop.f32.mrf.mxu3 }
 0xe1d   :  { %v4367_v5 = vadd.f32 %v8052_v26, %v4366_v38 }
 0xe1f   :  { %4406 = vst [vmem:[#allocation2 + $0xd8] sm:$0xff] %v4367_v5 }
 0xe24   :  { %v4369_v48 = vpop.f32.mrf.mxu3 }
 0xe25   :  { %v4370_v1 = vadd.f32 %v8052_v26, %v4369_v48 }
 0xe27   :  { %4407 = vst [vmem:[#allocation2 + $0xe0] sm:$0xff] %v4370_v1 }
 0xe2c   :  { %v4371_v17 = vpop.f32.mrf.mxu3 }
 0xe2d   :  { %v4372_v40 = vadd.f32 %v8052_v26, %v4371_v17 }
 0xe2f   :  { %4408 = vst [vmem:[#allocation2 + $0xe8] sm:$0xff] %v4372_v40 }
 0xe7d   :  { %v4374_v4 = vpop.f32.mrf.mxu3 }
 0xe7e   :  { %v4375_v39 = vadd.f32 %v8052_v26, %v4374_v4 }
 0xe80   :  { %4409 = vst [vmem:[#allocation2 + $0xf0] sm:$0xff] %v4375_v39 }
 0xe85   :  { %v4376_v45 = vpop.f32.mrf.mxu3 }
 0xe86   :  { %v4377_v15 = vadd.f32 %v8052_v26, %v4376_v45 }
 0xe88   :  { %4410 = vst [vmem:[#allocation2 + $0xf8] sm:$0xff] %v4377_v15 }
 0xe89   :  { %4423 = dma.vmem_to_hbm [thread:$0]  %s4416_s11, 4096, %s4418_s14, [#allocation3], %s5173_s5, %s5173_s5, %s5174_s7  }
 0xe8a   :  { %5167 = dma.done.wait [#allocation3], 4096  }
 0xe8b   :  { %5168 = vsyncadd [#allocation3], 4294963200 }
 0xe8c   :  { %4428 = vsyncpa [#allocation3], 1 }

</bundles_post_ra>
